<compile_context>
chip_gen: v6e
topology: v6e:2x2x1
jax: 0.10.0
libtpu: 0.0.40
codegen_flags: <defaults>
</compile_context>

<pallas_src>
import jax
import jax.numpy as jnp
from jax.experimental import pallas as pl
from jax.experimental.pallas import tpu as pltpu

LEAKY_SLOPE = 0.2            # matches nn.LeakyReLU(0.2) in the reference

# Model dimensions (small, consistent with the module).
BATCH = 2
INPUT_DIM = 64               # must equal HIDDEN_DIM (see note above)
HIDDEN_DIM = 64
LATENT_DIM = 32
OUTPUT_DIM = 3 * 428 * 240   # 308160 — fixed by the decoder's .view()

TN = 8192                                    # lane tile for the big output matmul
N_TILES = (OUTPUT_DIM + TN - 1) // TN        # 38
OUTPUT_DIM_PAD = N_TILES * TN                # 311296

assert INPUT_DIM == HIDDEN_DIM, "reference forward requires input_dim == hidden_dim"


def _leaky(x):
    return jnp.where(x >= 0, x, LEAKY_SLOPE * x)


# ---------------------------------------------------------------------------
# Kernel 1: fused small layers (encoder + reparameterization + decoder hidden)
# ---------------------------------------------------------------------------
def _small_fused_kernel(
    x_ref, eps_ref,
    w_in_ref, b_in_ref, w_in2_ref, b_in2_ref,
    w_mean_ref, b_mean_ref, w_var_ref, b_var_ref,
    w_d1_ref, b_d1_ref, w_d2_ref, b_d2_ref,
    mean_ref, logvar_ref, h_ref,
):
    f32 = jnp.float32
    x = x_ref[...]

    # --- Encoder (FC_input applied twice, exactly as in the reference) ---
    x1 = jnp.dot(x, w_in_ref[...], preferred_element_type=f32) + b_in_ref[...]
    h = _leaky(jnp.dot(x1, w_in_ref[...], preferred_element_type=f32) + b_in_ref[...])
    h = _leaky(jnp.dot(h, w_in2_ref[...], preferred_element_type=f32) + b_in2_ref[...])
    mean = jnp.dot(h, w_mean_ref[...], preferred_element_type=f32) + b_mean_ref[...]
    log_var = jnp.dot(h, w_var_ref[...], preferred_element_type=f32) + b_var_ref[...]

    # --- Reparameterization: z = mean + exp(0.5 * log_var) * eps ---
    z = mean + jnp.exp(0.5 * log_var) * eps_ref[...]

    # --- Decoder hidden layers ---
    hd = _leaky(jnp.dot(z, w_d1_ref[...], preferred_element_type=f32) + b_d1_ref[...])
    hd = _leaky(jnp.dot(hd, w_d2_ref[...], preferred_element_type=f32) + b_d2_ref[...])

    mean_ref[...] = mean
    logvar_ref[...] = log_var
    h_ref[...] = hd.astype(h_ref.dtype)     # bf16 hand-off to the big matmul


def _full_spec(shape):
    zeros = (0,) * len(shape)
    return pl.BlockSpec(shape, lambda i, _z=zeros: _z)


def encode_reparam_decode_hidden(p, x, eps):
    """One fused pallas_call for everything except the giant output layer."""
    inputs = (
        x, eps,
        p["enc_in_w"], p["enc_in_b"],
        p["enc_in2_w"], p["enc_in2_b"],
        p["enc_mean_w"], p["enc_mean_b"],
        p["enc_var_w"], p["enc_var_b"],
        p["dec_h1_w"], p["dec_h1_b"],
        p["dec_h2_w"], p["dec_h2_b"],
    )
    in_specs = [_full_spec(a.shape) for a in inputs]
    out_shapes = (
        jax.ShapeDtypeStruct((BATCH, LATENT_DIM), jnp.float32),   # mean
        jax.ShapeDtypeStruct((BATCH, LATENT_DIM), jnp.float32),   # log_var
        jax.ShapeDtypeStruct((BATCH, HIDDEN_DIM), jnp.bfloat16),  # decoder hidden
    )
    out_specs = [
        _full_spec((BATCH, LATENT_DIM)),
        _full_spec((BATCH, LATENT_DIM)),
        _full_spec((BATCH, HIDDEN_DIM)),
    ]
    return pl.pallas_call(
        _small_fused_kernel,
        out_shape=out_shapes,
        grid_spec=pltpu.PrefetchScalarGridSpec(
            num_scalar_prefetch=0,
            grid=(1,),
            in_specs=in_specs,
            out_specs=out_specs,
        ),
        compiler_params=pltpu.CompilerParams(
            dimension_semantics=("arbitrary",)),
    )(*inputs)


# ---------------------------------------------------------------------------
# Kernel 2: big decoder output layer (bf16 weights, contiguous pre-tiled)
# ---------------------------------------------------------------------------
def _big_output_kernel(h_ref, w_ref, b_ref, o_ref):
    # h_ref: (B, K) bf16, w_ref: (K, TN) bf16 (leading tile dim squeezed),
    # b_ref: (1, TN) f32, o_ref: (B, TN) f32
    y = jnp.dot(h_ref[...], w_ref[...], preferred_element_type=jnp.float32)
    y = y + b_ref[...]
    o_ref[...] = (1.0 / (1.0 + jnp.exp(-y))).astype(o_ref.dtype)


def decoder_output_tiled(h_bf16, w_tiled, b_pad):
    """Fused (x @ W + b -> sigmoid), tiled over the padded output dim.

    w_tiled is pre-reshaped to (N_TILES, K, TN) so every grid step DMAs one
    fully contiguous bf16 block (~1 MB) from HBM.
    """
    b_, k = h_bf16.shape
    nt, k2, tn = w_tiled.shape
    assert k == k2 and nt * tn == b_pad.shape[1]
    return pl.pallas_call(
        _big_output_kernel,
        out_shape=jax.ShapeDtypeStruct((b_, nt * tn), jnp.float32),
        grid_spec=pltpu.PrefetchScalarGridSpec(
            num_scalar_prefetch=0,
            grid=(nt,),
            in_specs=[
                pl.BlockSpec((b_, k), lambda j: (0, 0)),
                pl.BlockSpec((None, k, tn), lambda j: (j, 0, 0)),   # contiguous tile j
                pl.BlockSpec((1, tn), lambda j: (0, j)),
            ],
            out_specs=pl.BlockSpec((b_, tn), lambda j: (0, j)),
        ),
        compiler_params=pltpu.CompilerParams(
            dimension_semantics=("parallel",)),   # shard tiles across v7x's 2 TCs
    )(h_bf16, w_tiled, b_pad)


# ---------------------------------------------------------------------------
# Parameter init (deterministic, PyTorch-style uniform(-1/sqrt(fan_in), ...))
# ---------------------------------------------------------------------------
def _init_linear(key, fan_in, fan_out):
    kw, kb = jax.random.split(key)
    bound = 1.0 / (fan_in ** 0.5)
    w = jax.random.uniform(kw, (fan_in, fan_out), jnp.float32, -bound, bound)
    b = jax.random.uniform(kb, (fan_out,), jnp.float32, -bound, bound)
    return w, b


def init_params(key):
    keys = jax.random.split(key, 7)
    p = {}
    w, b = _init_linear(keys[0], INPUT_DIM, HIDDEN_DIM)
    p["enc_in_w"], p["enc_in_b"] = w, b.reshape(1, HIDDEN_DIM)
    w, b = _init_linear(keys[1], HIDDEN_DIM, HIDDEN_DIM)
    p["enc_in2_w"], p["enc_in2_b"] = w, b.reshape(1, HIDDEN_DIM)
    w, b = _init_linear(keys[2], HIDDEN_DIM, LATENT_DIM)
    p["enc_mean_w"], p["enc_mean_b"] = w, b.reshape(1, LATENT_DIM)
    w, b = _init_linear(keys[3], HIDDEN_DIM, LATENT_DIM)
    p["enc_var_w"], p["enc_var_b"] = w, b.reshape(1, LATENT_DIM)
    w, b = _init_linear(keys[4], LATENT_DIM, HIDDEN_DIM)
    p["dec_h1_w"], p["dec_h1_b"] = w, b.reshape(1, HIDDEN_DIM)
    w, b = _init_linear(keys[5], HIDDEN_DIM, HIDDEN_DIM)
    p["dec_h2_w"], p["dec_h2_b"] = w, b.reshape(1, HIDDEN_DIM)

    # Huge output layer: pad to a TN multiple, pre-tile to contiguous
    # (N_TILES, K, TN) blocks, and cast the weight to bf16.
    w_out, b_out = _init_linear(keys[6], HIDDEN_DIM, OUTPUT_DIM)
    pad = OUTPUT_DIM_PAD - OUTPUT_DIM
    w_pad = jnp.pad(w_out, ((0, 0), (0, pad)))                      # (K, N_pad)
    w_tiled = w_pad.reshape(HIDDEN_DIM, N_TILES, TN).transpose(1, 0, 2)
    p["dec_out_w"] = w_tiled.astype(jnp.bfloat16)                   # (NT, K, TN)
    p["dec_out_b"] = jnp.pad(b_out, ((0, pad),)).reshape(1, OUTPUT_DIM_PAD)
    return p


# ---------------------------------------------------------------------------
# VAE forward
# ---------------------------------------------------------------------------
def vae_forward(params, x, eps):
    mean, log_var, h = encode_reparam_decode_hidden(params, x, eps)
    x_hat_flat = decoder_output_tiled(h, params["dec_out_w"], params["dec_out_b"])
    x_hat = x_hat_flat[:, :OUTPUT_DIM].reshape(-1, 3, 428, 240)
    return x_hat, mean, log_var


if __name__ == "__main__":
    root = jax.random.PRNGKey(0)
    k_params, k_x, k_eps = jax.random.split(root, 3)

    params = init_params(k_params)
    x = jax.random.normal(k_x, (BATCH, INPUT_DIM), jnp.float32)
    eps = jax.random.normal(k_eps, (BATCH, LATENT_DIM), jnp.float32)  # randn_like

    x_hat, mean, log_var = jax.jit(vae_forward)(params, x, eps)
    jax.block_until_ready((x_hat, mean, log_var))

    assert x_hat.shape == (BATCH, 3, 428, 240)
    assert mean.shape == (BATCH, LATENT_DIM)
    assert log_var.shape == (BATCH, LATENT_DIM)
    assert bool(jnp.all(jnp.isfinite(x_hat)))
    assert bool(jnp.all((x_hat >= 0.0) & (x_hat <= 1.0)))

    print("KERNEL_OK")
</pallas_src>

<mosaic_0001>
module attributes {stable_mosaic.version = 11 : i64} {
  func.func @_small_fused_kernel(%arg0: i32, %arg1: memref<2x64xf32, #tpu.memory_space<vmem>>, %arg2: memref<2x32xf32, #tpu.memory_space<vmem>>, %arg3: memref<64x64xf32, #tpu.memory_space<vmem>>, %arg4: memref<1x64xf32, #tpu.memory_space<vmem>>, %arg5: memref<64x64xf32, #tpu.memory_space<vmem>>, %arg6: memref<1x64xf32, #tpu.memory_space<vmem>>, %arg7: memref<64x32xf32, #tpu.memory_space<vmem>>, %arg8: memref<1x32xf32, #tpu.memory_space<vmem>>, %arg9: memref<64x32xf32, #tpu.memory_space<vmem>>, %arg10: memref<1x32xf32, #tpu.memory_space<vmem>>, %arg11: memref<32x64xf32, #tpu.memory_space<vmem>>, %arg12: memref<1x64xf32, #tpu.memory_space<vmem>>, %arg13: memref<64x64xf32, #tpu.memory_space<vmem>>, %arg14: memref<1x64xf32, #tpu.memory_space<vmem>>, %arg15: memref<2x32xf32, #tpu.memory_space<vmem>>, %arg16: memref<2x32xf32, #tpu.memory_space<vmem>>, %arg17: memref<2x64xbf16, #tpu.memory_space<vmem>>) attributes {dimension_semantics = [#tpu.dimension_semantics<arbitrary>], iteration_bounds = array<i64: 1>, scalar_prefetch = 0 : i64, scratch_operands = 0 : i64, tpu.core_type = #tpu.core_type<tc>, window_params = [{pipeline_mode = #tpu.pipeline_mode<synchronous>, transform_indices = @transform_0, window_bounds = array<i64: 2, 64>}, {pipeline_mode = #tpu.pipeline_mode<synchronous>, transform_indices = @transform_1, window_bounds = array<i64: 2, 32>}, {pipeline_mode = #tpu.pipeline_mode<synchronous>, transform_indices = @transform_2, window_bounds = array<i64: 64, 64>}, {pipeline_mode = #tpu.pipeline_mode<synchronous>, transform_indices = @transform_3, window_bounds = array<i64: 1, 64>}, {pipeline_mode = #tpu.pipeline_mode<synchronous>, transform_indices = @transform_4, window_bounds = array<i64: 64, 64>}, {pipeline_mode = #tpu.pipeline_mode<synchronous>, transform_indices = @transform_5, window_bounds = array<i64: 1, 64>}, {pipeline_mode = #tpu.pipeline_mode<synchronous>, transform_indices = @transform_6, window_bounds = array<i64: 64, 32>}, {pipeline_mode = #tpu.pipeline_mode<synchronous>, transform_indices = @transform_7, window_bounds = array<i64: 1, 32>}, {pipeline_mode = #tpu.pipeline_mode<synchronous>, transform_indices = @transform_8, window_bounds = array<i64: 64, 32>}, {pipeline_mode = #tpu.pipeline_mode<synchronous>, transform_indices = @transform_9, window_bounds = array<i64: 1, 32>}, {pipeline_mode = #tpu.pipeline_mode<synchronous>, transform_indices = @transform_10, window_bounds = array<i64: 32, 64>}, {pipeline_mode = #tpu.pipeline_mode<synchronous>, transform_indices = @transform_11, window_bounds = array<i64: 1, 64>}, {pipeline_mode = #tpu.pipeline_mode<synchronous>, transform_indices = @transform_12, window_bounds = array<i64: 64, 64>}, {pipeline_mode = #tpu.pipeline_mode<synchronous>, transform_indices = @transform_13, window_bounds = array<i64: 1, 64>}, {pipeline_mode = #tpu.pipeline_mode<synchronous>, transform_indices = @transform_14, window_bounds = array<i64: 2, 32>}, {pipeline_mode = #tpu.pipeline_mode<synchronous>, transform_indices = @transform_15, window_bounds = array<i64: 2, 32>}, {pipeline_mode = #tpu.pipeline_mode<synchronous>, transform_indices = @transform_16, window_bounds = array<i64: 2, 64>}]} {
    %c0 = arith.constant 0 : index
    %c0_0 = arith.constant 0 : index
    %0 = vector.load %arg1[%c0, %c0_0] : memref<2x64xf32, #tpu.memory_space<vmem>>, vector<2x64xf32>
    %c0_1 = arith.constant 0 : index
    %c0_2 = arith.constant 0 : index
    %1 = vector.load %arg3[%c0_1, %c0_2] : memref<64x64xf32, #tpu.memory_space<vmem>>, vector<64x64xf32>
    %cst = arith.constant dense<0.000000e+00> : vector<2x64xf32>
    %2 = tpu.matmul %0, %1, %cst {dimension_numbers = #tpu.dot_dimension_numbers<[1], [0], [0], [1], [0, 0, 1, 1], [], []>} : vector<2x64xf32>, vector<64x64xf32>, vector<2x64xf32> -> vector<2x64xf32>
    %c0_3 = arith.constant 0 : index
    %c0_4 = arith.constant 0 : index
    %3 = vector.load %arg4[%c0_3, %c0_4] : memref<1x64xf32, #tpu.memory_space<vmem>>, vector<1x64xf32>
    %4 = vector.broadcast %3 : vector<1x64xf32> to vector<2x64xf32>
    %5 = arith.addf %2, %4 : vector<2x64xf32>
    %c0_5 = arith.constant 0 : index
    %c0_6 = arith.constant 0 : index
    %6 = vector.load %arg3[%c0_5, %c0_6] : memref<64x64xf32, #tpu.memory_space<vmem>>, vector<64x64xf32>
    %cst_7 = arith.constant dense<0.000000e+00> : vector<2x64xf32>
    %7 = tpu.matmul %5, %6, %cst_7 {dimension_numbers = #tpu.dot_dimension_numbers<[1], [0], [0], [1], [0, 0, 1, 1], [], []>} : vector<2x64xf32>, vector<64x64xf32>, vector<2x64xf32> -> vector<2x64xf32>
    %c0_8 = arith.constant 0 : index
    %c0_9 = arith.constant 0 : index
    %8 = vector.load %arg4[%c0_8, %c0_9] : memref<1x64xf32, #tpu.memory_space<vmem>>, vector<1x64xf32>
    %9 = vector.broadcast %8 : vector<1x64xf32> to vector<2x64xf32>
    %10 = arith.addf %7, %9 : vector<2x64xf32>
    %cst_10 = arith.constant 0.000000e+00 : f32
    %11 = vector.broadcast %cst_10 : f32 to vector<2x64xf32>
    %12 = arith.cmpf oge, %10, %11 : vector<2x64xf32>
    %cst_11 = arith.constant 2.000000e-01 : f32
    %13 = vector.broadcast %cst_11 : f32 to vector<2x64xf32>
    %14 = arith.mulf %13, %10 : vector<2x64xf32>
    %15 = arith.select %12, %10, %14 : vector<2x64xi1>, vector<2x64xf32>
    %c0_12 = arith.constant 0 : index
    %c0_13 = arith.constant 0 : index
    %16 = vector.load %arg5[%c0_12, %c0_13] : memref<64x64xf32, #tpu.memory_space<vmem>>, vector<64x64xf32>
    %cst_14 = arith.constant dense<0.000000e+00> : vector<2x64xf32>
    %17 = tpu.matmul %15, %16, %cst_14 {dimension_numbers = #tpu.dot_dimension_numbers<[1], [0], [0], [1], [0, 0, 1, 1], [], []>} : vector<2x64xf32>, vector<64x64xf32>, vector<2x64xf32> -> vector<2x64xf32>
    %c0_15 = arith.constant 0 : index
    %c0_16 = arith.constant 0 : index
    %18 = vector.load %arg6[%c0_15, %c0_16] : memref<1x64xf32, #tpu.memory_space<vmem>>, vector<1x64xf32>
    %19 = vector.broadcast %18 : vector<1x64xf32> to vector<2x64xf32>
    %20 = arith.addf %17, %19 : vector<2x64xf32>
    %cst_17 = arith.constant 0.000000e+00 : f32
    %21 = vector.broadcast %cst_17 : f32 to vector<2x64xf32>
    %22 = arith.cmpf oge, %20, %21 : vector<2x64xf32>
    %cst_18 = arith.constant 2.000000e-01 : f32
    %23 = vector.broadcast %cst_18 : f32 to vector<2x64xf32>
    %24 = arith.mulf %23, %20 : vector<2x64xf32>
    %25 = arith.select %22, %20, %24 : vector<2x64xi1>, vector<2x64xf32>
    %c0_19 = arith.constant 0 : index
    %c0_20 = arith.constant 0 : index
    %26 = vector.load %arg7[%c0_19, %c0_20] : memref<64x32xf32, #tpu.memory_space<vmem>>, vector<64x32xf32>
    %cst_21 = arith.constant dense<0.000000e+00> : vector<2x32xf32>
    %27 = tpu.matmul %25, %26, %cst_21 {dimension_numbers = #tpu.dot_dimension_numbers<[1], [0], [0], [1], [0, 0, 1, 1], [], []>} : vector<2x64xf32>, vector<64x32xf32>, vector<2x32xf32> -> vector<2x32xf32>
    %c0_22 = arith.constant 0 : index
    %c0_23 = arith.constant 0 : index
    %28 = vector.load %arg8[%c0_22, %c0_23] : memref<1x32xf32, #tpu.memory_space<vmem>>, vector<1x32xf32>
    %29 = vector.broadcast %28 : vector<1x32xf32> to vector<2x32xf32>
    %30 = arith.addf %27, %29 : vector<2x32xf32>
    %c0_24 = arith.constant 0 : index
    %c0_25 = arith.constant 0 : index
    %31 = vector.load %arg9[%c0_24, %c0_25] : memref<64x32xf32, #tpu.memory_space<vmem>>, vector<64x32xf32>
    %cst_26 = arith.constant dense<0.000000e+00> : vector<2x32xf32>
    %32 = tpu.matmul %25, %31, %cst_26 {dimension_numbers = #tpu.dot_dimension_numbers<[1], [0], [0], [1], [0, 0, 1, 1], [], []>} : vector<2x64xf32>, vector<64x32xf32>, vector<2x32xf32> -> vector<2x32xf32>
    %c0_27 = arith.constant 0 : index
    %c0_28 = arith.constant 0 : index
    %33 = vector.load %arg10[%c0_27, %c0_28] : memref<1x32xf32, #tpu.memory_space<vmem>>, vector<1x32xf32>
    %34 = vector.broadcast %33 : vector<1x32xf32> to vector<2x32xf32>
    %35 = arith.addf %32, %34 : vector<2x32xf32>
    %cst_29 = arith.constant 5.000000e-01 : f32
    %36 = vector.broadcast %cst_29 : f32 to vector<2x32xf32>
    %37 = arith.mulf %36, %35 : vector<2x32xf32>
    %38 = math.exp %37 : vector<2x32xf32>
    %c0_30 = arith.constant 0 : index
    %c0_31 = arith.constant 0 : index
    %39 = vector.load %arg2[%c0_30, %c0_31] : memref<2x32xf32, #tpu.memory_space<vmem>>, vector<2x32xf32>
    %40 = arith.mulf %38, %39 : vector<2x32xf32>
    %41 = arith.addf %30, %40 : vector<2x32xf32>
    %c0_32 = arith.constant 0 : index
    %c0_33 = arith.constant 0 : index
    %42 = vector.load %arg11[%c0_32, %c0_33] : memref<32x64xf32, #tpu.memory_space<vmem>>, vector<32x64xf32>
    %cst_34 = arith.constant dense<0.000000e+00> : vector<2x64xf32>
    %43 = tpu.matmul %41, %42, %cst_34 {dimension_numbers = #tpu.dot_dimension_numbers<[1], [0], [0], [1], [0, 0, 1, 1], [], []>} : vector<2x32xf32>, vector<32x64xf32>, vector<2x64xf32> -> vector<2x64xf32>
    %c0_35 = arith.constant 0 : index
    %c0_36 = arith.constant 0 : index
    %44 = vector.load %arg12[%c0_35, %c0_36] : memref<1x64xf32, #tpu.memory_space<vmem>>, vector<1x64xf32>
    %45 = vector.broadcast %44 : vector<1x64xf32> to vector<2x64xf32>
    %46 = arith.addf %43, %45 : vector<2x64xf32>
    %cst_37 = arith.constant 0.000000e+00 : f32
    %47 = vector.broadcast %cst_37 : f32 to vector<2x64xf32>
    %48 = arith.cmpf oge, %46, %47 : vector<2x64xf32>
    %cst_38 = arith.constant 2.000000e-01 : f32
    %49 = vector.broadcast %cst_38 : f32 to vector<2x64xf32>
    %50 = arith.mulf %49, %46 : vector<2x64xf32>
    %51 = arith.select %48, %46, %50 : vector<2x64xi1>, vector<2x64xf32>
    %c0_39 = arith.constant 0 : index
    %c0_40 = arith.constant 0 : index
    %52 = vector.load %arg13[%c0_39, %c0_40] : memref<64x64xf32, #tpu.memory_space<vmem>>, vector<64x64xf32>
    %cst_41 = arith.constant dense<0.000000e+00> : vector<2x64xf32>
    %53 = tpu.matmul %51, %52, %cst_41 {dimension_numbers = #tpu.dot_dimension_numbers<[1], [0], [0], [1], [0, 0, 1, 1], [], []>} : vector<2x64xf32>, vector<64x64xf32>, vector<2x64xf32> -> vector<2x64xf32>
    %c0_42 = arith.constant 0 : index
    %c0_43 = arith.constant 0 : index
    %54 = vector.load %arg14[%c0_42, %c0_43] : memref<1x64xf32, #tpu.memory_space<vmem>>, vector<1x64xf32>
    %55 = vector.broadcast %54 : vector<1x64xf32> to vector<2x64xf32>
    %56 = arith.addf %53, %55 : vector<2x64xf32>
    %cst_44 = arith.constant 0.000000e+00 : f32
    %57 = vector.broadcast %cst_44 : f32 to vector<2x64xf32>
    %58 = arith.cmpf oge, %56, %57 : vector<2x64xf32>
    %cst_45 = arith.constant 2.000000e-01 : f32
    %59 = vector.broadcast %cst_45 : f32 to vector<2x64xf32>
    %60 = arith.mulf %59, %56 : vector<2x64xf32>
    %61 = arith.select %58, %56, %60 : vector<2x64xi1>, vector<2x64xf32>
    %c0_46 = arith.constant 0 : index
    %c0_47 = arith.constant 0 : index
    %62 = vector.load %arg15[%c0_46, %c0_47] : memref<2x32xf32, #tpu.memory_space<vmem>>, vector<2x32xf32>
    tpu.vector_store %arg15[%c0_46, %c0_47], %30 {strides = array<i32>} : memref<2x32xf32, #tpu.memory_space<vmem>>, vector<2x32xf32>,
    %c0_48 = arith.constant 0 : index
    %c0_49 = arith.constant 0 : index
    %63 = vector.load %arg16[%c0_48, %c0_49] : memref<2x32xf32, #tpu.memory_space<vmem>>, vector<2x32xf32>
    tpu.vector_store %arg16[%c0_48, %c0_49], %35 {strides = array<i32>} : memref<2x32xf32, #tpu.memory_space<vmem>>, vector<2x32xf32>,
    %64 = arith.truncf %61 : vector<2x64xf32> to vector<2x64xbf16>
    %c0_50 = arith.constant 0 : index
    %c0_51 = arith.constant 0 : index
    %65 = vector.load %arg17[%c0_50, %c0_51] : memref<2x64xbf16, #tpu.memory_space<vmem>>, vector<2x64xbf16>
    tpu.vector_store %arg17[%c0_50, %c0_51], %64 {strides = array<i32>} : memref<2x64xbf16, #tpu.memory_space<vmem>>, vector<2x64xbf16>,
    return
  }
  func.func @transform_0(%arg0: i32) -> (i32, i32) {
    %c0_i32 = arith.constant 0 : i32
    %c0_i32_0 = arith.constant 0 : i32
    %c0_i32_1 = arith.constant 0 : i32
    return %c0_i32, %c0_i32_0 : i32, i32
  }
  func.func @transform_1(%arg0: i32) -> (i32, i32) {
    %c0_i32 = arith.constant 0 : i32
    %c0_i32_0 = arith.constant 0 : i32
    %c0_i32_1 = arith.constant 0 : i32
    return %c0_i32, %c0_i32_0 : i32, i32
  }
  func.func @transform_2(%arg0: i32) -> (i32, i32) {
    %c0_i32 = arith.constant 0 : i32
    %c0_i32_0 = arith.constant 0 : i32
    %c0_i32_1 = arith.constant 0 : i32
    return %c0_i32, %c0_i32_0 : i32, i32
  }
  func.func @transform_3(%arg0: i32) -> (i32, i32) {
    %c0_i32 = arith.constant 0 : i32
    %c0_i32_0 = arith.constant 0 : i32
    %c0_i32_1 = arith.constant 0 : i32
    return %c0_i32, %c0_i32_0 : i32, i32
  }
  func.func @transform_4(%arg0: i32) -> (i32, i32) {
    %c0_i32 = arith.constant 0 : i32
    %c0_i32_0 = arith.constant 0 : i32
    %c0_i32_1 = arith.constant 0 : i32
    return %c0_i32, %c0_i32_0 : i32, i32
  }
  func.func @transform_5(%arg0: i32) -> (i32, i32) {
    %c0_i32 = arith.constant 0 : i32
    %c0_i32_0 = arith.constant 0 : i32
    %c0_i32_1 = arith.constant 0 : i32
    return %c0_i32, %c0_i32_0 : i32, i32
  }
  func.func @transform_6(%arg0: i32) -> (i32, i32) {
    %c0_i32 = arith.constant 0 : i32
    %c0_i32_0 = arith.constant 0 : i32
    %c0_i32_1 = arith.constant 0 : i32
    return %c0_i32, %c0_i32_0 : i32, i32
  }
  func.func @transform_7(%arg0: i32) -> (i32, i32) {
    %c0_i32 = arith.constant 0 : i32
    %c0_i32_0 = arith.constant 0 : i32
    %c0_i32_1 = arith.constant 0 : i32
    return %c0_i32, %c0_i32_0 : i32, i32
  }
  func.func @transform_8(%arg0: i32) -> (i32, i32) {
    %c0_i32 = arith.constant 0 : i32
    %c0_i32_0 = arith.constant 0 : i32
    %c0_i32_1 = arith.constant 0 : i32
    return %c0_i32, %c0_i32_0 : i32, i32
  }
  func.func @transform_9(%arg0: i32) -> (i32, i32) {
    %c0_i32 = arith.constant 0 : i32
    %c0_i32_0 = arith.constant 0 : i32
    %c0_i32_1 = arith.constant 0 : i32
    return %c0_i32, %c0_i32_0 : i32, i32
  }
  func.func @transform_10(%arg0: i32) -> (i32, i32) {
    %c0_i32 = arith.constant 0 : i32
    %c0_i32_0 = arith.constant 0 : i32
    %c0_i32_1 = arith.constant 0 : i32
    return %c0_i32, %c0_i32_0 : i32, i32
  }
  func.func @transform_11(%arg0: i32) -> (i32, i32) {
    %c0_i32 = arith.constant 0 : i32
    %c0_i32_0 = arith.constant 0 : i32
    %c0_i32_1 = arith.constant 0 : i32
    return %c0_i32, %c0_i32_0 : i32, i32
  }
  func.func @transform_12(%arg0: i32) -> (i32, i32) {
    %c0_i32 = arith.constant 0 : i32
    %c0_i32_0 = arith.constant 0 : i32
    %c0_i32_1 = arith.constant 0 : i32
    return %c0_i32, %c0_i32_0 : i32, i32
  }
  func.func @transform_13(%arg0: i32) -> (i32, i32) {
    %c0_i32 = arith.constant 0 : i32
    %c0_i32_0 = arith.constant 0 : i32
    %c0_i32_1 = arith.constant 0 : i32
    return %c0_i32, %c0_i32_0 : i32, i32
  }
  func.func @transform_14(%arg0: i32) -> (i32, i32) {
    %c0_i32 = arith.constant 0 : i32
    %c0_i32_0 = arith.constant 0 : i32
    %c0_i32_1 = arith.constant 0 : i32
    return %c0_i32, %c0_i32_0 : i32, i32
  }
  func.func @transform_15(%arg0: i32) -> (i32, i32) {
    %c0_i32 = arith.constant 0 : i32
    %c0_i32_0 = arith.constant 0 : i32
    %c0_i32_1 = arith.constant 0 : i32
    return %c0_i32, %c0_i32_0 : i32, i32
  }
  func.func @transform_16(%arg0: i32) -> (i32, i32) {
    %c0_i32 = arith.constant 0 : i32
    %c0_i32_0 = arith.constant 0 : i32
    %c0_i32_1 = arith.constant 0 : i32
    return %c0_i32, %c0_i32_0 : i32, i32
  }
}

module attributes {stable_mosaic.version = 11 : i64} {
  func.func @_big_output_kernel(%arg0: i32, %arg1: memref<2x64xbf16, #tpu.memory_space<vmem>>, %arg2: memref<1x64x8192xbf16, #tpu.memory_space<vmem>>, %arg3: memref<1x8192xf32, #tpu.memory_space<vmem>>, %arg4: memref<2x8192xf32, #tpu.memory_space<vmem>>) attributes {dimension_semantics = [#tpu.dimension_semantics<parallel>], iteration_bounds = array<i64: 38>, scalar_prefetch = 0 : i64, scratch_operands = 0 : i64, tpu.core_type = #tpu.core_type<tc>, window_params = [{pipeline_mode = #tpu.pipeline_mode<synchronous>, transform_indices = @transform_0, window_bounds = array<i64: 2, 64>}, {transform_indices = @transform_1, window_bounds = array<i64: 1, 64, 8192>}, {transform_indices = @transform_2, window_bounds = array<i64: 1, 8192>}, {transform_indices = @transform_3, window_bounds = array<i64: 2, 8192>}]} {
    %c0 = arith.constant 0 : index
    %c0_0 = arith.constant 0 : index
    %0 = vector.load %arg1[%c0, %c0_0] : memref<2x64xbf16, #tpu.memory_space<vmem>>, vector<2x64xbf16>
    %c0_1 = arith.constant 0 : index
    %c0_2 = arith.constant 0 : index
    %c0_3 = arith.constant 0 : index
    %1 = vector.load %arg2[%c0_1, %c0_2, %c0_3] : memref<1x64x8192xbf16, #tpu.memory_space<vmem>>, vector<1x64x8192xbf16>
    %2 = vector.shape_cast %1 : vector<1x64x8192xbf16> to vector<64x8192xbf16>
    %cst = arith.constant dense<0.000000e+00> : vector<2x8192xf32>
    %3 = tpu.matmul %0, %2, %cst {dimension_numbers = #tpu.dot_dimension_numbers<[1], [0], [0], [1], [0, 0, 1, 1], [], []>} : vector<2x64xbf16>, vector<64x8192xbf16>, vector<2x8192xf32> -> vector<2x8192xf32>
    %c0_4 = arith.constant 0 : index
    %c0_5 = arith.constant 0 : index
    %4 = vector.load %arg3[%c0_4, %c0_5] : memref<1x8192xf32, #tpu.memory_space<vmem>>, vector<1x8192xf32>
    %5 = vector.broadcast %4 : vector<1x8192xf32> to vector<2x8192xf32>
    %6 = arith.addf %3, %5 : vector<2x8192xf32>
    %cst_6 = arith.constant 0.000000e+00 : f32
    %7 = vector.broadcast %cst_6 : f32 to vector<2x8192xf32>
    %8 = arith.subf %7, %6 : vector<2x8192xf32>
    %9 = math.exp %8 : vector<2x8192xf32>
    %cst_7 = arith.constant 1.000000e+00 : f32
    %10 = vector.broadcast %cst_7 : f32 to vector<2x8192xf32>
    %11 = arith.addf %10, %9 : vector<2x8192xf32>
    %cst_8 = arith.constant 1.000000e+00 : f32
    %12 = vector.broadcast %cst_8 : f32 to vector<2x8192xf32>
    %13 = arith.divf %12, %11 : vector<2x8192xf32>
    %c0_9 = arith.constant 0 : index
    %c0_10 = arith.constant 0 : index
    %14 = vector.load %arg4[%c0_9, %c0_10] : memref<2x8192xf32, #tpu.memory_space<vmem>>, vector<2x8192xf32>
    tpu.vector_store %arg4[%c0_9, %c0_10], %13 {strides = array<i32>} : memref<2x8192xf32, #tpu.memory_space<vmem>>, vector<2x8192xf32>,
    return
  }
  func.func @transform_0(%arg0: i32) -> (i32, i32) {
    %c0_i32 = arith.constant 0 : i32
    %c0_i32_0 = arith.constant 0 : i32
    %c0_i32_1 = arith.constant 0 : i32
    return %c0_i32, %c0_i32_0 : i32, i32
  }
  func.func @transform_1(%arg0: i32) -> (i32, i32, i32) {
    %c0_i32 = arith.constant 0 : i32
    %c0_i32_0 = arith.constant 0 : i32
    %c0_i32_1 = arith.constant 0 : i32
    return %arg0, %c0_i32, %c0_i32_0 : i32, i32, i32
  }
  func.func @transform_2(%arg0: i32) -> (i32, i32) {
    %c0_i32 = arith.constant 0 : i32
    %c0_i32_0 = arith.constant 0 : i32
    return %c0_i32, %arg0 : i32, i32
  }
  func.func @transform_3(%arg0: i32) -> (i32, i32) {
    %c0_i32 = arith.constant 0 : i32
    %c0_i32_0 = arith.constant 0 : i32
    return %c0_i32, %arg0 : i32, i32
  }
}

</mosaic_0001>

<bundles_post_ra>
// kernel: vae_forward.2
= control target key start
LH: loop header
LB: loop body
LE: loop exit
PB: predicated region body
PF: predicated region fallthrough
CT: control target
= control target key end

     0   :  { %s1654_s0 = inlined_call_operand.hbm [shape: f32[2,64], index: 0, kind: input, shape index: {}]   ;;  %s1655_s1 = inlined_call_operand.hbm [shape: f32[2,32], index: 1, kind: input, shape index: {}]   ;;  %s1656_s2 = inlined_call_operand.hbm [shape: f32[64,64], index: 2, kind: input, shape index: {}]   ;;  %s1657_s3 = inlined_call_operand.hbm [shape: f32[1,64], index: 3, kind: input, shape index: {}]   ;;  %s1658_s4 = inlined_call_operand.hbm [shape: f32[64,64], index: 4, kind: input, shape index: {}]   ;;  %s1659_s5 = inlined_call_operand.hbm [shape: f32[1,64], index: 5, kind: input, shape index: {}]   ;;  %s1660_s6 = inlined_call_operand.vmem [shape: f32[64,32], index: 6, kind: input, shape index: {}]   ;;  %s1661_s7 = inlined_call_operand.hbm [shape: f32[1,32], index: 7, kind: input, shape index: {}]   ;;  %s1662_s8 = inlined_call_operand.vmem [shape: f32[64,32], index: 8, kind: input, shape index: {}]   ;;  %s1663_s9 = inlined_call_operand.hbm [shape: f32[1,32], index: 9, kind: input, shape index: {}]   ;;  %s1664_s10 = inlined_call_operand.hbm [shape: f32[32,64], index: 10, kind: input, shape index: {}]   ;;  %s1665_s11 = inlined_call_operand.hbm [shape: f32[1,64], index: 11, kind: input, shape index: {}]   ;;  %s1666_s12 = inlined_call_operand.hbm [shape: f32[64,64], index: 12, kind: input, shape index: {}]   ;;  %s1667_s13 = inlined_call_operand.hbm [shape: f32[1,64], index: 13, kind: input, shape index: {}]   ;;  %s1668_s14 = inlined_call_operand.hbm [shape: f32[2,32], index: 14, kind: output, shape index: {0}]   ;;  %s1669_s15 = inlined_call_operand.hbm [shape: f32[2,32], index: 15, kind: output, shape index: {1}]   ;;  %s1670_s16 = inlined_call_operand.vmem [shape: bf16[2,64], index: 16, kind: output, shape index: {2}]  }
   0x1   :  { %1671 = sst [smem:[#allocation34_spill]] %s1654_s0 }
   0x2   :  { %22 = vsyncpa [#allocation3], 0 }
   0x3   :  { %23 = vsyncpa [#allocation6], 0 }
   0x4   :  { %24 = vsyncpa [#allocation9], 0 }
   0x5   :  { %25 = vsyncpa [#allocation12], 0 }
   0x6   :  { %26 = vsyncpa [#allocation15], 0 }
   0x7   :  { %27 = vsyncpa [#allocation18], 0 }
   0x8   :  { %28 = vsyncpa [#allocation21], 0 }
   0x9   :  { %29 = vsyncpa [#allocation4], 0 }
   0xa   :  { %30 = vsyncpa [#allocation24], 0  ;;  %s1374_s21 = smov [#allocation5]   ;;  %s1375_s23 = smov [#allocation8]  }
   0xb   :  { %s47_s22 = sshll.u32 %s1374_s21, 4  ;;  %s69_s24 = sshll.u32 %s1375_s23, 4  ;;  %s48_s22 = int_to_ptr.vmem [resolvable:$true] %s47_s22  ;;  %s70_s24 = int_to_ptr.vmem [resolvable:$true] %s69_s24 }
   0xc   :  { %s1084_s25 = scalar_lea.vmem %s48_s22, 32  ;;  %p1089_p1 = scmp.lt.s32.totalorder %s48_s22, %s48_s22 }
   0xd   :  { %p1085_p0 = scmp.ne.s32.totalorder %s48_s22, %s1084_s25  ;;  %p1090_p2 = scmp.lt.s32.totalorder %s1084_s25, %s1084_s25 }
   0xf   :  { %p1091_p3 = por %p1090_p2, %p1089_p1 }
  0x11   :  { %p1092_p4 = pnand %p1091_p3, %p1085_p0 }
  0x13   :  { %1095 = shalt.err (!%p1092_p4)
}
  0x14   :  { %50 = dma.hbm_to_vmem [thread:$0]  %s1655_s1, 32, %s48_s22, [#allocation6]  }
  0x15   :  { %s1104_s28 = scalar_lea.vmem %s70_s24, 16  ;;  %s1108_s29 = scalar_lea.vmem %s70_s24, 32 }
  0x16   :  { %p1105_p5 = scmp.ne.s32.totalorder %s70_s24, %s1104_s28  ;;  %p1109_p6 = scmp.lt.s32.totalorder %s70_s24, %s70_s24 }
  0x17   :  { %p1110_p7 = scmp.lt.s32.totalorder %s1108_s29, %s1104_s28 }
  0x19   :  { %p1111_p8 = por %p1110_p7, %p1109_p6 }
  0x1b   :  { %p1112_p9 = pnand %p1111_p8, %p1105_p5 }
  0x1d   :  { %1115 = shalt.err (!%p1112_p9)
}
  0x1e   :  { %72 = dma.hbm_to_vmem [thread:$0]  %s1657_s3, 16, %s70_s24, [#allocation9]  }
  0x1f   :  { %s1376_s17 = smov [#allocation11]   ;;  %s1377_s19 = smov [#allocation14]  }
  0x20   :  { %s91_s18 = sshll.u32 %s1376_s17, 4  ;;  %s115_s20 = sshll.u32 %s1377_s19, 4  ;;  %s92_s18 = int_to_ptr.vmem [resolvable:$true] %s91_s18  ;;  %s116_s20 = int_to_ptr.vmem [resolvable:$true] %s115_s20 }
  0x21   :  { %s1124_s21 = scalar_lea.vmem %s92_s18, 16  ;;  %s1128_s1 = scalar_lea.vmem %s92_s18, 32 }
  0x22   :  { %p1125_p10 = scmp.ne.s32.totalorder %s92_s18, %s1124_s21  ;;  %p1129_p11 = scmp.lt.s32.totalorder %s92_s18, %s92_s18 }
  0x23   :  { %p1130_p12 = scmp.lt.s32.totalorder %s1128_s1, %s1124_s21 }
  0x25   :  { %p1131_p13 = por %p1130_p12, %p1129_p11 }
  0x27   :  { %p1132_p0 = pnand %p1131_p13, %p1125_p10 }
  0x29   :  { %1135 = shalt.err (!%p1132_p0)
}
  0x2a   :  { %94 = dma.hbm_to_vmem [thread:$0]  %s1659_s5, 16, %s92_s18, [#allocation12]  }
  0x2b   :  { %s1144_s25 = scalar_lea.vmem %s116_s20, 16  ;;  %s1148_s3 = scalar_lea.vmem %s116_s20, 32 }
  0x2c   :  { %p1145_p1 = scmp.ne.s32.totalorder %s116_s20, %s1144_s25  ;;  %p1149_p2 = scmp.lt.s32.totalorder %s116_s20, %s116_s20 }
  0x2d   :  { %p1150_p3 = scmp.lt.s32.totalorder %s1148_s3, %s1144_s25 }
  0x2f   :  { %p1151_p4 = por %p1150_p3, %p1149_p2 }
  0x31   :  { %p1152_p5 = pnand %p1151_p4, %p1145_p1 }
  0x33   :  { %1155 = shalt.err (!%p1152_p5)
}
  0x34   :  { %118 = dma.hbm_to_vmem [thread:$0]  %s1663_s9, 16, %s116_s20, [#allocation15]  }
  0x35   :  { %s1378_s27 = smov [#allocation17]   ;;  %s1379_s29 = smov [#allocation2]  }
  0x36   :  { %s137_s28 = sshll.u32 %s1378_s27, 4  ;;  %s37_s30 = sshll.u32 %s1379_s29, 4  ;;  %s138_s28 = int_to_ptr.vmem [resolvable:$true] %s137_s28  ;;  %s38_s30 = int_to_ptr.vmem [resolvable:$true] %s37_s30 }
  0x37   :  { %s1164_s0 = scalar_lea.vmem %s138_s28, 16  ;;  %s1168_s5 = scalar_lea.vmem %s138_s28, 32 }
  0x38   :  { %p1165_p6 = scmp.ne.s32.totalorder %s138_s28, %s1164_s0  ;;  %p1169_p7 = scmp.lt.s32.totalorder %s138_s28, %s138_s28 }
  0x39   :  { %p1170_p8 = scmp.lt.s32.totalorder %s1168_s5, %s1164_s0 }
  0x3b   :  { %p1171_p9 = por %p1170_p8, %p1169_p7 }
  0x3d   :  { %p1172_p10 = pnand %p1171_p9, %p1165_p6 }
  0x3f   :  { %1175 = shalt.err (!%p1172_p10)
}
  0x40   :  { %140 = dma.hbm_to_vmem [thread:$0]  %s1665_s11, 16, %s138_s28, [#allocation18]  }
  0x41   :  { %s1184_s19 = scalar_lea.vmem %s38_s30, 32  ;;  %p1189_p12 = scmp.lt.s32.totalorder %s38_s30, %s38_s30 }
  0x42   :  { %p1185_p11 = scmp.ne.s32.totalorder %s38_s30, %s1184_s19  ;;  %p1190_p13 = scmp.lt.s32.totalorder %s1184_s19, %s1184_s19 }
  0x44   :  { %p1191_p0 = por %p1190_p13, %p1189_p12 }
  0x46   :  { %p1192_p1 = pnand %p1191_p0, %p1185_p11 }
  0x48   :  { %1195 = shalt.err (!%p1192_p1)
}
  0x49   :  { %s1672_s21 = sld [smem:[#allocation34_spill]]  ;;  %s1380_s1 = smov [#allocation7]  }
  0x4a   :  { %s56_s22 = sshll.u32 %s1380_s1, 4  ;;  %s57_s22 = int_to_ptr.vmem [resolvable:$true] %s56_s22 }
  0x4b   :  { %s1204_s23 = scalar_lea.vmem %s57_s22, 1024  ;;  %p1209_p3 = scmp.lt.s32.totalorder %s57_s22, %s57_s22 }
  0x4c   :  { %p1205_p2 = scmp.ne.s32.totalorder %s57_s22, %s1204_s23  ;;  %p1210_p4 = scmp.lt.s32.totalorder %s1204_s23, %s1204_s23 }
  0x4e   :  { %p1211_p5 = por %p1210_p4, %p1209_p3 }
  0x4f   :  { %40 = dma.hbm_to_vmem [thread:$0]  %s1672_s21, 32, %s38_s30, [#allocation3]  }
  0x50   :  { %p1212_p6 = pnand %p1211_p5, %p1205_p2 }
  0x52   :  { %1215 = shalt.err (!%p1212_p6)
}
  0x53   :  { %s1381_s11 = smov 128   ;;  %s1382_s25 = smov 8  }
  0x54   :  { %62 = dma.hbm_to_vmem [thread:$0]  %s1656_s2, 1024, %s57_s22, [#allocation6], %s1381_s11, %s1381_s11, %s1382_s25  }
  0x55   :  { %s1383_s26 = smov [#allocation10]   ;;  %s1384_s28 = smov [#allocation13]  }
  0x56   :  { %s78_s27 = sshll.u32 %s1383_s26, 4  ;;  %s103_s29 = sshll.u32 %s1384_s28, 4  ;;  %s79_s27 = int_to_ptr.vmem [resolvable:$true] %s78_s27  ;;  %s104_s29 = int_to_ptr.vmem [resolvable:$true] %s103_s29 }
  0x57   :  { %s1224_s30 = scalar_lea.vmem %s79_s27, 1024  ;;  %p1229_p8 = scmp.lt.s32.totalorder %s79_s27, %s79_s27 }
  0x58   :  { %p1225_p7 = scmp.ne.s32.totalorder %s79_s27, %s1224_s30  ;;  %p1230_p9 = scmp.lt.s32.totalorder %s1224_s30, %s1224_s30 }
  0x5a   :  { %p1231_p10 = por %p1230_p9, %p1229_p8 }
  0x5c   :  { %p1232_p11 = pnand %p1231_p10, %p1225_p7 }
  0x5e   :  { %1235 = shalt.err (!%p1232_p11)
}
  0x5f   :  { %84 = dma.hbm_to_vmem [thread:$0]  %s1658_s4, 1024, %s79_s27, [#allocation9], %s1381_s11, %s1381_s11, %s1382_s25  }
  0x60   :  { %s1244_s2 = scalar_lea.vmem %s104_s29, 16  ;;  %s1248_s17 = scalar_lea.vmem %s104_s29, 32 }
  0x61   :  { %p1245_p12 = scmp.ne.s32.totalorder %s104_s29, %s1244_s2  ;;  %p1249_p13 = scmp.lt.s32.totalorder %s104_s29, %s104_s29 }
  0x62   :  { %p1250_p0 = scmp.lt.s32.totalorder %s1248_s17, %s1244_s2 }
  0x64   :  { %p1251_p1 = por %p1250_p0, %p1249_p13 }
  0x66   :  { %p1252_p2 = pnand %p1251_p1, %p1245_p12 }
  0x68   :  { %1255 = shalt.err (!%p1252_p2)
}
  0x69   :  { %106 = dma.hbm_to_vmem [thread:$0]  %s1661_s7, 16, %s104_s29, [#allocation12]  }
  0x6a   :  { %s1385_s9 = smov [#allocation16]   ;;  %s1386_s21 = smov [#allocation19]  }
  0x6b   :  { %s124_s20 = sshll.u32 %s1385_s9, 4  ;;  %s146_s1 = sshll.u32 %s1386_s21, 4  ;;  %s125_s20 = int_to_ptr.vmem [resolvable:$true] %s124_s20  ;;  %s147_s1 = int_to_ptr.vmem [resolvable:$true] %s146_s1 }
  0x6c   :  { %s1264_s22 = scalar_lea.vmem %s125_s20, 512  ;;  %p1269_p4 = scmp.lt.s32.totalorder %s125_s20, %s125_s20 }
  0x6d   :  { %p1265_p3 = scmp.ne.s32.totalorder %s125_s20, %s1264_s22  ;;  %p1270_p5 = scmp.lt.s32.totalorder %s1264_s22, %s1264_s22 }
  0x6f   :  { %p1271_p6 = por %p1270_p5, %p1269_p4 }
  0x71   :  { %p1272_p7 = pnand %p1271_p6, %p1265_p3 }
  0x73   :  { %1275 = shalt.err (!%p1272_p7)
}
  0x74   :  { %130 = dma.hbm_to_vmem [thread:$0]  %s1664_s10, 512, %s125_s20, [#allocation15], %s1381_s11, %s1381_s11, %s1382_s25  }
  0x75   :  { %s1284_s7 = scalar_lea.vmem %s147_s1, 1024  ;;  %p1289_p9 = scmp.lt.s32.totalorder %s147_s1, %s147_s1 }
  0x76   :  { %p1285_p8 = scmp.ne.s32.totalorder %s147_s1, %s1284_s7  ;;  %p1290_p10 = scmp.lt.s32.totalorder %s1284_s7, %s1284_s7 }
  0x78   :  { %p1291_p11 = por %p1290_p10, %p1289_p9 }
  0x7a   :  { %p1292_p12 = pnand %p1291_p11, %p1285_p8 }
  0x7c   :  { %1295 = shalt.err (!%p1292_p12)
}
  0x7d   :  { %152 = dma.hbm_to_vmem [thread:$0]  %s1666_s12, 1024, %s147_s1, [#allocation18], %s1381_s11, %s1381_s11, %s1382_s25  }
  0x7e   :  { %s1387_s26 = smov [#allocation20]  }
  0x7f   :  { %s159_s27 = sshll.u32 %s1387_s26, 4  ;;  %s160_s27 = int_to_ptr.vmem [resolvable:$true] %s159_s27 }
  0x80   :  { %s1304_s28 = scalar_lea.vmem %s160_s27, 16  ;;  %s1308_s10 = scalar_lea.vmem %s160_s27, 32 }
  0x81   :  { %p1305_p13 = scmp.ne.s32.totalorder %s160_s27, %s1304_s28  ;;  %p1309_p0 = scmp.lt.s32.totalorder %s160_s27, %s160_s27 }
  0x82   :  { %p1310_p1 = scmp.lt.s32.totalorder %s1308_s10, %s1304_s28 }
  0x84   :  { %p1311_p2 = por %p1310_p1, %p1309_p0 }
  0x86   :  { %p1312_p3 = pnand %p1311_p2, %p1305_p13 }
  0x88   :  { %1315 = shalt.err (!%p1312_p3)
}
  0x89   :  { %162 = dma.hbm_to_vmem [thread:$0]  %s1667_s13, 16, %s160_s27, [#allocation21]  }
  0x8a   :  { %1356 = dma.done.wait [#allocation3], 32  }
  0x8b   :  { %1357 = vsyncadd [#allocation3], 4294967264 }
  0x8c   :  { %1358 = dma.done.wait [#allocation6], 1056  }
  0x8d   :  { %1359 = vsyncadd [#allocation6], 4294966240 }
  0x8e   :  { %1360 = dma.done.wait [#allocation9], 1040  }
  0x8f   :  { %1361 = vsyncadd [#allocation9], 4294966256 }
  0x90   :  { %1362 = dma.done.wait [#allocation12], 32  }
  0x91   :  { %1363 = vsyncadd [#allocation12], 4294967264 }
  0x92   :  { %1364 = dma.done.wait [#allocation15], 528  }
  0x93   :  { %1365 = vsyncadd [#allocation15], 4294966768 }
  0x94   :  { %1366 = dma.done.wait [#allocation18], 1040  }
  0x95   :  { %1367 = vsyncadd [#allocation18], 4294966256 }
  0x96   :  { %1368 = dma.done.wait [#allocation21], 16  }
  0x97   :  { %1369 = vsyncadd [#allocation21], 4294967280  ;;  %v1388_v0 = vmov 0.0   ;;  %vm1389_vm0 = vmmov 0   ;;  %v207_v1 = vld [vmem:[#allocation7 + $0x38] sm:$0xff]  ;;  %v206_v2 = vld [vmem:[#allocation7 + $0x30] sm:$0xff] }
  0x98   :  { %931 = vmatprep.subr.mxu0 %v1388_v0  ;;  %947 = vmatprep.mubr.msk.f32.mxu0 %vm1389_vm0, %v1388_v0  ;;  %v205_v3 = vld [vmem:[#allocation7 + $0x28] sm:$0xff]  ;;  %v204_v4 = vld [vmem:[#allocation7 + $0x20] sm:$0xff]  ;;  %v203_v5 = vld [vmem:[#allocation7 + $0x18] sm:$0xff]  ;;  %vm215_vm1 = vcmask 523264   ;;  %vm814_vm4 = vcmask 254976   ;;  %vm646_vm5 = vcmask 261120  }
  0x99   :  { %950 = vmatprep.subr.mxu1 %v1388_v0  ;;  %966 = vmatprep.mubr.msk.f32.mxu1 %vm1389_vm0, %v1388_v0  ;;  %v202_v6 = vld [vmem:[#allocation7 + $0x10] sm:$0xff]  ;;  %v201_v7 = vld [vmem:[#allocation7 + $0x8] sm:$0xff]  ;;  %v200_v8 = vld [vmem:[#allocation7] sm:$0xff]  ;;  %s1391_s2 = smov [#allocation23]  }
  0x9a   :  { %932 = vmatpush3.msra.mxu0 %v207_v1  ;;  %951 = vmatpush3.msra.mxu1 %v207_v1  ;;  %v199_v9 = vld [vmem:[#allocation2] sm:$0x3]  ;;  %v371_v11 = vld [vmem:[#allocation10 + $0x30] sm:$0xff]  ;;  %v370_v12 = vld [vmem:[#allocation10 + $0x28] sm:$0xff]  ;;  %s836_s17 = sshll.u32 %s1391_s2, 4  ;;  %s837_s17 = int_to_ptr.vmem [resolvable:$true] %s836_s17 }
  0x9b   :  { %933 = vmatprep.subr.mxu0 %v1388_v0  ;;  %952 = vmatprep.subr.mxu1 %v1388_v0  ;;  %v372_v10 = vld [vmem:[#allocation10 + $0x38] sm:$0xff]  ;;  %v369_v13 = vld [vmem:[#allocation10 + $0x20] sm:$0xff]  ;;  %v367_v19 = vld [vmem:[#allocation10 + $0x10] sm:$0xff] }
  0x9c   :  { %934 = vmatpush3.msra.mxu0 %v206_v2  ;;  %953 = vmatpush3.msra.mxu1 %v206_v2  ;;  %v368_v14 = vld [vmem:[#allocation10 + $0x18] sm:$0xff]  ;;  %v366_v20 = vld [vmem:[#allocation10 + $0x8] sm:$0xff]  ;;  %v365_v21 = vld [vmem:[#allocation10] sm:$0xff] }
  0x9d   :  { %935 = vmatprep.subr.mxu0 %v1388_v0  ;;  %954 = vmatprep.subr.mxu1 %v1388_v0  ;;  %v859_v15 = vld [vmem:[#allocation8] ss:$0 sm:$0xff]  ;;  %v463_v22 = vld [vmem:[%s1660_s6 + $0x38] sm:$0xff]  ;;  %v462_v23 = vld [vmem:[%s1660_s6 + $0x30] sm:$0xff] }
  0x9e   :  { %936 = vmatpush3.msra.mxu0 %v205_v3  ;;  %955 = vmatpush3.msra.mxu1 %v205_v3  ;;  %v461_v24 = vld [vmem:[%s1660_s6 + $0x28] sm:$0xff]  ;;  %v460_v25 = vld [vmem:[%s1660_s6 + $0x20] sm:$0xff]  ;;  %v459_v26 = vld [vmem:[%s1660_s6 + $0x18] sm:$0xff] }
  0x9f   :  { %937 = vmatprep.subr.mxu0 %v1388_v0  ;;  %956 = vmatprep.subr.mxu1 %v1388_v0  ;;  %v551_v31 = vld [vmem:[%s1662_s8 + $0x38] sm:$0xff]  ;;  %v550_v33 = vld [vmem:[%s1662_s8 + $0x30] sm:$0xff]  ;;  %v549_v34 = vld [vmem:[%s1662_s8 + $0x28] sm:$0xff] }
  0xa0   :  { %938 = vmatpush3.msra.mxu0 %v204_v4  ;;  %957 = vmatpush3.msra.mxu1 %v204_v4  ;;  %v548_v35 = vld [vmem:[%s1662_s8 + $0x20] sm:$0xff]  ;;  %v547_v36 = vld [vmem:[%s1662_s8 + $0x18] sm:$0xff]  ;;  %v458_v37 = vld [vmem:[%s1660_s6 + $0x10] sm:$0xff] }
  0xa1   :  { %939 = vmatprep.subr.mxu0 %v1388_v0  ;;  %958 = vmatprep.subr.mxu1 %v1388_v0  ;;  %v546_v38 = vld [vmem:[%s1662_s8 + $0x10] sm:$0xff]  ;;  %v457_v39 = vld [vmem:[%s1660_s6 + $0x8] sm:$0xff]  ;;  %v456_v41 = vld [vmem:[%s1660_s6] sm:$0xff]  ;;  %s1390_s6 = smov [#allocation22]  }
  0xa2   :  { %940 = vmatpush3.msra.mxu0 %v203_v5  ;;  %959 = vmatpush3.msra.mxu1 %v203_v5  ;;  %v545_v40 = vld [vmem:[%s1662_s8 + $0x8] sm:$0xff]  ;;  %v544_v42 = vld [vmem:[%s1662_s8] sm:$0xff]  ;;  %v636_v51 = vld [vmem:[#allocation16 + $0x8] sm:$0xff]  ;;  %s826_s8 = sshll.u32 %s1390_s6, 4  ;;  %s827_s8 = int_to_ptr.vmem [resolvable:$true] %s826_s8 }
  0xa3   :  { %941 = vmatprep.subr.mxu0 %v1388_v0  ;;  %960 = vmatprep.subr.mxu1 %v1388_v0  ;;  %v862_v43 = vld [vmem:[#allocation11] ss:$0 sm:$0xff]  ;;  %v637_v50 = vld [vmem:[#allocation16 + $0x10] sm:$0xff]  ;;  %v635_v52 = vld [vmem:[#allocation16] sm:$0xff]  ;;  %s1316_s18 = scalar_lea.vmem %s827_s8, 32  ;;  %p1321_p5 = scmp.lt.s32.totalorder %s827_s8, %s827_s8 }
  0xa4   :  { %942 = vmatpush3.msra.mxu0 %v202_v6  ;;  %961 = vmatpush3.msra.mxu1 %v202_v6  ;;  %v638_v49 = vld [vmem:[#allocation16 + $0x18] sm:$0xff]  ;;  %v632_v63 = vld [vmem:[#allocation5] sm:$0x3]  ;;  %v728_v6 = vld [vmem:[#allocation19 + $0x28] sm:$0xff]  ;;  %p1317_p4 = scmp.ne.s32.totalorder %s827_s8, %s1316_s18  ;;  %p1322_p6 = scmp.lt.s32.totalorder %s1316_s18, %s1316_s18 }
  0xa5   :  { %943 = vmatprep.subr.mxu0 %v1388_v0  ;;  %962 = vmatprep.subr.mxu1 %v1388_v0  ;;  %v864_v53 = vld [vmem:[#allocation13] ss:$0 sm:$0xff]  ;;  %v866_v54 = vld [vmem:[#allocation14] ss:$0 sm:$0xff]  ;;  %v729_v5 = vld [vmem:[#allocation19 + $0x30] sm:$0xff] }
  0xa6   :  { %944 = vmatpush3.msra.mxu0 %v201_v7  ;;  %963 = vmatpush3.msra.mxu1 %v201_v7  ;;  %v730_v4 = vld [vmem:[#allocation19 + $0x38] sm:$0xff]  ;;  %v727_v7 = vld [vmem:[#allocation19 + $0x20] sm:$0xff]  ;;  %p1323_p7 = por %p1322_p6, %p1321_p5 }
  0xa7   :  { %945 = vmatprep.subr.mxu0 %v1388_v0  ;;  %964 = vmatprep.subr.mxu1 %v1388_v0 }
  0xa8   :  { %946 = vmatpush3.msra.mxu0 %v200_v8  ;;  %965 = vmatpush3.msra.mxu1 %v200_v8  ;;  %v726_v8 = vld [vmem:[#allocation19 + $0x18] sm:$0xff]  ;;  %p1324_p8 = pnand %p1323_p7, %p1317_p4 }
  0xa9   :  { %948 = vmatmul.mubr.msk.f32.vlgmr.msra.gmra.mxu0 %vm215_vm1, %v199_v9  ;;  %969 = vmatprep.subr.mxu0 %v1388_v0  ;;  %v725_v9 = vld [vmem:[#allocation19 + $0x10] sm:$0xff] }
  0xaa   :  { %985 = vmatprep.mubr.msk.f32.mxu0 %vm1389_vm0, %v1388_v0  ;;  %988 = vmatprep.subr.mxu1 %v1388_v0 }
  0xab   :  { %970 = vmatpush3.msra.mxu0 %v372_v10  ;;  %v724_v10 = vld [vmem:[#allocation19 + $0x8] sm:$0xff] }
  0xac   :  { %971 = vmatprep.subr.mxu0 %v1388_v0 }
  0xad   :  { %972 = vmatpush3.msra.mxu0 %v371_v11  ;;  %v723_v11 = vld [vmem:[#allocation19] sm:$0xff] }
  0xae   :  { %973 = vmatprep.subr.mxu0 %v1388_v0 }
  0xaf   :  { %974 = vmatpush3.msra.mxu0 %v370_v12  ;;  %v868_v12 = vld [vmem:[#allocation17] ss:$0 sm:$0xff] }
  0xb0   :  { %975 = vmatprep.subr.mxu0 %v1388_v0 }
  0xb1   :  { %976 = vmatpush3.msra.mxu0 %v369_v13 }
  0xb2   :  { %977 = vmatprep.subr.mxu0 %v1388_v0 }
  0xb3   :  { %978 = vmatpush3.msra.mxu0 %v368_v14 }
  0xb4   :  { %979 = vmatprep.subr.mxu0 %v1388_v0 }
  0xb5   :  { %980 = vmatpush3.msra.mxu0 %v367_v19 }
  0xb6   :  { %981 = vmatprep.subr.mxu0 %v1388_v0 }
  0xb7   :  { %982 = vmatpush3.msra.mxu0 %v366_v20 }
  0xb8   :  { %983 = vmatprep.subr.mxu0 %v1388_v0 }
  0xb9   :  { %984 = vmatpush3.msra.mxu0 %v365_v21 }
  0xba   :  { %1007 = vmatprep.subr.mxu0 %v1388_v0 }
 0x169   :  { %v285_v16 = vpop.f32.mrf.mxu0 }
 0x16a   :  { %v286_v17 = vadd.f32 %v859_v15, %v285_v16 }
 0x16b   :  { %v949_v18 = vpop.f32.mrf.mxu0 }
 0x16c   :  { %967 = vmatmul.mubr.msk.f32.vlgmr.msra.gmra.mxu1 %vm215_vm1, %v286_v17 }
 0x16d   :  { %1004 = vmatprep.mubr.msk.f32.mxu1 %vm1389_vm0, %v1388_v0  ;;  %989 = vmatpush3.msra.mxu1 %v463_v22 }
 0x16e   :  { %990 = vmatprep.subr.mxu1 %v1388_v0 }
 0x16f   :  { %991 = vmatpush3.msra.mxu1 %v462_v23 }
 0x170   :  { %992 = vmatprep.subr.mxu1 %v1388_v0 }
 0x171   :  { %993 = vmatpush3.msra.mxu1 %v461_v24 }
 0x172   :  { %994 = vmatprep.subr.mxu1 %v1388_v0 }
 0x173   :  { %995 = vmatpush3.msra.mxu1 %v460_v25 }
 0x174   :  { %996 = vmatprep.subr.mxu1 %v1388_v0 }
 0x175   :  { %997 = vmatpush3.msra.mxu1 %v459_v26 }
 0x176   :  { %998 = vmatprep.subr.mxu1 %v1388_v0 }
 0x177   :  { %999 = vmatpush3.msra.mxu1 %v458_v37 }
 0x178   :  { %1000 = vmatprep.subr.mxu1 %v1388_v0 }
 0x179   :  { %1001 = vmatpush3.msra.mxu1 %v457_v39 }
 0x17a   :  { %1002 = vmatprep.subr.mxu1 %v1388_v0 }
 0x17b   :  { %1003 = vmatpush3.msra.mxu1 %v456_v41 }
 0x17c   :  { %1026 = vmatprep.subr.mxu1 %v1388_v0 }
 0x22c   :  { %v358_v27 = vpop.f32.mrf.mxu1 }
 0x22d   :  { %v359_v28 = vadd.f32 %v859_v15, %v358_v27 }
 0x22e   :  { %v968_v29 = vpop.f32.mrf.mxu1 }
 0x22f   :  { %vm362_vm2 = vcmp.ge.f32.partialorder %v359_v28, 0.0  ;;  %v363_v30 = vmul.f32 0.2, %v359_v28 }
 0x231   :  { %v364_v32 = vsel %vm362_vm2, %v359_v28, %v363_v30 }
 0x232   :  { %986 = vmatmul.mubr.msk.f32.vlgmr.msra.gmra.mxu0 %vm215_vm1, %v364_v32 }
 0x233   :  { %1008 = vmatpush3.msra.mxu0 %v551_v31  ;;  %1023 = vmatprep.mubr.msk.f32.mxu0 %vm1389_vm0, %v1388_v0 }
 0x234   :  { %1009 = vmatprep.subr.mxu0 %v1388_v0 }
 0x235   :  { %1010 = vmatpush3.msra.mxu0 %v550_v33 }
 0x236   :  { %1011 = vmatprep.subr.mxu0 %v1388_v0 }
 0x237   :  { %1012 = vmatpush3.msra.mxu0 %v549_v34 }
 0x238   :  { %1013 = vmatprep.subr.mxu0 %v1388_v0 }
 0x239   :  { %1014 = vmatpush3.msra.mxu0 %v548_v35 }
 0x23a   :  { %1015 = vmatprep.subr.mxu0 %v1388_v0 }
 0x23b   :  { %1016 = vmatpush3.msra.mxu0 %v547_v36 }
 0x23c   :  { %1017 = vmatprep.subr.mxu0 %v1388_v0 }
 0x23d   :  { %1018 = vmatpush3.msra.mxu0 %v546_v38 }
 0x23e   :  { %1019 = vmatprep.subr.mxu0 %v1388_v0 }
 0x23f   :  { %1020 = vmatpush3.msra.mxu0 %v545_v40 }
 0x240   :  { %1021 = vmatprep.subr.mxu0 %v1388_v0 }
 0x241   :  { %1022 = vmatpush3.msra.mxu0 %v544_v42 }
 0x2f2   :  { %v449_v44 = vpop.f32.mrf.mxu0 }
 0x2f3   :  { %v450_v45 = vadd.f32 %v862_v43, %v449_v44 }
 0x2f4   :  { %v987_v46 = vpop.f32.mrf.mxu0 }
 0x2f5   :  { %vm453_vm3 = vcmp.ge.f32.partialorder %v450_v45, 0.0  ;;  %v454_v47 = vmul.f32 0.2, %v450_v45 }
 0x2f7   :  { %v455_v48 = vsel %vm453_vm3, %v450_v45, %v454_v47 }
 0x2f8   :  { %1005 = vmatmul.mubr.msk.f32.vlgmr.msra.gmra.mxu1 %vm215_vm1, %v455_v48  ;;  %1024 = vmatmul.mubr.msk.f32.vlgmr.msra.gmra.mxu0 %vm215_vm1, %v455_v48 }
 0x2f9   :  { %1034 = vmatprep.mubr.msk.f32.mxu1 %vm1389_vm0, %v1388_v0  ;;  %1027 = vmatpush3.msra.mxu1 %v638_v49 }
 0x2fa   :  { %1028 = vmatprep.subr.mxu1 %v1388_v0 }
 0x2fb   :  { %1029 = vmatpush3.msra.mxu1 %v637_v50 }
 0x2fc   :  { %1030 = vmatprep.subr.mxu1 %v1388_v0 }
 0x2fd   :  { %1031 = vmatpush3.msra.mxu1 %v636_v51 }
 0x2fe   :  { %1032 = vmatprep.subr.mxu1 %v1388_v0 }
 0x2ff   :  { %1033 = vmatpush3.msra.mxu1 %v635_v52 }
 0x300   :  { %1037 = vmatprep.subr.mxu1 %v1388_v0 }
 0x3b8   :  { %v540_v55 = vpop.f32.mrf.mxu1  ;;  %v625_v56 = vpop.f32.mrf.mxu0 }
 0x3b9   :  { %v541_v57 = vadd.f32 %v864_v53, %v540_v55  ;;  %v626_v58 = vadd.f32 %v866_v54, %v625_v56 }
 0x3ba   :  { %v1006_v59 = vpop.f32.mrf.mxu1  ;;  %v1025_v60 = vpop.f32.mrf.mxu0 }
 0x3bb   :  { %v629_v61 = vmul.f32 0.5, %v626_v58  ;;  %815 = vst.msk [vmem:[#allocation22] sm:$0x3] %vm814_vm4, %v541_v57  ;;  %816 = vst.msk [vmem:[#allocation23] sm:$0x3] %vm814_vm4, %v626_v58 }
 0x3bd   :  { %v630_v62 = vmul.f32 1.442695, %v629_v61 }
 0x3bf   :  { %1074 = vpow2.f32 %v630_v62 }
 0x3cc   :  { %v1075_v1 = vpop.eup %1074 }
 0x3cd   :  { %v633_v2 = vmul.f32 %v1075_v1, %v632_v63 }
 0x3cf   :  { %v634_v3 = vadd.f32 %v633_v2, %v541_v57 }
 0x3d1   :  { %1035 = vmatmul.mubr.msk.f32.vlgmr.msra.gmra.mxu1 %vm646_vm5, %v634_v3 }
 0x3d2   :  { %1038 = vmatpush3.msra.mxu1 %v730_v4  ;;  %1053 = vmatprep.mubr.msk.f32.mxu1 %vm1389_vm0, %v1388_v0 }
 0x3d3   :  { %1039 = vmatprep.subr.mxu1 %v1388_v0 }
 0x3d4   :  { %1040 = vmatpush3.msra.mxu1 %v729_v5 }
 0x3d5   :  { %1041 = vmatprep.subr.mxu1 %v1388_v0 }
 0x3d6   :  { %1042 = vmatpush3.msra.mxu1 %v728_v6 }
 0x3d7   :  { %1043 = vmatprep.subr.mxu1 %v1388_v0 }
 0x3d8   :  { %1044 = vmatpush3.msra.mxu1 %v727_v7 }
 0x3d9   :  { %1045 = vmatprep.subr.mxu1 %v1388_v0 }
 0x3da   :  { %1046 = vmatpush3.msra.mxu1 %v726_v8 }
 0x3db   :  { %1047 = vmatprep.subr.mxu1 %v1388_v0 }
 0x3dc   :  { %1048 = vmatpush3.msra.mxu1 %v725_v9 }
 0x3dd   :  { %1049 = vmatprep.subr.mxu1 %v1388_v0 }
 0x3de   :  { %1050 = vmatpush3.msra.mxu1 %v724_v10 }
 0x3df   :  { %1051 = vmatprep.subr.mxu1 %v1388_v0 }
 0x3e0   :  { %1052 = vmatpush3.msra.mxu1 %v723_v11 }
 0x491   :  { %v716_v13 = vpop.f32.mrf.mxu1 }
 0x492   :  { %v717_v14 = vadd.f32 %v868_v12, %v716_v13 }
 0x493   :  { %v1036_v15 = vpop.f32.mrf.mxu1 }
 0x494   :  { %vm720_vm6 = vcmp.ge.f32.partialorder %v717_v14, 0.0  ;;  %v721_v16 = vmul.f32 0.2, %v717_v14 }
 0x496   :  { %v722_v17 = vsel %vm720_vm6, %v717_v14, %v721_v16 }
 0x497   :  { %1054 = vmatmul.mubr.msk.f32.vlgmr.msra.gmra.mxu1 %vm215_vm1, %v722_v17 }
 0x498   :  { %1327 = shalt.err (!%p1324_p8)
}
 0x499   :  { %829 = dma.vmem_to_hbm [thread:$0]  %s827_s8, 32, %s1668_s14, [#allocation4]  }
 0x49a   :  { %s1336_s20 = scalar_lea.vmem %s837_s17, 32  ;;  %p1341_p10 = scmp.lt.s32.totalorder %s837_s17, %s837_s17 }
 0x49b   :  { %p1337_p9 = scmp.ne.s32.totalorder %s837_s17, %s1336_s20  ;;  %p1342_p11 = scmp.lt.s32.totalorder %s1336_s20, %s1336_s20 }
 0x49d   :  { %p1343_p12 = por %p1342_p11, %p1341_p10 }
 0x49f   :  { %p1344_p13 = pnand %p1343_p12, %p1337_p9 }
 0x4a1   :  { %1347 = shalt.err (!%p1344_p13)
}
 0x4a2   :  { %839 = dma.vmem_to_hbm [thread:$0]  %s837_s17, 32, %s1669_s15, [#allocation24]   ;;  %v870_v0 = vld [vmem:[#allocation20] ss:$0 sm:$0xff]  ;;  %vm818_vm8 = vcmask 516096  }
 0x557   :  { %v807_v18 = vpop.f32.mrf.mxu1 }
 0x558   :  { %v808_v19 = vadd.f32 %v870_v0, %v807_v18 }
 0x559   :  { %v1055_v20 = vpop.f32.mrf.mxu1 }
 0x55a   :  { %vm811_vm7 = vcmp.ge.f32.partialorder %v808_v19, 0.0  ;;  %v812_v21 = vmul.f32 0.2, %v808_v19 }
 0x55c   :  { %v813_v22 = vsel %vm811_vm7, %v808_v19, %v812_v21 }
 0x55d   :  { %v817_v23 = vpack.c.bf16 %v813_v22, %v813_v22 }
 0x55f   :  { %819 = vst.msk [vmem:[%s1670_s16] sm:$0x1] %vm818_vm8, %v817_v23 }
 0x560   :  { %1370 = dma.done.wait [#allocation4], 32  }
 0x561   :  { %1371 = vsyncadd [#allocation4], 4294967264 }
 0x562   :  { %1372 = dma.done.wait [#allocation24], 32  }
 0x563   :  { %1373 = vsyncadd [#allocation24], 4294967264 }
 0x564   :  { %850 = vsyncpa [#allocation3], 1 }
 0x565   :  { %851 = vsyncpa [#allocation6], 1 }
 0x566   :  { %852 = vsyncpa [#allocation9], 1 }
 0x567   :  { %853 = vsyncpa [#allocation12], 1 }
 0x568   :  { %854 = vsyncpa [#allocation15], 1 }
 0x569   :  { %855 = vsyncpa [#allocation18], 1 }
 0x56a   :  { %856 = vsyncpa [#allocation21], 1 }
 0x56b   :  { %857 = vsyncpa [#allocation4], 1 }
 0x56c   :  { %858 = vsyncpa [#allocation24], 1 }

// kernel: vae_forward.3
= control target key start
LH: loop header
LB: loop body
LE: loop exit
PB: predicated region body
PF: predicated region fallthrough
CT: control target
= control target key end

     0   :  { %8 = vsyncpa [#allocation3], 0  ;;  %s5780_s0 = inlined_call_operand.vmem [shape: bf16[2,64], index: 0, kind: input, shape index: {}]   ;;  %s5781_s1 = inlined_call_operand.hbm [shape: bf16[38,64,8192], index: 1, kind: input, shape index: {}]   ;;  %s5782_s2 = inlined_call_operand.hbm [shape: f32[1,311296], index: 2, kind: input, shape index: {}]   ;;  %s5783_s3 = inlined_call_operand.vmem [shape: f32[2,311296], index: 3, kind: output, shape index: {}]  }
   0x1   :  { %10 = vsyncpa [#allocation3 + $0x1], 0 }
   0x2   :  { %11 = vsyncpa [#allocation5], 0 }
   0x3   :  { %13 = vsyncpa [#allocation5 + $0x1], 0  ;;  %s4997_s12 = smov 0   ;;  %s4999_s13 = smov 0  }
   0x4   :  { %s5001_s14 = smov 0   ;;  %s5003_s15 = smov 0  }
   0x5 LB: > { %s4263_s16 = sadd.s32 4294967295, %s4969_s15   ;;  %s5017_s17 = sadd.s32 1, %s4969_s15   ;;  %s4969_s15 = sphi %s5003_s15, %s5794_s15   ;;  %s4965_s14 = sphi %s5001_s14, %s5793_s14   ;;  %s4961_s13 = sphi %s4999_s13, %s5792_s13   ;;  %s4957_s12 = sphi %s4997_s12, %s5791_s12  }
   0x6   : > { %s44_s18 = ssub.s32 %s4969_s15, %s5017_s17  ;;  %s47_s19 = sadd.s32 1, %s4965_s14 }
   0x7   : > { %p45_p0 = scmp.eq.s32.totalorder %s44_s18, 0  ;;  %p54_p1 = scmp.ne.s32.totalorder %s4965_s14, %s4961_s13 }
   0x8   : > { %p55_p2 = scmp.eq.s32.totalorder %s4969_s15, 0  ;;  %p60_p3 = scmp.ne.s32.totalorder %s4961_s13, %s4957_s12 }
   0x9   : > { %s5027_s20 = scalar_select %p45_p0, %s4965_s14, %s47_s19  }
   0xa   : > { %p56_p4 = por %p55_p2, %p54_p1  ;;  %p61_p5 = scmp.eq.s32.totalorder %s4263_s16, 0 }
   0xb   : > { %p4581_p6 = scmp.lt.s32.totalorder %s4969_s15, 38  ;;  %s5037_s22 = sand.u32 1, %s4965_s14  }
   0xc   : > { %p5032_p7 = por %p61_p5, %p60_p3  ;;  %s4267_s23 = sshll.u32 %s5037_s22, 11 }
   0xd   : > { %s4568_s24 = sshll.u32 %s4969_s15, 15  ;;  %s143_s28 = scalar_lea.vmem [#allocation2], %s4267_s23 }
   0xe   : > { %s5785_s21 = scalar_select %p5032_p7, 1, 0 }
   0xf   : > { %s5044_s27 = scalar_lea.hbm %s5781_s1, %s4568_s24  ;;  %s150_s29 = sshll.u32 %s143_s28, 4  ;;  %s5046_s29 = int_to_ptr.vmem [resolvable:$true] %s150_s29 }
  0x10   : > { %p5048_p8 = pnand %p4581_p6, %p56_p4  ;;  %s140_s4 = scalar_lea.sflag [#allocation3], %s5037_s22 }
  0x11   : > { %s4875_s5 = scalar_lea.hbm %s5044_s27, 32768  ;;  %s4880_s8 = scalar_lea.hbm %s5781_s1, 1245184 }
  0x12   : > { %p4876_p10 = scmp.ne.s32.totalorder %s5044_s27, %s4875_s5  ;;  %p4877_p11 = pneg %p5048_p8 }
  0x13   : > { %p4881_p0 = scmp.lt.s32.totalorder %s5044_s27, %s5781_s1  ;;  %p4882_p1 = scmp.lt.s32.totalorder %s4880_s8, %s4875_s5 }
  0x14   : > { %p4878_p12 = pnand %p4877_p11, %p4876_p10 }
  0x15   : > { %p4883_p2 = por %p4882_p1, %p4881_p0 }
  0x16   : > { %p4879_p13 = pneg %p4878_p12 }
  0x18   : > { %p4884_p3 = pnand %p4883_p2, %p4879_p13 }
  0x1a   : > { %4887 = shalt.err (!%p4884_p3)
}
  0x1b   : > { %s4888_s11 = scalar_lea.vmem %s5046_s29, 32768  ;;  %s4971_s12 = smov [#allocation2]  }
  0x1c   : > { %p4889_p4 = scmp.ne.s32.totalorder %s5046_s29, %s4888_s11  ;;  %s4893_s18 = sshll.u32 %s4971_s12, 4  ;;  %s4894_s18 = int_to_ptr.vmem [resolvable:$false] %s4893_s18 }
  0x1d   : > { %s4895_s19 = scalar_lea.vmem %s4894_s18, 65536  ;;  %p4896_p10 = scmp.lt.s32.totalorder %s5046_s29, %s4894_s18 }
  0x1e   : > { %p4891_p5 = pnand %p4889_p4, %p4877_p11  ;;  %p4897_p12 = scmp.lt.s32.totalorder %s4895_s19, %s4888_s11 }
  0x20   : > { %p4892_p6 = pneg %p4891_p5  ;;  %p4898_p9 = por %p4897_p12, %p4896_p10 }
  0x22   : > { %p4899_p0 = pnand %p4898_p9, %p4892_p6 }
  0x24   : > { %4902 = shalt.err (!%p4899_p0)
}
  0x25   : > { %s4972_s23 = smov 4096   ;;  %s4973_s24 = smov 256  }
  0x26   : > { %4577 = dma.hbm_to_vmem [thread:$0]  (!%p5048_p8), %s5044_s27, 32768, %s5046_s29, %s140_s4, %s4972_s23, %s4972_s23, %s4973_s24  }
  0x27   : > { %p177_p13 = scmp.lt.s32.totalorder %s4969_s15, 39  ;;  %s4270_s25 = sshll.u32 %s5037_s22, 6 }
  0x28   : > { %s4569_s26 = sshll.u32 %s4969_s15, 10  ;;  %p5787_p9 = scmp.ge.s32.totalorder %s4969_s15, 1 }
  0x29   : > { %s5092_s7 = scalar_lea.hbm %s5782_s2, %s4569_s26  ;;  %s164_s8 = scalar_lea.vmem [#allocation4], %s4270_s25 }
  0x2a   : > { %p5085_p1 = pnand %p5787_p9, %p177_p13  ;;  %s172_s9 = sshll.u32 %s164_s8, 4  ;;  %s173_s9 = int_to_ptr.vmem [resolvable:$true] %s172_s9 }
  0x2b   : > { %s161_s27 = scalar_lea.sflag [#allocation5], %s5037_s22  ;;  %s4903_s29 = scalar_lea.hbm %s5092_s7, 1024 }
  0x2c   : > { %s5788_s28 = scalar_select %p5085_p1, 1, 0 }
  0x2d   : > { %p4904_p2 = scmp.ne.s32.totalorder %s5092_s7, %s4903_s29  ;;  %s4908_s11 = scalar_lea.hbm %s5782_s2, 38912 }
  0x2e   : > { %p4909_p5 = scmp.lt.s32.totalorder %s5092_s7, %s5782_s2  ;;  %p4910_p6 = scmp.lt.s32.totalorder %s4908_s11, %s4903_s29 }
  0x2f   : > { %p4906_p3 = pnand %p4904_p2, %p4877_p11 }
  0x30   : > { %p4911_p10 = por %p4910_p6, %p4909_p5 }
  0x31   : > { %p4907_p4 = pneg %p4906_p3 }
  0x33   : > { %p4912_p12 = pnand %p4911_p10, %p4907_p4 }
  0x35   : > { %4915 = shalt.err (!%p4912_p12)
}
  0x36   : > { %s4916_s19 = scalar_lea.vmem %s173_s9, 1024  ;;  %s4974_s22 = smov [#allocation4]  }
  0x37   : > { %p4917_p0 = scmp.ne.s32.totalorder %s173_s9, %s4916_s19  ;;  %s4921_s23 = sshll.u32 %s4974_s22, 4  ;;  %s4922_s23 = int_to_ptr.vmem [resolvable:$false] %s4921_s23 }
  0x38   : > { %s4923_s24 = scalar_lea.vmem %s4922_s23, 2048  ;;  %p4924_p2 = scmp.lt.s32.totalorder %s173_s9, %s4922_s23 }
  0x39   : > { %p4919_p13 = pnand %p4917_p0, %p4877_p11  ;;  %p4925_p3 = scmp.lt.s32.totalorder %s4923_s24, %s4916_s19 }
  0x3b   : > { %p4920_p9 = pneg %p4919_p13  ;;  %p4926_p7 = por %p4925_p3, %p4924_p2 }
  0x3d   : > { %p4927_p1 = pnand %p4926_p7, %p4920_p9 }
  0x3f   : > { %4930 = shalt.err (!%p4927_p1)
}
  0x40   : > { %4580 = dma.hbm_to_vmem [thread:$0]  (!%p5048_p8), %s5092_s7, 1024, %s173_s9, %s161_s27  }
  0x41   : > { %p5789_p4 = scmp.ne.s32.totalorder %s5788_s28, 0 }
  0x42   : > { %s183_s25 = sand.u32 (!%p5789_p4), 1, %s4961_s13   ;;  %p5790_p11 = scmp.ne.s32.totalorder (!%p5789_p4), %s5785_s21, 0 }
  0x43   : > { %181 = sbr.rel (%p5789_p4) target bundleno = 579 (0x243), region = 32  ;;  %s4274_s26 = sshll.u32 (!%p5789_p4), %s183_s25, 11 }
  0x44   : > { %s184_s5 = scalar_lea.sflag (!%p5789_p4), [#allocation3], %s183_s25  ;;  %s5116_s6 = scalar_lea.vmem (!%p5789_p4), [#allocation2], %s4274_s26 }
  0x48   : > { %4948 = dma.done.wait (%p5790_p11), %s184_s5, 32768  }
  0x49   : > { %4950 = vsyncadd (%p5790_p11), %s184_s5, 4294934528  ;;  %s4275_s8 = sshll.u32 %s183_s25, 6  ;;  %s193_s30 = scalar_lea.sflag [#allocation5], %s183_s25 }
  0x4a   : > { %s5122_s29 = scalar_lea.vmem [#allocation4], %s4275_s8 }
  0x4b   : > { %4952 = dma.done.wait (%p5790_p11), %s193_s30, 1024  }
  0x4c   : > { %4954 = vsyncadd (%p5790_p11), %s193_s30, 4294966272  ;;  %v4975_v0 = vmov 0   ;;  %v425_v1 = vld [vmem:[%s5116_s6 + $0x600] sm:$0xff]  ;;  %v426_v3 = vld [vmem:[%s5116_s6 + $0x608] sm:$0xff]  ;;  %vm2105_vm0 = vcmask 523264   ;;  %s5534_s27 = sshll.u32 %s4263_s16, 6 }
  0x4d   : > { %2141 = vmatprep.mubr.bf16.mxu0 %v4975_v0  ;;  %2182 = vmatprep.mubr.bf16.mxu1 %v4975_v0  ;;  %v457_v2 = vld [vmem:[%s5116_s6 + $0x700] sm:$0xff]  ;;  %v458_v5 = vld [vmem:[%s5116_s6 + $0x708] sm:$0xff]  ;;  %v427_v31 = vld [vmem:[%s5116_s6 + $0x610] sm:$0xff]  ;;  %p226_p7 = scmp.lt.s32.totalorder %s5534_s27, 2431 }
  0x4e   : > { %v4471_v4 = vcombine.high %v425_v1, %v457_v2  ;;  %v4470_v6 = vcombine.low %v425_v1, %v457_v2  ;;  %v361_v7 = vld [vmem:[%s5116_s6 + $0x400] sm:$0xff]  ;;  %v4473_v9 = vcombine.high %v426_v3, %v458_v5  ;;  %v4472_v10 = vcombine.low %v426_v3, %v458_v5  ;;  %v362_v12 = vld [vmem:[%s5116_s6 + $0x408] sm:$0xff]  ;;  %v459_v32 = vld [vmem:[%s5116_s6 + $0x710] sm:$0xff] }
  0x4f   : > { %v393_v8 = vld [vmem:[%s5116_s6 + $0x500] sm:$0xff]  ;;  %v394_v13 = vld [vmem:[%s5116_s6 + $0x508] sm:$0xff]  ;;  %v428_v33 = vld [vmem:[%s5116_s6 + $0x618] sm:$0xff]  ;;  %v4475_v37 = vcombine.high %v427_v31, %v459_v32  ;;  %v4474_v44 = vcombine.low %v427_v31, %v459_v32  ;;  %s5796_s27 = smov (!%p226_p7, %s5534_s27), 2431 }
  0x50   : > { %v4407_v11 = vcombine.high %v361_v7, %v393_v8  ;;  %v297_v14 = vld [vmem:[%s5116_s6 + $0x200] sm:$0xff]  ;;  %2117 = vmatprep.subr.bf16.mxu0 %v4471_v4  ;;  %v4409_v15 = vcombine.high %v362_v12, %v394_v13  ;;  %v298_v17 = vld [vmem:[%s5116_s6 + $0x208] sm:$0xff]  ;;  %2158 = vmatprep.subr.bf16.mxu1 %v4473_v9  ;;  %v4406_v19 = vcombine.low %v361_v7, %v393_v8  ;;  %v460_v34 = vld [vmem:[%s5116_s6 + $0x718] sm:$0xff]  ;;  %s4277_s15 = sshll.u32 %s5796_s27, 1 }
  0x51   : > { %v329_v16 = vld [vmem:[%s5116_s6 + $0x300] sm:$0xff]  ;;  %v330_v18 = vld [vmem:[%s5116_s6 + $0x308] sm:$0xff]  ;;  %2118 = vmatpush1.bf16.msra.mxu0 %v4470_v6  ;;  %2159 = vmatpush1.bf16.msra.mxu1 %v4472_v10  ;;  %v4408_v20 = vcombine.low %v362_v12, %v394_v13  ;;  %v4477_v38 = vcombine.high %v428_v33, %v460_v34  ;;  %v363_v39 = vld [vmem:[%s5116_s6 + $0x410] sm:$0xff]  ;;  %v4476_v45 = vcombine.low %v428_v33, %v460_v34  ;;  %s5593_s10 = scalar_lea.vmem %s5783_s3, %s4277_s15 }
  0x52   : > { %2119 = vmatprep.subr.bf16.mxu0 %v4407_v11  ;;  %v4343_v21 = vcombine.high %v297_v14, %v329_v16  ;;  %2160 = vmatprep.subr.bf16.mxu1 %v4409_v15  ;;  %v4345_v22 = vcombine.high %v298_v17, %v330_v18  ;;  %v233_v23 = vld [vmem:[%s5116_s6] sm:$0xff]  ;;  %v234_v25 = vld [vmem:[%s5116_s6 + $0x8] sm:$0xff]  ;;  %v4342_v27 = vcombine.low %v297_v14, %v329_v16  ;;  %v395_v40 = vld [vmem:[%s5116_s6 + $0x510] sm:$0xff] }
  0x53   : > { %v265_v24 = vld [vmem:[%s5116_s6 + $0x100] sm:$0xff]  ;;  %v266_v26 = vld [vmem:[%s5116_s6 + $0x108] sm:$0xff]  ;;  %v4344_v28 = vcombine.low %v298_v17, %v330_v18  ;;  %v364_v41 = vld [vmem:[%s5116_s6 + $0x418] sm:$0xff]  ;;  %v4411_v46 = vcombine.high %v363_v39, %v395_v40  ;;  %v4410_v52 = vcombine.low %v363_v39, %v395_v40 }
  0x54   : > { %v4279_v29 = vcombine.high %v233_v23, %v265_v24  ;;  %v4281_v30 = vcombine.high %v234_v25, %v266_v26  ;;  %v4278_v35 = vcombine.low %v233_v23, %v265_v24  ;;  %v4280_v36 = vcombine.low %v234_v25, %v266_v26  ;;  %v396_v42 = vld [vmem:[%s5116_s6 + $0x518] sm:$0xff]  ;;  %v5157_v43 = vld [vmem:[%s5780_s0] sm:$0x1]  ;;  %v299_v48 = vld [vmem:[%s5116_s6 + $0x210] sm:$0xff] }
  0x55   : > { %2120 = vmatpush1.bf16.msra.mxu0 %v4406_v19  ;;  %2161 = vmatpush1.bf16.msra.mxu1 %v4408_v20  ;;  %v4413_v47 = vcombine.high %v364_v41, %v396_v42  ;;  %v331_v49 = vld [vmem:[%s5116_s6 + $0x310] sm:$0xff]  ;;  %v300_v50 = vld [vmem:[%s5116_s6 + $0x218] sm:$0xff]  ;;  %v4412_v53 = vcombine.low %v364_v41, %v396_v42  ;;  %v429_v1 = vld [vmem:[%s5116_s6 + $0x620] sm:$0xff] }
  0x56   : > { %2121 = vmatprep.subr.bf16.mxu0 %v4343_v21  ;;  %2162 = vmatprep.subr.bf16.mxu1 %v4345_v22  ;;  %v332_v51 = vld [vmem:[%s5116_s6 + $0x318] sm:$0xff]  ;;  %v4347_v54 = vcombine.high %v299_v48, %v331_v49  ;;  %v235_v56 = vld [vmem:[%s5116_s6 + $0x10] sm:$0xff]  ;;  %v4346_v60 = vcombine.low %v299_v48, %v331_v49  ;;  %v461_v2 = vld [vmem:[%s5116_s6 + $0x720] sm:$0xff] }
  0x57   : > { %v4349_v55 = vcombine.high %v300_v50, %v332_v51  ;;  %v267_v57 = vld [vmem:[%s5116_s6 + $0x110] sm:$0xff]  ;;  %v236_v58 = vld [vmem:[%s5116_s6 + $0x18] sm:$0xff]  ;;  %v4348_v61 = vcombine.low %v300_v50, %v332_v51  ;;  %v430_v3 = vld [vmem:[%s5116_s6 + $0x628] sm:$0xff]  ;;  %v4479_v7 = vcombine.high %v429_v1, %v461_v2  ;;  %v4478_v13 = vcombine.low %v429_v1, %v461_v2 }
  0x58   : > { %v268_v59 = vld [vmem:[%s5116_s6 + $0x118] sm:$0xff]  ;;  %v4283_v62 = vcombine.high %v235_v56, %v267_v57  ;;  %v462_v4 = vld [vmem:[%s5116_s6 + $0x728] sm:$0xff]  ;;  %v4282_v5 = vcombine.low %v235_v56, %v267_v57  ;;  %v365_v9 = vld [vmem:[%s5116_s6 + $0x420] sm:$0xff] }
  0x59   : > { %2122 = vmatpush1.bf16.msra.mxu0 %v4342_v27  ;;  %2163 = vmatpush1.bf16.msra.mxu1 %v4344_v28  ;;  %v4285_v63 = vcombine.high %v236_v58, %v268_v59  ;;  %v4284_v6 = vcombine.low %v236_v58, %v268_v59  ;;  %v4481_v8 = vcombine.high %v430_v3, %v462_v4  ;;  %v397_v10 = vld [vmem:[%s5116_s6 + $0x520] sm:$0xff]  ;;  %v366_v11 = vld [vmem:[%s5116_s6 + $0x428] sm:$0xff]  ;;  %v431_v33 = vld [vmem:[%s5116_s6 + $0x630] sm:$0xff] }
  0x5a   : > { %2123 = vmatprep.subr.bf16.mxu0 %v4279_v29  ;;  %2164 = vmatprep.subr.bf16.mxu1 %v4281_v30  ;;  %v398_v12 = vld [vmem:[%s5116_s6 + $0x528] sm:$0xff]  ;;  %v4480_v14 = vcombine.low %v430_v3, %v462_v4  ;;  %v4415_v15 = vcombine.high %v365_v9, %v397_v10  ;;  %v301_v17 = vld [vmem:[%s5116_s6 + $0x220] sm:$0xff]  ;;  %v4414_v21 = vcombine.low %v365_v9, %v397_v10  ;;  %v463_v34 = vld [vmem:[%s5116_s6 + $0x730] sm:$0xff] }
  0x5b   : > { %v4417_v16 = vcombine.high %v366_v11, %v398_v12  ;;  %v333_v18 = vld [vmem:[%s5116_s6 + $0x320] sm:$0xff]  ;;  %v302_v19 = vld [vmem:[%s5116_s6 + $0x228] sm:$0xff]  ;;  %v4416_v22 = vcombine.low %v366_v11, %v398_v12  ;;  %v4483_v39 = vcombine.high %v431_v33, %v463_v34  ;;  %v367_v41 = vld [vmem:[%s5116_s6 + $0x430] sm:$0xff] }
  0x5c   : > { %v334_v20 = vld [vmem:[%s5116_s6 + $0x328] sm:$0xff]  ;;  %v4351_v23 = vcombine.high %v301_v17, %v333_v18  ;;  %v237_v25 = vld [vmem:[%s5116_s6 + $0x20] sm:$0xff]  ;;  %v4350_v29 = vcombine.low %v301_v17, %v333_v18  ;;  %v399_v42 = vld [vmem:[%s5116_s6 + $0x530] sm:$0xff] }
  0x5d   : > { %2124 = vmatpush1.bf16.msra.mxu0 %v4278_v35  ;;  %2165 = vmatpush1.bf16.msra.mxu1 %v4280_v36  ;;  %v4353_v24 = vcombine.high %v302_v19, %v334_v20  ;;  %v269_v26 = vld [vmem:[%s5116_s6 + $0x120] sm:$0xff]  ;;  %v238_v27 = vld [vmem:[%s5116_s6 + $0x28] sm:$0xff]  ;;  %v4352_v30 = vcombine.low %v302_v19, %v334_v20  ;;  %v432_v35 = vld [vmem:[%s5116_s6 + $0x638] sm:$0xff]  ;;  %v4419_v48 = vcombine.high %v367_v41, %v399_v42 }
  0x5e   : > { %2199 = vmatprep.subr.bf16.mxu0 %v4475_v37  ;;  %2240 = vmatprep.subr.bf16.mxu1 %v4477_v38  ;;  %v270_v28 = vld [vmem:[%s5116_s6 + $0x128] sm:$0xff]  ;;  %v4287_v31 = vcombine.high %v237_v25, %v269_v26  ;;  %v464_v36 = vld [vmem:[%s5116_s6 + $0x738] sm:$0xff]  ;;  %v4286_v37 = vcombine.low %v237_v25, %v269_v26  ;;  %v303_v50 = vld [vmem:[%s5116_s6 + $0x230] sm:$0xff] }
  0x5f   : > { %v4289_v32 = vcombine.high %v238_v27, %v270_v28  ;;  %v4288_v38 = vcombine.low %v238_v27, %v270_v28  ;;  %v4485_v40 = vcombine.high %v432_v35, %v464_v36  ;;  %v335_v51 = vld [vmem:[%s5116_s6 + $0x330] sm:$0xff]  ;;  %v433_v3 = vld [vmem:[%s5116_s6 + $0x640] sm:$0xff] }
  0x60   : > { %4534 = vmatmul.mubr.msk.bf16.vlgmr.msra.gmra.mxu0 %vm2105_vm0, %v5157_v43  ;;  %4535 = vmatmul.mubr.msk.bf16.vlgmr.msra.gmra.mxu1 %vm2105_vm0, %v5157_v43  ;;  %v4355_v56 = vcombine.high %v303_v50, %v335_v51  ;;  %v239_v58 = vld [vmem:[%s5116_s6 + $0x30] sm:$0xff]  ;;  %v465_v4 = vld [vmem:[%s5116_s6 + $0x740] sm:$0xff] }
  0x61   : > { %2200 = vmatpush1.bf16.msra.mxu0 %v4474_v44  ;;  %2241 = vmatpush1.bf16.msra.mxu1 %v4476_v45  ;;  %v368_v44 = vld [vmem:[%s5116_s6 + $0x438] sm:$0xff]  ;;  %v271_v59 = vld [vmem:[%s5116_s6 + $0x130] sm:$0xff]  ;;  %v4487_v9 = vcombine.high %v433_v3, %v465_v4  ;;  %v369_v11 = vld [vmem:[%s5116_s6 + $0x440] sm:$0xff] }
  0x62   : > { %2201 = vmatprep.subr.bf16.mxu0 %v4411_v46  ;;  %2242 = vmatprep.subr.bf16.mxu1 %v4413_v47  ;;  %v400_v45 = vld [vmem:[%s5116_s6 + $0x538] sm:$0xff]  ;;  %v4482_v46 = vcombine.low %v431_v33, %v463_v34  ;;  %v4484_v47 = vcombine.low %v432_v35, %v464_v36  ;;  %v4291_v1 = vcombine.high %v239_v58, %v271_v59  ;;  %v401_v12 = vld [vmem:[%s5116_s6 + $0x540] sm:$0xff]  ;;  %v435_v35 = vld [vmem:[%s5116_s6 + $0x650] sm:$0xff] }
  0x63   : > { %2223 = vmatprep.mubr.bf16.mxu0 %v4975_v0  ;;  %2264 = vmatprep.mubr.bf16.mxu1 %v4975_v0  ;;  %v4421_v49 = vcombine.high %v368_v44, %v400_v45  ;;  %v4423_v17 = vcombine.high %v369_v11, %v401_v12  ;;  %v305_v19 = vld [vmem:[%s5116_s6 + $0x240] sm:$0xff]  ;;  %v467_v36 = vld [vmem:[%s5116_s6 + $0x750] sm:$0xff] }
  0x64   : > { %v337_v20 = vld [vmem:[%s5116_s6 + $0x340] sm:$0xff] }
  0x65   : > { %2202 = vmatpush1.bf16.msra.mxu0 %v4410_v52  ;;  %2243 = vmatpush1.bf16.msra.mxu1 %v4412_v53  ;;  %v304_v52 = vld [vmem:[%s5116_s6 + $0x238] sm:$0xff]  ;;  %v4359_v25 = vcombine.high %v305_v19, %v337_v20  ;;  %v241_v27 = vld [vmem:[%s5116_s6 + $0x40] sm:$0xff] }
  0x66   : > { %2203 = vmatprep.subr.bf16.mxu0 %v4347_v54  ;;  %2244 = vmatprep.subr.bf16.mxu1 %v4349_v55  ;;  %v336_v53 = vld [vmem:[%s5116_s6 + $0x338] sm:$0xff]  ;;  %v4418_v54 = vcombine.low %v367_v41, %v399_v42  ;;  %v4420_v55 = vcombine.low %v368_v44, %v400_v45  ;;  %v273_v28 = vld [vmem:[%s5116_s6 + $0x140] sm:$0xff]  ;;  %v4491_v41 = vcombine.high %v435_v35, %v467_v36  ;;  %v371_v44 = vld [vmem:[%s5116_s6 + $0x450] sm:$0xff] }
  0x67   : > { %v4357_v57 = vcombine.high %v304_v52, %v336_v53  ;;  %v4295_v33 = vcombine.high %v241_v27, %v273_v28  ;;  %v403_v45 = vld [vmem:[%s5116_s6 + $0x550] sm:$0xff] }
  0x69   : > { %2204 = vmatpush1.bf16.msra.mxu0 %v4346_v60  ;;  %2245 = vmatpush1.bf16.msra.mxu1 %v4348_v61  ;;  %v240_v60 = vld [vmem:[%s5116_s6 + $0x38] sm:$0xff] }
  0x6a   : > { %2205 = vmatprep.subr.bf16.mxu0 %v4283_v62  ;;  %2246 = vmatprep.subr.bf16.mxu1 %v4285_v63  ;;  %v272_v61 = vld [vmem:[%s5116_s6 + $0x138] sm:$0xff]  ;;  %v4354_v62 = vcombine.low %v303_v50, %v335_v51  ;;  %v4356_v63 = vcombine.low %v304_v52, %v336_v53  ;;  %v4427_v50 = vcombine.high %v371_v44, %v403_v45  ;;  %v307_v52 = vld [vmem:[%s5116_s6 + $0x250] sm:$0xff] }
  0x6b   : > { %v4293_v2 = vcombine.high %v240_v60, %v272_v61  ;;  %v339_v53 = vld [vmem:[%s5116_s6 + $0x350] sm:$0xff] }
  0x6d   : > { %2206 = vmatpush1.bf16.msra.mxu0 %v4282_v5  ;;  %2247 = vmatpush1.bf16.msra.mxu1 %v4284_v6  ;;  %v434_v5 = vld [vmem:[%s5116_s6 + $0x648] sm:$0xff] }
  0x6e   : > { %2281 = vmatprep.subr.bf16.mxu0 %v4479_v7  ;;  %2322 = vmatprep.subr.bf16.mxu1 %v4481_v8  ;;  %v466_v6 = vld [vmem:[%s5116_s6 + $0x748] sm:$0xff]  ;;  %v4290_v7 = vcombine.low %v239_v58, %v271_v59  ;;  %v4292_v8 = vcombine.low %v240_v60, %v272_v61  ;;  %v4363_v58 = vcombine.high %v307_v52, %v339_v53  ;;  %v243_v60 = vld [vmem:[%s5116_s6 + $0x50] sm:$0xff] }
  0x6f   : > { %v4489_v10 = vcombine.high %v434_v5, %v466_v6  ;;  %v275_v61 = vld [vmem:[%s5116_s6 + $0x150] sm:$0xff] }
  0x70   : > { %4536 = vmatmul.mubr.msk.bf16.vlgmr.msra.gmra.mxu0 %vm2105_vm0, %v5157_v43  ;;  %4537 = vmatmul.mubr.msk.bf16.vlgmr.msra.gmra.mxu1 %vm2105_vm0, %v5157_v43 }
  0x71   : > { %2282 = vmatpush1.bf16.msra.mxu0 %v4478_v13  ;;  %2323 = vmatpush1.bf16.msra.mxu1 %v4480_v14  ;;  %v370_v13 = vld [vmem:[%s5116_s6 + $0x448] sm:$0xff] }
  0x72   : > { %2283 = vmatprep.subr.bf16.mxu0 %v4415_v15  ;;  %2324 = vmatprep.subr.bf16.mxu1 %v4417_v16  ;;  %v402_v14 = vld [vmem:[%s5116_s6 + $0x548] sm:$0xff]  ;;  %v4486_v15 = vcombine.low %v433_v3, %v465_v4  ;;  %v4488_v16 = vcombine.low %v434_v5, %v466_v6  ;;  %v4299_v3 = vcombine.high %v243_v60, %v275_v61  ;;  %v437_v5 = vld [vmem:[%s5116_s6 + $0x660] sm:$0xff] }
  0x73   : > { %2305 = vmatprep.mubr.bf16.mxu0 %v4975_v0  ;;  %2346 = vmatprep.mubr.bf16.mxu1 %v4975_v0  ;;  %v4425_v18 = vcombine.high %v370_v13, %v402_v14  ;;  %v469_v6 = vld [vmem:[%s5116_s6 + $0x760] sm:$0xff] }
  0x75   : > { %2284 = vmatpush1.bf16.msra.mxu0 %v4414_v21  ;;  %2325 = vmatpush1.bf16.msra.mxu1 %v4416_v22  ;;  %v306_v21 = vld [vmem:[%s5116_s6 + $0x248] sm:$0xff] }
  0x76   : > { %2285 = vmatprep.subr.bf16.mxu0 %v4351_v23  ;;  %2326 = vmatprep.subr.bf16.mxu1 %v4353_v24  ;;  %v338_v22 = vld [vmem:[%s5116_s6 + $0x348] sm:$0xff]  ;;  %v4422_v23 = vcombine.low %v369_v11, %v401_v12  ;;  %v4424_v24 = vcombine.low %v370_v13, %v402_v14  ;;  %v4495_v11 = vcombine.high %v437_v5, %v469_v6  ;;  %v373_v13 = vld [vmem:[%s5116_s6 + $0x460] sm:$0xff] }
  0x77   : > { %v4361_v26 = vcombine.high %v306_v21, %v338_v22  ;;  %v405_v14 = vld [vmem:[%s5116_s6 + $0x560] sm:$0xff] }
  0x79   : > { %2286 = vmatpush1.bf16.msra.mxu0 %v4350_v29  ;;  %2327 = vmatpush1.bf16.msra.mxu1 %v4352_v30  ;;  %v242_v29 = vld [vmem:[%s5116_s6 + $0x48] sm:$0xff] }
  0x7a   : > { %2287 = vmatprep.subr.bf16.mxu0 %v4287_v31  ;;  %2328 = vmatprep.subr.bf16.mxu1 %v4289_v32  ;;  %v274_v30 = vld [vmem:[%s5116_s6 + $0x148] sm:$0xff]  ;;  %v4358_v31 = vcombine.low %v305_v19, %v337_v20  ;;  %v4360_v32 = vcombine.low %v306_v21, %v338_v22  ;;  %v4431_v19 = vcombine.high %v373_v13, %v405_v14  ;;  %v309_v21 = vld [vmem:[%s5116_s6 + $0x260] sm:$0xff] }
  0x7b   : > { %v4297_v34 = vcombine.high %v242_v29, %v274_v30  ;;  %v341_v22 = vld [vmem:[%s5116_s6 + $0x360] sm:$0xff] }
  0x7d   : > { %2288 = vmatpush1.bf16.msra.mxu0 %v4286_v37  ;;  %2329 = vmatpush1.bf16.msra.mxu1 %v4288_v38  ;;  %v436_v37 = vld [vmem:[%s5116_s6 + $0x658] sm:$0xff] }
  0x7e   : > { %2363 = vmatprep.subr.bf16.mxu0 %v4483_v39  ;;  %2404 = vmatprep.subr.bf16.mxu1 %v4485_v40  ;;  %v468_v38 = vld [vmem:[%s5116_s6 + $0x758] sm:$0xff]  ;;  %v4294_v39 = vcombine.low %v241_v27, %v273_v28  ;;  %v4296_v40 = vcombine.low %v242_v29, %v274_v30  ;;  %v4367_v27 = vcombine.high %v309_v21, %v341_v22  ;;  %v245_v29 = vld [vmem:[%s5116_s6 + $0x60] sm:$0xff] }
  0x7f   : > { %v4493_v42 = vcombine.high %v436_v37, %v468_v38  ;;  %v277_v30 = vld [vmem:[%s5116_s6 + $0x160] sm:$0xff] }
  0x80   : > { %4538 = vmatmul.mubr.msk.bf16.vlgmr.msra.gmra.mxu0 %vm2105_vm0, %v5157_v43  ;;  %4539 = vmatmul.mubr.msk.bf16.vlgmr.msra.gmra.mxu1 %vm2105_vm0, %v5157_v43 }
  0x81   : > { %2364 = vmatpush1.bf16.msra.mxu0 %v4482_v46  ;;  %2405 = vmatpush1.bf16.msra.mxu1 %v4484_v47  ;;  %v372_v46 = vld [vmem:[%s5116_s6 + $0x458] sm:$0xff] }
  0x82   : > { %2365 = vmatprep.subr.bf16.mxu0 %v4419_v48  ;;  %2406 = vmatprep.subr.bf16.mxu1 %v4421_v49  ;;  %v404_v47 = vld [vmem:[%s5116_s6 + $0x558] sm:$0xff]  ;;  %v4490_v48 = vcombine.low %v435_v35, %v467_v36  ;;  %v4492_v49 = vcombine.low %v436_v37, %v468_v38  ;;  %v4303_v35 = vcombine.high %v245_v29, %v277_v30  ;;  %v439_v37 = vld [vmem:[%s5116_s6 + $0x670] sm:$0xff] }
  0x83   : > { %2387 = vmatprep.mubr.bf16.mxu0 %v4975_v0  ;;  %2428 = vmatprep.mubr.bf16.mxu1 %v4975_v0  ;;  %v4429_v51 = vcombine.high %v372_v46, %v404_v47  ;;  %v471_v38 = vld [vmem:[%s5116_s6 + $0x770] sm:$0xff] }
  0x85   : > { %2366 = vmatpush1.bf16.msra.mxu0 %v4418_v54  ;;  %2407 = vmatpush1.bf16.msra.mxu1 %v4420_v55  ;;  %v308_v54 = vld [vmem:[%s5116_s6 + $0x258] sm:$0xff] }
  0x86   : > { %2367 = vmatprep.subr.bf16.mxu0 %v4355_v56  ;;  %2408 = vmatprep.subr.bf16.mxu1 %v4357_v57  ;;  %v340_v55 = vld [vmem:[%s5116_s6 + $0x358] sm:$0xff]  ;;  %v4426_v56 = vcombine.low %v371_v44, %v403_v45  ;;  %v4428_v57 = vcombine.low %v372_v46, %v404_v47  ;;  %v4499_v44 = vcombine.high %v439_v37, %v471_v38  ;;  %v375_v46 = vld [vmem:[%s5116_s6 + $0x470] sm:$0xff] }
  0x87   : > { %v4365_v59 = vcombine.high %v308_v54, %v340_v55  ;;  %v407_v47 = vld [vmem:[%s5116_s6 + $0x570] sm:$0xff] }
  0x89   : > { %2368 = vmatpush1.bf16.msra.mxu0 %v4354_v62  ;;  %2409 = vmatpush1.bf16.msra.mxu1 %v4356_v63  ;;  %v244_v62 = vld [vmem:[%s5116_s6 + $0x58] sm:$0xff] }
  0x8a   : > { %2369 = vmatprep.subr.bf16.mxu0 %v4291_v1  ;;  %2410 = vmatprep.subr.bf16.mxu1 %v4293_v2  ;;  %v276_v63 = vld [vmem:[%s5116_s6 + $0x158] sm:$0xff]  ;;  %v4362_v1 = vcombine.low %v307_v52, %v339_v53  ;;  %v4364_v2 = vcombine.low %v308_v54, %v340_v55  ;;  %v4435_v52 = vcombine.high %v375_v46, %v407_v47  ;;  %v311_v54 = vld [vmem:[%s5116_s6 + $0x270] sm:$0xff] }
  0x8b   : > { %v4301_v4 = vcombine.high %v244_v62, %v276_v63  ;;  %v343_v55 = vld [vmem:[%s5116_s6 + $0x370] sm:$0xff] }
  0x8d   : > { %2370 = vmatpush1.bf16.msra.mxu0 %v4290_v7  ;;  %2411 = vmatpush1.bf16.msra.mxu1 %v4292_v8  ;;  %v438_v7 = vld [vmem:[%s5116_s6 + $0x668] sm:$0xff] }
  0x8e   : > { %2445 = vmatprep.subr.bf16.mxu0 %v4487_v9  ;;  %2486 = vmatprep.subr.bf16.mxu1 %v4489_v10  ;;  %v470_v8 = vld [vmem:[%s5116_s6 + $0x768] sm:$0xff]  ;;  %v4298_v9 = vcombine.low %v243_v60, %v275_v61  ;;  %v4300_v10 = vcombine.low %v244_v62, %v276_v63  ;;  %v4371_v60 = vcombine.high %v311_v54, %v343_v55  ;;  %v247_v62 = vld [vmem:[%s5116_s6 + $0x70] sm:$0xff] }
  0x8f   : > { %v4497_v12 = vcombine.high %v438_v7, %v470_v8  ;;  %v279_v63 = vld [vmem:[%s5116_s6 + $0x170] sm:$0xff] }
  0x90   : > { %4540 = vmatmul.mubr.msk.bf16.vlgmr.msra.gmra.mxu0 %vm2105_vm0, %v5157_v43  ;;  %4541 = vmatmul.mubr.msk.bf16.vlgmr.msra.gmra.mxu1 %vm2105_vm0, %v5157_v43 }
  0x91   : > { %2446 = vmatpush1.bf16.msra.mxu0 %v4486_v15  ;;  %2487 = vmatpush1.bf16.msra.mxu1 %v4488_v16  ;;  %v374_v15 = vld [vmem:[%s5116_s6 + $0x468] sm:$0xff] }
  0x92   : > { %2447 = vmatprep.subr.bf16.mxu0 %v4423_v17  ;;  %2488 = vmatprep.subr.bf16.mxu1 %v4425_v18  ;;  %v406_v16 = vld [vmem:[%s5116_s6 + $0x568] sm:$0xff]  ;;  %v4494_v17 = vcombine.low %v437_v5, %v469_v6  ;;  %v4496_v18 = vcombine.low %v438_v7, %v470_v8  ;;  %v4307_v5 = vcombine.high %v247_v62, %v279_v63  ;;  %v441_v7 = vld [vmem:[%s5116_s6 + $0x680] sm:$0xff] }
  0x93   : > { %2469 = vmatprep.mubr.bf16.mxu0 %v4975_v0  ;;  %2510 = vmatprep.mubr.bf16.mxu1 %v4975_v0  ;;  %v4433_v20 = vcombine.high %v374_v15, %v406_v16  ;;  %v473_v8 = vld [vmem:[%s5116_s6 + $0x780] sm:$0xff] }
  0x95   : > { %2448 = vmatpush1.bf16.msra.mxu0 %v4422_v23  ;;  %2489 = vmatpush1.bf16.msra.mxu1 %v4424_v24  ;;  %v310_v23 = vld [vmem:[%s5116_s6 + $0x268] sm:$0xff] }
  0x96   : > { %2449 = vmatprep.subr.bf16.mxu0 %v4359_v25  ;;  %2490 = vmatprep.subr.bf16.mxu1 %v4361_v26  ;;  %v342_v24 = vld [vmem:[%s5116_s6 + $0x368] sm:$0xff]  ;;  %v4430_v25 = vcombine.low %v373_v13, %v405_v14  ;;  %v4432_v26 = vcombine.low %v374_v15, %v406_v16  ;;  %v4503_v13 = vcombine.high %v441_v7, %v473_v8  ;;  %v377_v15 = vld [vmem:[%s5116_s6 + $0x480] sm:$0xff] }
  0x97   : > { %v4369_v28 = vcombine.high %v310_v23, %v342_v24  ;;  %v409_v16 = vld [vmem:[%s5116_s6 + $0x580] sm:$0xff] }
  0x99   : > { %2450 = vmatpush1.bf16.msra.mxu0 %v4358_v31  ;;  %2491 = vmatpush1.bf16.msra.mxu1 %v4360_v32  ;;  %v246_v31 = vld [vmem:[%s5116_s6 + $0x68] sm:$0xff] }
  0x9a   : > { %2451 = vmatprep.subr.bf16.mxu0 %v4295_v33  ;;  %2492 = vmatprep.subr.bf16.mxu1 %v4297_v34  ;;  %v278_v32 = vld [vmem:[%s5116_s6 + $0x168] sm:$0xff]  ;;  %v4366_v33 = vcombine.low %v309_v21, %v341_v22  ;;  %v4368_v34 = vcombine.low %v310_v23, %v342_v24  ;;  %v4439_v21 = vcombine.high %v377_v15, %v409_v16  ;;  %v313_v23 = vld [vmem:[%s5116_s6 + $0x280] sm:$0xff] }
  0x9b   : > { %v4305_v36 = vcombine.high %v246_v31, %v278_v32  ;;  %v345_v24 = vld [vmem:[%s5116_s6 + $0x380] sm:$0xff] }
  0x9d   : > { %2452 = vmatpush1.bf16.msra.mxu0 %v4294_v39  ;;  %2493 = vmatpush1.bf16.msra.mxu1 %v4296_v40  ;;  %v440_v39 = vld [vmem:[%s5116_s6 + $0x678] sm:$0xff] }
  0x9e   : > { %2527 = vmatprep.subr.bf16.mxu0 %v4491_v41  ;;  %2568 = vmatprep.subr.bf16.mxu1 %v4493_v42  ;;  %v472_v40 = vld [vmem:[%s5116_s6 + $0x778] sm:$0xff]  ;;  %v4302_v41 = vcombine.low %v245_v29, %v277_v30  ;;  %v4304_v42 = vcombine.low %v246_v31, %v278_v32  ;;  %v4375_v29 = vcombine.high %v313_v23, %v345_v24  ;;  %v249_v31 = vld [vmem:[%s5116_s6 + $0x80] sm:$0xff] }
  0x9f   : > { %v4501_v45 = vcombine.high %v440_v39, %v472_v40  ;;  %v281_v32 = vld [vmem:[%s5116_s6 + $0x180] sm:$0xff] }
  0xa0   : > { %4542 = vmatmul.mubr.msk.bf16.vlgmr.msra.gmra.mxu0 %vm2105_vm0, %v5157_v43  ;;  %4543 = vmatmul.mubr.msk.bf16.vlgmr.msra.gmra.mxu1 %vm2105_vm0, %v5157_v43 }
  0xa1   : > { %2528 = vmatpush1.bf16.msra.mxu0 %v4490_v48  ;;  %2569 = vmatpush1.bf16.msra.mxu1 %v4492_v49  ;;  %v376_v48 = vld [vmem:[%s5116_s6 + $0x478] sm:$0xff] }
  0xa2   : > { %2529 = vmatprep.subr.bf16.mxu0 %v4427_v50  ;;  %2570 = vmatprep.subr.bf16.mxu1 %v4429_v51  ;;  %v408_v49 = vld [vmem:[%s5116_s6 + $0x578] sm:$0xff]  ;;  %v4498_v50 = vcombine.low %v439_v37, %v471_v38  ;;  %v4500_v51 = vcombine.low %v440_v39, %v472_v40  ;;  %v4311_v37 = vcombine.high %v249_v31, %v281_v32  ;;  %v443_v39 = vld [vmem:[%s5116_s6 + $0x690] sm:$0xff] }
  0xa3   : > { %2551 = vmatprep.mubr.bf16.mxu0 %v4975_v0  ;;  %2592 = vmatprep.mubr.bf16.mxu1 %v4975_v0  ;;  %v4437_v53 = vcombine.high %v376_v48, %v408_v49  ;;  %v475_v40 = vld [vmem:[%s5116_s6 + $0x790] sm:$0xff] }
  0xa5   : > { %2530 = vmatpush1.bf16.msra.mxu0 %v4426_v56  ;;  %2571 = vmatpush1.bf16.msra.mxu1 %v4428_v57  ;;  %v312_v56 = vld [vmem:[%s5116_s6 + $0x278] sm:$0xff] }
  0xa6   : > { %2531 = vmatprep.subr.bf16.mxu0 %v4363_v58  ;;  %2572 = vmatprep.subr.bf16.mxu1 %v4365_v59  ;;  %v344_v57 = vld [vmem:[%s5116_s6 + $0x378] sm:$0xff]  ;;  %v4434_v58 = vcombine.low %v375_v46, %v407_v47  ;;  %v4436_v59 = vcombine.low %v376_v48, %v408_v49  ;;  %v4507_v46 = vcombine.high %v443_v39, %v475_v40  ;;  %v379_v48 = vld [vmem:[%s5116_s6 + $0x490] sm:$0xff] }
  0xa7   : > { %v4373_v61 = vcombine.high %v312_v56, %v344_v57  ;;  %v411_v49 = vld [vmem:[%s5116_s6 + $0x590] sm:$0xff] }
  0xa9   : > { %2532 = vmatpush1.bf16.msra.mxu0 %v4362_v1  ;;  %2573 = vmatpush1.bf16.msra.mxu1 %v4364_v2  ;;  %v248_v1 = vld [vmem:[%s5116_s6 + $0x78] sm:$0xff] }
  0xaa   : > { %2533 = vmatprep.subr.bf16.mxu0 %v4299_v3  ;;  %2574 = vmatprep.subr.bf16.mxu1 %v4301_v4  ;;  %v280_v2 = vld [vmem:[%s5116_s6 + $0x178] sm:$0xff]  ;;  %v4370_v3 = vcombine.low %v311_v54, %v343_v55  ;;  %v4372_v4 = vcombine.low %v312_v56, %v344_v57  ;;  %v4443_v54 = vcombine.high %v379_v48, %v411_v49  ;;  %v315_v56 = vld [vmem:[%s5116_s6 + $0x290] sm:$0xff] }
  0xab   : > { %v4309_v6 = vcombine.high %v248_v1, %v280_v2  ;;  %v347_v57 = vld [vmem:[%s5116_s6 + $0x390] sm:$0xff] }
  0xad   : > { %2534 = vmatpush1.bf16.msra.mxu0 %v4298_v9  ;;  %2575 = vmatpush1.bf16.msra.mxu1 %v4300_v10  ;;  %v442_v9 = vld [vmem:[%s5116_s6 + $0x688] sm:$0xff] }
  0xae   : > { %2609 = vmatprep.subr.bf16.mxu0 %v4495_v11  ;;  %2650 = vmatprep.subr.bf16.mxu1 %v4497_v12  ;;  %v474_v10 = vld [vmem:[%s5116_s6 + $0x788] sm:$0xff]  ;;  %v4306_v11 = vcombine.low %v247_v62, %v279_v63  ;;  %v4308_v12 = vcombine.low %v248_v1, %v280_v2  ;;  %v4379_v62 = vcombine.high %v315_v56, %v347_v57  ;;  %v251_v1 = vld [vmem:[%s5116_s6 + $0x90] sm:$0xff] }
  0xaf   : > { %v4505_v14 = vcombine.high %v442_v9, %v474_v10  ;;  %v283_v2 = vld [vmem:[%s5116_s6 + $0x190] sm:$0xff] }
  0xb0   : > { %4544 = vmatmul.mubr.msk.bf16.vlgmr.msra.gmra.mxu0 %vm2105_vm0, %v5157_v43  ;;  %4545 = vmatmul.mubr.msk.bf16.vlgmr.msra.gmra.mxu1 %vm2105_vm0, %v5157_v43 }
  0xb1   : > { %2610 = vmatpush1.bf16.msra.mxu0 %v4494_v17  ;;  %2651 = vmatpush1.bf16.msra.mxu1 %v4496_v18  ;;  %v378_v17 = vld [vmem:[%s5116_s6 + $0x488] sm:$0xff] }
  0xb2   : > { %2611 = vmatprep.subr.bf16.mxu0 %v4431_v19  ;;  %2652 = vmatprep.subr.bf16.mxu1 %v4433_v20  ;;  %v410_v18 = vld [vmem:[%s5116_s6 + $0x588] sm:$0xff]  ;;  %v4502_v19 = vcombine.low %v441_v7, %v473_v8  ;;  %v4504_v20 = vcombine.low %v442_v9, %v474_v10  ;;  %v4315_v7 = vcombine.high %v251_v1, %v283_v2  ;;  %v445_v9 = vld [vmem:[%s5116_s6 + $0x6a0] sm:$0xff] }
  0xb3   : > { %2633 = vmatprep.mubr.bf16.mxu0 %v4975_v0  ;;  %2674 = vmatprep.mubr.bf16.mxu1 %v4975_v0  ;;  %v4441_v22 = vcombine.high %v378_v17, %v410_v18  ;;  %v477_v10 = vld [vmem:[%s5116_s6 + $0x7a0] sm:$0xff] }
  0xb5   : > { %2612 = vmatpush1.bf16.msra.mxu0 %v4430_v25  ;;  %2653 = vmatpush1.bf16.msra.mxu1 %v4432_v26  ;;  %v314_v25 = vld [vmem:[%s5116_s6 + $0x288] sm:$0xff] }
  0xb6   : > { %2613 = vmatprep.subr.bf16.mxu0 %v4367_v27  ;;  %2654 = vmatprep.subr.bf16.mxu1 %v4369_v28  ;;  %v346_v26 = vld [vmem:[%s5116_s6 + $0x388] sm:$0xff]  ;;  %v4438_v27 = vcombine.low %v377_v15, %v409_v16  ;;  %v4440_v28 = vcombine.low %v378_v17, %v410_v18  ;;  %v4511_v15 = vcombine.high %v445_v9, %v477_v10  ;;  %v381_v17 = vld [vmem:[%s5116_s6 + $0x4a0] sm:$0xff] }
  0xb7   : > { %v4377_v30 = vcombine.high %v314_v25, %v346_v26  ;;  %v413_v18 = vld [vmem:[%s5116_s6 + $0x5a0] sm:$0xff] }
  0xb9   : > { %2614 = vmatpush1.bf16.msra.mxu0 %v4366_v33  ;;  %2655 = vmatpush1.bf16.msra.mxu1 %v4368_v34  ;;  %v250_v33 = vld [vmem:[%s5116_s6 + $0x88] sm:$0xff] }
  0xba   : > { %2615 = vmatprep.subr.bf16.mxu0 %v4303_v35  ;;  %2656 = vmatprep.subr.bf16.mxu1 %v4305_v36  ;;  %v282_v34 = vld [vmem:[%s5116_s6 + $0x188] sm:$0xff]  ;;  %v4374_v35 = vcombine.low %v313_v23, %v345_v24  ;;  %v4376_v36 = vcombine.low %v314_v25, %v346_v26  ;;  %v4447_v23 = vcombine.high %v381_v17, %v413_v18  ;;  %v317_v25 = vld [vmem:[%s5116_s6 + $0x2a0] sm:$0xff] }
  0xbb   : > { %v4313_v38 = vcombine.high %v250_v33, %v282_v34  ;;  %v349_v26 = vld [vmem:[%s5116_s6 + $0x3a0] sm:$0xff] }
  0xbd   : > { %2616 = vmatpush1.bf16.msra.mxu0 %v4302_v41  ;;  %2657 = vmatpush1.bf16.msra.mxu1 %v4304_v42  ;;  %v444_v41 = vld [vmem:[%s5116_s6 + $0x698] sm:$0xff] }
  0xbe   : > { %2691 = vmatprep.subr.bf16.mxu0 %v4499_v44  ;;  %2732 = vmatprep.subr.bf16.mxu1 %v4501_v45  ;;  %v476_v42 = vld [vmem:[%s5116_s6 + $0x798] sm:$0xff]  ;;  %v4310_v44 = vcombine.low %v249_v31, %v281_v32  ;;  %v4312_v45 = vcombine.low %v250_v33, %v282_v34  ;;  %v4383_v31 = vcombine.high %v317_v25, %v349_v26  ;;  %v253_v33 = vld [vmem:[%s5116_s6 + $0xa0] sm:$0xff] }
  0xbf   : > { %v4509_v47 = vcombine.high %v444_v41, %v476_v42  ;;  %v285_v34 = vld [vmem:[%s5116_s6 + $0x1a0] sm:$0xff] }
  0xc0   : > { %4546 = vmatmul.mubr.msk.bf16.vlgmr.msra.gmra.mxu0 %vm2105_vm0, %v5157_v43  ;;  %4547 = vmatmul.mubr.msk.bf16.vlgmr.msra.gmra.mxu1 %vm2105_vm0, %v5157_v43 }
  0xc1   : > { %2692 = vmatpush1.bf16.msra.mxu0 %v4498_v50  ;;  %2733 = vmatpush1.bf16.msra.mxu1 %v4500_v51  ;;  %v380_v50 = vld [vmem:[%s5116_s6 + $0x498] sm:$0xff] }
  0xc2   : > { %2693 = vmatprep.subr.bf16.mxu0 %v4435_v52  ;;  %2734 = vmatprep.subr.bf16.mxu1 %v4437_v53  ;;  %v412_v51 = vld [vmem:[%s5116_s6 + $0x598] sm:$0xff]  ;;  %v4506_v52 = vcombine.low %v443_v39, %v475_v40  ;;  %v4508_v53 = vcombine.low %v444_v41, %v476_v42  ;;  %v447_v40 = vld [vmem:[%s5116_s6 + $0x6b0] sm:$0xff] }
  0xc3   : > { %2715 = vmatprep.mubr.bf16.mxu0 %v4975_v0  ;;  %2756 = vmatprep.mubr.bf16.mxu1 %v4975_v0  ;;  %v4445_v55 = vcombine.high %v380_v50, %v412_v51  ;;  %v479_v41 = vld [vmem:[%s5116_s6 + $0x7b0] sm:$0xff]  ;;  %v448_v42 = vld [vmem:[%s5116_s6 + $0x6b8] sm:$0xff] }
  0xc5   : > { %2694 = vmatpush1.bf16.msra.mxu0 %v4434_v58  ;;  %2735 = vmatpush1.bf16.msra.mxu1 %v4436_v59  ;;  %v316_v58 = vld [vmem:[%s5116_s6 + $0x298] sm:$0xff] }
  0xc6   : > { %2695 = vmatprep.subr.bf16.mxu0 %v4371_v60  ;;  %2736 = vmatprep.subr.bf16.mxu1 %v4373_v61  ;;  %v348_v59 = vld [vmem:[%s5116_s6 + $0x398] sm:$0xff]  ;;  %v4442_v60 = vcombine.low %v379_v48, %v411_v49  ;;  %v4444_v61 = vcombine.low %v380_v50, %v412_v51  ;;  %v383_v49 = vld [vmem:[%s5116_s6 + $0x4b0] sm:$0xff] }
  0xc7   : > { %v4381_v63 = vcombine.high %v316_v58, %v348_v59  ;;  %v415_v50 = vld [vmem:[%s5116_s6 + $0x5b0] sm:$0xff]  ;;  %v384_v51 = vld [vmem:[%s5116_s6 + $0x4b8] sm:$0xff] }
  0xc9   : > { %2696 = vmatpush1.bf16.msra.mxu0 %v4370_v3  ;;  %2737 = vmatpush1.bf16.msra.mxu1 %v4372_v4  ;;  %v252_v3 = vld [vmem:[%s5116_s6 + $0x98] sm:$0xff] }
  0xca   : > { %2697 = vmatprep.subr.bf16.mxu0 %v4307_v5  ;;  %2738 = vmatprep.subr.bf16.mxu1 %v4309_v6  ;;  %v284_v4 = vld [vmem:[%s5116_s6 + $0x198] sm:$0xff]  ;;  %v4378_v5 = vcombine.low %v315_v56, %v347_v57  ;;  %v4380_v6 = vcombine.low %v316_v58, %v348_v59  ;;  %v319_v57 = vld [vmem:[%s5116_s6 + $0x2b0] sm:$0xff]  ;;  %v5384_v59 = vld [vmem:[%s5780_s0] sm:$0x1] }
  0xcb   : > { %v4317_v8 = vcombine.high %v252_v3, %v284_v4  ;;  %v351_v58 = vld [vmem:[%s5116_s6 + $0x3b0] sm:$0xff] }
  0xcd   : > { %2698 = vmatpush1.bf16.msra.mxu0 %v4306_v11  ;;  %2739 = vmatpush1.bf16.msra.mxu1 %v4308_v12  ;;  %v446_v11 = vld [vmem:[%s5116_s6 + $0x6a8] sm:$0xff] }
  0xce   : > { %2773 = vmatprep.subr.bf16.mxu0 %v4503_v13  ;;  %2814 = vmatprep.subr.bf16.mxu1 %v4505_v14  ;;  %v478_v12 = vld [vmem:[%s5116_s6 + $0x7a8] sm:$0xff]  ;;  %v4314_v13 = vcombine.low %v251_v1, %v283_v2  ;;  %v4316_v14 = vcombine.low %v252_v3, %v284_v4  ;;  %v4387_v1 = vcombine.high %v319_v57, %v351_v58  ;;  %v255_v3 = vld [vmem:[%s5116_s6 + $0xb0] sm:$0xff] }
  0xcf   : > { %v4513_v16 = vcombine.high %v446_v11, %v478_v12  ;;  %v287_v4 = vld [vmem:[%s5116_s6 + $0x1b0] sm:$0xff] }
  0xd0   : > { %4548 = vmatmul.mubr.msk.bf16.vlgmr.msra.gmra.mxu0 %vm2105_vm0, %v5157_v43  ;;  %4549 = vmatmul.mubr.msk.bf16.vlgmr.msra.gmra.mxu1 %vm2105_vm0, %v5157_v43 }
  0xd1   : > { %2774 = vmatpush1.bf16.msra.mxu0 %v4502_v19  ;;  %2815 = vmatpush1.bf16.msra.mxu1 %v4504_v20  ;;  %v382_v19 = vld [vmem:[%s5116_s6 + $0x4a8] sm:$0xff] }
  0xd2   : > { %2775 = vmatprep.subr.bf16.mxu0 %v4439_v21  ;;  %2816 = vmatprep.subr.bf16.mxu1 %v4441_v22  ;;  %v414_v20 = vld [vmem:[%s5116_s6 + $0x5a8] sm:$0xff]  ;;  %v4510_v21 = vcombine.low %v445_v9, %v477_v10  ;;  %v4512_v22 = vcombine.low %v446_v11, %v478_v12  ;;  %v4323_v9 = vcombine.high %v255_v3, %v287_v4  ;;  %v449_v11 = vld [vmem:[%s5116_s6 + $0x6c0] sm:$0xff] }
  0xd3   : > { %2797 = vmatprep.mubr.bf16.mxu0 %v4975_v0  ;;  %2838 = vmatprep.mubr.bf16.mxu1 %v4975_v0  ;;  %v4449_v24 = vcombine.high %v382_v19, %v414_v20  ;;  %v481_v12 = vld [vmem:[%s5116_s6 + $0x7c0] sm:$0xff] }
  0xd5   : > { %2776 = vmatpush1.bf16.msra.mxu0 %v4438_v27  ;;  %2817 = vmatpush1.bf16.msra.mxu1 %v4440_v28  ;;  %v318_v27 = vld [vmem:[%s5116_s6 + $0x2a8] sm:$0xff] }
  0xd6   : > { %2777 = vmatprep.subr.bf16.mxu0 %v4375_v29  ;;  %2818 = vmatprep.subr.bf16.mxu1 %v4377_v30  ;;  %v350_v28 = vld [vmem:[%s5116_s6 + $0x3a8] sm:$0xff]  ;;  %v4446_v29 = vcombine.low %v381_v17, %v413_v18  ;;  %v4448_v30 = vcombine.low %v382_v19, %v414_v20  ;;  %v4519_v17 = vcombine.high %v449_v11, %v481_v12  ;;  %v385_v19 = vld [vmem:[%s5116_s6 + $0x4c0] sm:$0xff] }
  0xd7   : > { %v4385_v32 = vcombine.high %v318_v27, %v350_v28  ;;  %v417_v20 = vld [vmem:[%s5116_s6 + $0x5c0] sm:$0xff] }
  0xd9   : > { %2778 = vmatpush1.bf16.msra.mxu0 %v4374_v35  ;;  %2819 = vmatpush1.bf16.msra.mxu1 %v4376_v36  ;;  %v254_v35 = vld [vmem:[%s5116_s6 + $0xa8] sm:$0xff] }
  0xda   : > { %2779 = vmatprep.subr.bf16.mxu0 %v4311_v37  ;;  %2820 = vmatprep.subr.bf16.mxu1 %v4313_v38  ;;  %v286_v36 = vld [vmem:[%s5116_s6 + $0x1a8] sm:$0xff]  ;;  %v4384_v37 = vcombine.low %v318_v27, %v350_v28  ;;  %v4319_v38 = vcombine.high %v253_v33, %v285_v34  ;;  %v321_v27 = vld [vmem:[%s5116_s6 + $0x2c0] sm:$0xff] }
  0xdb   : > { %v4321_v39 = vcombine.high %v254_v35, %v286_v36  ;;  %v353_v28 = vld [vmem:[%s5116_s6 + $0x3c0] sm:$0xff] }
  0xdd   : > { %2780 = vmatpush1.bf16.msra.mxu0 %v4310_v44  ;;  %2821 = vmatpush1.bf16.msra.mxu1 %v4312_v45  ;;  %v480_v44 = vld [vmem:[%s5116_s6 + $0x7b8] sm:$0xff]  ;;  %v4318_v45 = vcombine.low %v253_v33, %v285_v34  ;;  %v4391_v34 = vcombine.high %v321_v27, %v353_v28 }
  0xde   : > { %2855 = vmatprep.subr.bf16.mxu0 %v4507_v46  ;;  %2896 = vmatprep.subr.bf16.mxu1 %v4509_v47  ;;  %v4320_v46 = vcombine.low %v254_v35, %v286_v36  ;;  %v4515_v47 = vcombine.high %v447_v40, %v479_v41  ;;  %v4517_v48 = vcombine.high %v448_v42, %v480_v44  ;;  %v257_v36 = vld [vmem:[%s5116_s6 + $0xc0] sm:$0xff] }
  0xe0   : > { %4550 = vmatmul.mubr.msk.bf16.vlgmr.msra.gmra.mxu0 %vm2105_vm0, %v5157_v43  ;;  %4551 = vmatmul.mubr.msk.bf16.vlgmr.msra.gmra.mxu1 %vm2105_vm0, %v5157_v43 }
  0xe1   : > { %2856 = vmatpush1.bf16.msra.mxu0 %v4506_v52  ;;  %2897 = vmatpush1.bf16.msra.mxu1 %v4508_v53  ;;  %v416_v52 = vld [vmem:[%s5116_s6 + $0x5b8] sm:$0xff]  ;;  %v4514_v53 = vcombine.low %v447_v40, %v479_v41 }
  0xe2   : > { %2857 = vmatprep.subr.bf16.mxu0 %v4443_v54  ;;  %2898 = vmatprep.subr.bf16.mxu1 %v4445_v55  ;;  %v4516_v54 = vcombine.low %v448_v42, %v480_v44  ;;  %v4451_v55 = vcombine.high %v383_v49, %v415_v50  ;;  %v4453_v56 = vcombine.high %v384_v51, %v416_v52 }
  0xe3   : > { %2879 = vmatprep.mubr.bf16.mxu0 %v4975_v0  ;;  %2920 = vmatprep.mubr.bf16.mxu1 %v4975_v0 }
  0xe5   : > { %2858 = vmatpush1.bf16.msra.mxu0 %v4442_v60  ;;  %2899 = vmatpush1.bf16.msra.mxu1 %v4444_v61  ;;  %v320_v60 = vld [vmem:[%s5116_s6 + $0x2b8] sm:$0xff] }
  0xe6   : > { %2859 = vmatprep.subr.bf16.mxu0 %v4379_v62  ;;  %2900 = vmatprep.subr.bf16.mxu1 %v4381_v63  ;;  %v352_v61 = vld [vmem:[%s5116_s6 + $0x3b8] sm:$0xff]  ;;  %v4450_v62 = vcombine.low %v383_v49, %v415_v50  ;;  %v4452_v63 = vcombine.low %v384_v51, %v416_v52  ;;  %v5430_v52 = vld [vmem:[%s5122_s29] sm:$0xff] }
  0xe7   : > { %v4389_v2 = vcombine.high %v320_v60, %v352_v61 }
  0xe9   : > { %2860 = vmatpush1.bf16.msra.mxu0 %v4378_v5  ;;  %2901 = vmatpush1.bf16.msra.mxu1 %v4380_v6  ;;  %v256_v5 = vld [vmem:[%s5116_s6 + $0xb8] sm:$0xff] }
  0xea   : > { %2861 = vmatprep.subr.bf16.mxu0 %v4315_v7  ;;  %2902 = vmatprep.subr.bf16.mxu1 %v4317_v8  ;;  %v288_v6 = vld [vmem:[%s5116_s6 + $0x1b8] sm:$0xff]  ;;  %v4386_v7 = vcombine.low %v319_v57, %v351_v58  ;;  %v4388_v8 = vcombine.low %v320_v60, %v352_v61  ;;  %v387_v57 = vld [vmem:[%s5116_s6 + $0x4d0] sm:$0xff] }
  0xeb   : > { %v4325_v10 = vcombine.high %v256_v5, %v288_v6  ;;  %v419_v58 = vld [vmem:[%s5116_s6 + $0x5d0] sm:$0xff]  ;;  %v388_v61 = vld [vmem:[%s5116_s6 + $0x4d8] sm:$0xff] }
  0xed   : > { %2862 = vmatpush1.bf16.msra.mxu0 %v4314_v13  ;;  %2903 = vmatpush1.bf16.msra.mxu1 %v4316_v14  ;;  %v450_v13 = vld [vmem:[%s5116_s6 + $0x6c8] sm:$0xff] }
  0xee   : > { %2937 = vmatprep.subr.bf16.mxu0 %v4511_v15  ;;  %2978 = vmatprep.subr.bf16.mxu1 %v4513_v16  ;;  %v482_v14 = vld [vmem:[%s5116_s6 + $0x7c8] sm:$0xff]  ;;  %v4322_v15 = vcombine.low %v255_v3, %v287_v4  ;;  %v4324_v16 = vcombine.low %v256_v5, %v288_v6  ;;  %v4459_v4 = vcombine.high %v387_v57, %v419_v58 }
  0xef   : > { %v4521_v18 = vcombine.high %v450_v13, %v482_v14 }
  0xf0   : > { %4552 = vmatmul.mubr.msk.bf16.vlgmr.msra.gmra.mxu0 %vm2105_vm0, %v5157_v43  ;;  %4553 = vmatmul.mubr.msk.bf16.vlgmr.msra.gmra.mxu1 %vm2105_vm0, %v5157_v43  ;;  %v4382_v43 = vcombine.low %v317_v25, %v349_v26  ;;  %v4455_v25 = vcombine.high %v385_v19, %v417_v20 }
  0xf1   : > { %2938 = vmatpush1.bf16.msra.mxu0 %v4510_v21  ;;  %2979 = vmatpush1.bf16.msra.mxu1 %v4512_v22  ;;  %v386_v21 = vld [vmem:[%s5116_s6 + $0x4c8] sm:$0xff] }
  0xf2   : > { %2939 = vmatprep.subr.bf16.mxu0 %v4447_v23  ;;  %2980 = vmatprep.subr.bf16.mxu1 %v4449_v24  ;;  %v418_v22 = vld [vmem:[%s5116_s6 + $0x5c8] sm:$0xff]  ;;  %v4518_v23 = vcombine.low %v449_v11, %v481_v12  ;;  %v4520_v24 = vcombine.low %v450_v13, %v482_v14  ;;  %v324_v11 = vld [vmem:[%s5116_s6 + $0x2d8] sm:$0xff] }
  0xf3   : > { %2961 = vmatprep.mubr.bf16.mxu0 %v4975_v0  ;;  %3002 = vmatprep.mubr.bf16.mxu1 %v4975_v0  ;;  %v4457_v26 = vcombine.high %v386_v21, %v418_v22  ;;  %v4456_v33 = vcombine.low %v386_v21, %v418_v22  ;;  %v356_v12 = vld [vmem:[%s5116_s6 + $0x3d8] sm:$0xff] }
  0xf5   : > { %2940 = vmatpush1.bf16.msra.mxu0 %v4446_v29  ;;  %2981 = vmatpush1.bf16.msra.mxu1 %v4448_v30  ;;  %v322_v29 = vld [vmem:[%s5116_s6 + $0x2c8] sm:$0xff] }
  0xf6   : > { %2941 = vmatprep.subr.bf16.mxu0 %v4383_v31  ;;  %2982 = vmatprep.subr.bf16.mxu1 %v4385_v32  ;;  %v354_v30 = vld [vmem:[%s5116_s6 + $0x3c8] sm:$0xff]  ;;  %v4454_v31 = vcombine.low %v385_v19, %v417_v20  ;;  %v505_v32 = vlaneseq }
  0xf7   : > { %v4393_v35 = vcombine.high %v322_v29, %v354_v30  ;;  %v4392_v41 = vcombine.low %v322_v29, %v354_v30  ;;  %v260_v29 = vld [vmem:[%s5116_s6 + $0xd8] sm:$0xff] }
  0xf8   : > { %v5420_v40 = vshrl.u32 %v505_v32, 7  ;;  %v292_v30 = vld [vmem:[%s5116_s6 + $0x1d8] sm:$0xff] }
  0xf9   : > { %2942 = vmatpush1.bf16.msra.mxu0 %v4382_v43  ;;  %2983 = vmatpush1.bf16.msra.mxu1 %v4384_v37  ;;  %v289_v43 = vld [vmem:[%s5116_s6 + $0x1c0] sm:$0xff]  ;;  %v258_v37 = vld [vmem:[%s5116_s6 + $0xc8] sm:$0xff] }
  0xfa   : > { %2943 = vmatprep.subr.bf16.mxu0 %v4319_v38  ;;  %2984 = vmatprep.subr.bf16.mxu1 %v4321_v39  ;;  %v290_v38 = vld [vmem:[%s5116_s6 + $0x1c8] sm:$0xff]  ;;  %v4390_v39 = vcombine.low %v321_v27, %v353_v28  ;;  %v4327_v42 = vcombine.high %v257_v36, %v289_v43  ;;  %v4326_v49 = vcombine.low %v257_v36, %v289_v43  ;;  %v5427_v50 = vsub.s32 0, %v5420_v40 }
  0xfb   : > { %v4329_v44 = vcombine.high %v258_v37, %v290_v38  ;;  %v4328_v51 = vcombine.low %v258_v37, %v290_v38  ;;  %v5441_v60 = vsub.s32 3, %v5420_v40  ;;  %v4396_v37 = vcombine.low %v324_v11, %v356_v12 }
  0xfd   : > { %2944 = vmatpush1.bf16.msra.mxu0 %v4318_v45  ;;  %2985 = vmatpush1.bf16.msra.mxu1 %v4320_v46  ;;  %v451_v45 = vld [vmem:[%s5116_s6 + $0x6d0] sm:$0xff] }
  0xfe   : > { %3019 = vmatprep.subr.bf16.mxu0 %v4515_v47  ;;  %3060 = vmatprep.subr.bf16.mxu1 %v4517_v48  ;;  %v483_v46 = vld [vmem:[%s5116_s6 + $0x7d0] sm:$0xff]  ;;  %v452_v47 = vld [vmem:[%s5116_s6 + $0x6d8] sm:$0xff] }
  0xff   : > { %v484_v48 = vld [vmem:[%s5116_s6 + $0x7d8] sm:$0xff] }
 0x100   : > { %4554 = vmatmul.mubr.msk.bf16.vlgmr.msra.gmra.mxu0 %vm2105_vm0, %v5384_v59  ;;  %4555 = vmatmul.mubr.msk.bf16.vlgmr.msra.gmra.mxu1 %vm2105_vm0, %v5384_v59  ;;  %v4524_v3 = vcombine.low %v452_v47, %v484_v48 }
 0x101   : > { %3020 = vmatpush1.bf16.msra.mxu0 %v4514_v53  ;;  %3061 = vmatpush1.bf16.msra.mxu1 %v4516_v54  ;;  %v5433_v53 = vsub.s32 2, %v5420_v40  ;;  %v4523_v54 = vcombine.high %v451_v45, %v483_v46 }
 0x102   : > { %3021 = vmatprep.subr.bf16.mxu0 %v4451_v55  ;;  %3062 = vmatprep.subr.bf16.mxu1 %v4453_v56  ;;  %v4525_v55 = vcombine.high %v452_v47, %v484_v48  ;;  %v5436_v56 = vsub.s32 1, %v5420_v40  ;;  %v454_v47 = vld [vmem:[%s5116_s6 + $0x6e8] sm:$0xff] }
 0x103   : > { %3043 = vmatprep.mubr.bf16.mxu0 %v4975_v0  ;;  %3084 = vmatprep.mubr.bf16.mxu1 %v4975_v0  ;;  %v486_v48 = vld [vmem:[%s5116_s6 + $0x7e8] sm:$0xff] }
 0x104   : > { %v512_v5 = vrot.slane %v5430_v52, %v5436_v56 }
 0x105   : > { %3022 = vmatpush1.bf16.msra.mxu0 %v4450_v62  ;;  %3063 = vmatpush1.bf16.msra.mxu1 %v4452_v63  ;;  %v420_v62 = vld [vmem:[%s5116_s6 + $0x5d8] sm:$0xff]  ;;  %v508_v63 = vrot.slane %v5430_v52, %v5427_v50 }
 0x106   : > { %3023 = vmatprep.subr.bf16.mxu0 %v4387_v1  ;;  %3064 = vmatprep.subr.bf16.mxu1 %v4389_v2  ;;  %v4522_v1 = vcombine.low %v451_v45, %v483_v46  ;;  %v516_v2 = vrot.slane %v5430_v52, %v5433_v53  ;;  %v4461_v6 = vcombine.high %v388_v61, %v420_v62  ;;  %v485_v45 = vld [vmem:[%s5116_s6 + $0x7e0] sm:$0xff] }
 0x109   : > { %3024 = vmatpush1.bf16.msra.mxu0 %v4386_v7  ;;  %3065 = vmatpush1.bf16.msra.mxu1 %v4388_v8  ;;  %v323_v7 = vld [vmem:[%s5116_s6 + $0x2d0] sm:$0xff] }
 0x10a   : > { %3025 = vmatprep.subr.bf16.mxu0 %v4323_v9  ;;  %3066 = vmatprep.subr.bf16.mxu1 %v4325_v10  ;;  %v355_v8 = vld [vmem:[%s5116_s6 + $0x3d0] sm:$0xff]  ;;  %v520_v10 = vrot.slane %v5430_v52, %v5441_v60 }
 0x10b   : > { %v4395_v19 = vcombine.high %v323_v7, %v355_v8 }
 0x10d   : > { %3026 = vmatpush1.bf16.msra.mxu0 %v4322_v15  ;;  %3067 = vmatpush1.bf16.msra.mxu1 %v4324_v16  ;;  %v4458_v15 = vcombine.low %v387_v57, %v419_v58  ;;  %v4529_v58 = vcombine.high %v454_v47, %v486_v48 }
 0x10e   : > { %3101 = vmatprep.subr.bf16.mxu0 %v4519_v17  ;;  %3142 = vmatprep.subr.bf16.mxu1 %v4521_v18  ;;  %v4460_v18 = vcombine.low %v388_v61, %v420_v62  ;;  %v5478_v61 = vsub.s32 5, %v5420_v40  ;;  %v389_v62 = vld [vmem:[%s5116_s6 + $0x4e0] sm:$0xff] }
 0x110   : > { %4556 = vmatmul.mubr.msk.bf16.vlgmr.msra.gmra.mxu0 %vm2105_vm0, %v5384_v59  ;;  %4557 = vmatmul.mubr.msk.bf16.vlgmr.msra.gmra.mxu1 %vm2105_vm0, %v5384_v59 }
 0x111   : > { %3102 = vmatpush1.bf16.msra.mxu0 %v4518_v23  ;;  %3143 = vmatpush1.bf16.msra.mxu1 %v4520_v24  ;;  %v4397_v23 = vcombine.high %v324_v11, %v356_v12  ;;  %v259_v24 = vld [vmem:[%s5116_s6 + $0xd0] sm:$0xff]  ;;  %v5494_v11 = vld [vmem:[%s5116_s6 + $0x2e0] sm:$0xff] }
 0x112   : > { %3103 = vmatprep.subr.bf16.mxu0 %v4455_v25  ;;  %3144 = vmatprep.subr.bf16.mxu1 %v4457_v26  ;;  %v291_v25 = vld [vmem:[%s5116_s6 + $0x1d0] sm:$0xff]  ;;  %v357_v12 = vld [vmem:[%s5116_s6 + $0x3e0] sm:$0xff] }
 0x113   : > { %3125 = vmatprep.mubr.bf16.mxu0 %v4975_v0  ;;  %3166 = vmatprep.mubr.bf16.mxu1 %v4975_v0  ;;  %v4331_v38 = vcombine.high %v259_v24, %v291_v25 }
 0x115   : > { %3104 = vmatpush1.bf16.msra.mxu0 %v4454_v31  ;;  %3145 = vmatpush1.bf16.msra.mxu1 %v4456_v33 }
 0x116   : > { %3105 = vmatprep.subr.bf16.mxu0 %v4391_v34  ;;  %3146 = vmatprep.subr.bf16.mxu1 %v4393_v35  ;;  %v4394_v34 = vcombine.low %v323_v7, %v355_v8  ;;  %v4528_v7 = vcombine.low %v454_v47, %v486_v48 }
 0x119   : > { %3106 = vmatpush1.bf16.msra.mxu0 %v4390_v39  ;;  %3147 = vmatpush1.bf16.msra.mxu1 %v4392_v41 }
 0x11a   : > { %3107 = vmatprep.subr.bf16.mxu0 %v4327_v42  ;;  %3148 = vmatprep.subr.bf16.mxu1 %v4329_v44  ;;  %v4333_v42 = vcombine.high %v260_v29, %v292_v30  ;;  %v453_v44 = vld [vmem:[%s5116_s6 + $0x6e0] sm:$0xff] }
 0x11b   : > { %v4527_v57 = vcombine.high %v453_v44, %v485_v45 }
 0x11d   : > { %3108 = vmatpush1.bf16.msra.mxu0 %v4326_v49  ;;  %3149 = vmatpush1.bf16.msra.mxu1 %v4328_v51  ;;  %v4330_v49 = vcombine.low %v259_v24, %v291_v25  ;;  %v5472_v51 = vsub.s32 4, %v5420_v40 }
 0x11e   : > { %3183 = vmatprep.subr.bf16.mxu0 %v4523_v54  ;;  %3224 = vmatprep.subr.bf16.mxu1 %v4525_v55  ;;  %v4332_v54 = vcombine.low %v260_v29, %v292_v30  ;;  %v5475_v55 = vsub.s32 6, %v5420_v40 }
 0x120   : > { %v2143_v9 = vpop.f32.mrf.mxu0  ;;  %4558 = vmatmul.mubr.msk.bf16.vlgmr.msra.gmra.mxu0 %vm2105_vm0, %v5384_v59  ;;  %v2184_v14 = vpop.f32.mrf.mxu1  ;;  %4559 = vmatmul.mubr.msk.bf16.vlgmr.msra.gmra.mxu1 %vm2105_vm0, %v5384_v59 }
 0x121   : > { %v2144_v13 = vadd.f32 %v2143_v9, %v508_v63  ;;  %3184 = vmatpush1.bf16.msra.mxu0 %v4522_v1  ;;  %v2185_v16 = vadd.f32 %v2184_v14, %v516_v2  ;;  %3225 = vmatpush1.bf16.msra.mxu1 %v4524_v3  ;;  %v421_v63 = vld [vmem:[%s5116_s6 + $0x5e0] sm:$0xff]  ;;  %v5483_v1 = vsub.s32 7, %v5420_v40  ;;  %v390_v2 = vld [vmem:[%s5116_s6 + $0x4e8] sm:$0xff]  ;;  %v528_v9 = vrot.slane %v5430_v52, %v5478_v61 }
 0x122   : > { %v2145_v17 = vpop.f32.mrf.mxu0  ;;  %3185 = vmatprep.subr.bf16.mxu0 %v4459_v4  ;;  %v2186_v22 = vpop.f32.mrf.mxu1  ;;  %3226 = vmatprep.subr.bf16.mxu1 %v4461_v6  ;;  %v422_v3 = vld [vmem:[%s5116_s6 + $0x5e8] sm:$0xff]  ;;  %v524_v4 = vrot.slane %v5430_v52, %v5472_v51  ;;  %v532_v6 = vrot.slane %v5430_v52, %v5475_v55  ;;  %v4463_v8 = vcombine.high %v389_v62, %v421_v63 }
 0x123   : > { %v3421_v20 = vsub.f32 0.0, %v2144_v13  ;;  %v2146_v21 = vadd.f32 %v2145_v17, %v512_v5  ;;  %3207 = vmatprep.mubr.bf16.mxu0 %v4975_v0  ;;  %v3423_v26 = vsub.f32 0.0, %v2185_v16  ;;  %v2187_v27 = vadd.f32 %v2186_v22, %v520_v10  ;;  %3248 = vmatprep.mubr.bf16.mxu1 %v4975_v0  ;;  %v358_v16 = vld [vmem:[%s5116_s6 + $0x3e8] sm:$0xff] }
 0x124   : > { %v2147_v28 = vpop.f32.mrf.mxu0  ;;  %v2188_v33 = vpop.f32.mrf.mxu1  ;;  %v4526_v5 = vcombine.low %v453_v44, %v485_v45  ;;  %v4465_v10 = vcombine.high %v390_v2, %v422_v3  ;;  %v536_v14 = vrot.slane %v5430_v52, %v5483_v1  ;;  %v4464_v22 = vcombine.low %v390_v2, %v422_v3  ;;  %v456_v3 = vld [vmem:[%s5116_s6 + $0x6f8] sm:$0xff] }
 0x125   : > { %v3485_v31 = vmul.f32 1.442695, %v3421_v20  ;;  %v3422_v32 = vsub.f32 0.0, %v2146_v21  ;;  %3186 = vmatpush1.bf16.msra.mxu0 %v4458_v15  ;;  %v3489_v35 = vmul.f32 1.442695, %v3423_v26  ;;  %v3424_v36 = vsub.f32 0.0, %v2187_v27  ;;  %3227 = vmatpush1.bf16.msra.mxu1 %v4460_v18 }
 0x126   : > { %v2148_v43 = vpop.f32.mrf.mxu0  ;;  %3187 = vmatprep.subr.bf16.mxu0 %v4395_v19  ;;  %v2189_v41 = vpop.f32.mrf.mxu1  ;;  %3228 = vmatprep.subr.bf16.mxu1 %v4397_v23  ;;  %v5502_v15 = vld [vmem:[%s5116_s6 + $0x2e8] sm:$0xff]  ;;  %v4462_v19 = vcombine.low %v389_v62, %v421_v63  ;;  %v4399_v52 = vcombine.high %v5494_v11, %v357_v12  ;;  %v261_v27 = vld [vmem:[%s5116_s6 + $0xe0] sm:$0xff]  ;;  %v487_v62 = vld [vmem:[%s5116_s6 + $0x7f0] sm:$0xff] }
 0x127   : > { %4618 = vpow2.f32 %v3485_v31  ;;  %v3487_v39 = vmul.f32 1.442695, %v3422_v32  ;;  %v3491_v46 = vmul.f32 1.442695, %v3424_v36  ;;  %v4401_v26 = vcombine.high %v5502_v15, %v358_v16  ;;  %v293_v28 = vld [vmem:[%s5116_s6 + $0x1e0] sm:$0xff]  ;;  %v262_v33 = vld [vmem:[%s5116_s6 + $0xe8] sm:$0xff] }
 0x128   : > { %4620 = vpow2.f32 %v3489_v35  ;;  %v4400_v45 = vcombine.low %v5502_v15, %v358_v16  ;;  %v5530_v15 = vld [vmem:[%s5116_s6 + $0x5f8] sm:$0xff]  ;;  %v4976_v16 = vmov 1983009808  }
 0x129   : > { %4622 = vpow2.f32 %v3487_v39  ;;  %3188 = vmatpush1.bf16.msra.mxu0 %v4394_v34  ;;  %3229 = vmatpush1.bf16.msra.mxu1 %v4396_v37  ;;  %v294_v34 = vld [vmem:[%s5116_s6 + $0x1e8] sm:$0xff] }
 0x12a   : > { %4624 = vpow2.f32 %v3491_v46  ;;  %3189 = vmatprep.subr.bf16.mxu0 %v4331_v38  ;;  %3230 = vmatprep.subr.bf16.mxu1 %v4333_v42  ;;  %v4398_v38 = vcombine.low %v5494_v11, %v357_v12  ;;  %v4335_v46 = vcombine.high %v261_v27, %v293_v28  ;;  %v391_v12 = vld [vmem:[%s5116_s6 + $0x4f0] sm:$0xff] }
 0x12d   : > { %3190 = vmatpush1.bf16.msra.mxu0 %v4330_v49  ;;  %3231 = vmatpush1.bf16.msra.mxu1 %v4332_v54 }
 0x12e   : > { %3265 = vmatprep.subr.bf16.mxu0 %v4527_v57  ;;  %3306 = vmatprep.subr.bf16.mxu1 %v4529_v58  ;;  %v4337_v57 = vcombine.high %v262_v33, %v294_v34  ;;  %v455_v58 = vld [vmem:[%s5116_s6 + $0x6f0] sm:$0xff] }
 0x130   : > { %v2225_v13 = vpop.f32.mrf.mxu0  ;;  %4560 = vmatmul.mubr.msk.bf16.vlgmr.msra.gmra.mxu0 %vm2105_vm0, %v5384_v59  ;;  %v2266_v18 = vpop.f32.mrf.mxu1  ;;  %4561 = vmatmul.mubr.msk.bf16.vlgmr.msra.gmra.mxu1 %vm2105_vm0, %v5384_v59 }
 0x131   : > { %v2226_v17 = vadd.f32 %v2225_v13, %v524_v4  ;;  %3266 = vmatpush1.bf16.msra.mxu0 %v4526_v5  ;;  %v2267_v20 = vadd.f32 %v2266_v18, %v532_v6  ;;  %3307 = vmatpush1.bf16.msra.mxu1 %v4528_v7  ;;  %v488_v4 = vld [vmem:[%s5116_s6 + $0x7f8] sm:$0xff]  ;;  %v4334_v6 = vcombine.low %v261_v27, %v293_v28  ;;  %v423_v13 = vld [vmem:[%s5116_s6 + $0x5f0] sm:$0xff] }
 0x132   : > { %v2227_v21 = vpop.f32.mrf.mxu0  ;;  %3267 = vmatprep.subr.bf16.mxu0 %v4463_v8  ;;  %v2268_v25 = vpop.f32.mrf.mxu1  ;;  %3308 = vmatprep.subr.bf16.mxu1 %v4465_v10  ;;  %v4336_v7 = vcombine.low %v262_v33, %v294_v34  ;;  %v4531_v10 = vcombine.high %v455_v58, %v487_v62  ;;  %v4533_v11 = vcombine.high %v456_v3, %v488_v4  ;;  %v5556_v28 = vld [vmem:[%s5116_s6 + $0x2f8] sm:$0xff] }
 0x133   : > { %v3425_v23 = vsub.f32 0.0, %v2226_v17  ;;  %v2228_v24 = vadd.f32 %v2227_v21, %v528_v9  ;;  %3289 = vmatprep.mubr.bf16.mxu0 %v4975_v0  ;;  %v3427_v30 = vsub.f32 0.0, %v2267_v20  ;;  %v2269_v31 = vadd.f32 %v2268_v25, %v536_v14  ;;  %3330 = vmatprep.mubr.bf16.mxu1 %v4975_v0  ;;  %v5522_v9 = vld [vmem:[%s5122_s29 + $0x8] sm:$0xff]  ;;  %v5527_v14 = vld [vmem:[%s5116_s6 + $0x4f8] sm:$0xff]  ;;  %v5548_v25 = vld [vmem:[%s5116_s6 + $0x3f0] sm:$0xff] }
 0x134   : > { %v4619_v29 = vpop.eup %4618  ;;  %v2229_v32 = vpop.f32.mrf.mxu0  ;;  %v3872_v17 = vunpack.c.l.s4 %v4976_v16  ;;  %v540_v18 = vrot.slane %v5522_v9, %v5427_v50  ;;  %v548_v20 = vrot.slane %v5522_v9, %v5433_v53  ;;  %v4532_v21 = vcombine.low %v456_v3, %v488_v4 }
 0x135   : > { %v4621_v35 = vpop.eup %4620  ;;  %v3613_v36 = vadd.f32 1.0, %v4619_v29  ;;  %v3426_v43 = vsub.f32 0.0, %v2228_v24  ;;  %v2270_v37 = vpop.f32.mrf.mxu1  ;;  %3268 = vmatpush1.bf16.msra.mxu0 %v4462_v19  ;;  %v3428_v42 = vsub.f32 0.0, %v2269_v31  ;;  %3309 = vmatpush1.bf16.msra.mxu1 %v4464_v22  ;;  %v3493_v49 = vmul.f32 1.442695, %v3425_v23  ;;  %v5545_v24 = vld [vmem:[%s5116_s6 + $0x2f0] sm:$0xff] }
 0x136   : > { %v4623_v39 = vpop.eup %4622  ;;  %v3615_v41 = vadd.f32 1.0, %v4621_v35  ;;  %v2230_v44 = vpop.f32.mrf.mxu0  ;;  %3269 = vmatprep.subr.bf16.mxu0 %v4399_v52  ;;  %3310 = vmatprep.subr.bf16.mxu1 %v4401_v26  ;;  %v3497_v2 = vmul.f32 1.442695, %v3427_v30  ;;  %v4530_v19 = vcombine.low %v455_v58, %v487_v62  ;;  %v4467_v22 = vcombine.high %v391_v12, %v423_v13  ;;  %v5559_v29 = vld [vmem:[%s5116_s6 + $0x3f8] sm:$0xff] }
 0x137   : > { %v4625_v47 = vpop.eup %4624  ;;  %4626 = vrcp.f32 %v3613_v36  ;;  %v3614_v48 = vadd.f32 1.0, %v4623_v39  ;;  %v2271_v54 = vpop.f32.mrf.mxu1  ;;  %v3495_v5 = vmul.f32 1.442695, %v3426_v43  ;;  %v3499_v8 = vmul.f32 1.442695, %v3428_v42  ;;  %v263_v42 = vld [vmem:[%s5116_s6 + $0xf0] sm:$0xff] }
 0x138   : > { %4628 = vrcp.f32 %v3615_v41  ;;  %v3616_v63 = vadd.f32 1.0, %v4625_v47  ;;  %v544_v52 = vrot.slane %v5522_v9, %v5436_v56  ;;  %v4469_v23 = vcombine.high %v5527_v14, %v5530_v15  ;;  %v295_v44 = vld [vmem:[%s5116_s6 + $0x1f0] sm:$0xff]  ;;  %v296_v54 = vld [vmem:[%s5116_s6 + $0x1f8] sm:$0xff] }
 0x139   : > { %4630 = vrcp.f32 %v3614_v48  ;;  %3270 = vmatpush1.bf16.msra.mxu0 %v4398_v38  ;;  %3311 = vmatpush1.bf16.msra.mxu1 %v4400_v45  ;;  %v552_v27 = vrot.slane %v5522_v9, %v5441_v60  ;;  %v3873_v30 = vunpack.c.0.s8 %v3872_v17  ;;  %v4466_v33 = vcombine.low %v391_v12, %v423_v13 }
 0x13a   : > { %4632 = vrcp.f32 %v3616_v63  ;;  %3271 = vmatprep.subr.bf16.mxu0 %v4335_v46  ;;  %3312 = vmatprep.subr.bf16.mxu1 %v4337_v57  ;;  %v4468_v36 = vcombine.low %v5527_v14, %v5530_v15  ;;  %v4403_v43 = vcombine.high %v5545_v24, %v5548_v25  ;;  %v4405_v41 = vcombine.high %v5556_v28, %v5559_v29 }
 0x13b   : > { %4634 = vpow2.f32 %v3493_v49  ;;  %v264_v49 = vld [vmem:[%s5116_s6 + $0xf8] sm:$0xff]  ;;  %v5581_v58 = vsub.s32 %v3873_v30, %v5420_v40  ;;  %v4402_v3 = vcombine.low %v5545_v24, %v5548_v25  ;;  %v560_v30 = vrot.slane %v5522_v9, %v5478_v61 }
 0x13c   : > { %4636 = vpow2.f32 %v3497_v2  ;;  %v4341_v13 = vcombine.high %v264_v49, %v296_v54 }
 0x13d   : > { %4638 = vpow2.f32 %v3495_v5  ;;  %3272 = vmatpush1.bf16.msra.mxu0 %v4334_v6  ;;  %3313 = vmatpush1.bf16.msra.mxu1 %v4336_v7 }
 0x13e   : > { %4640 = vpow2.f32 %v3499_v8  ;;  %3347 = vmatprep.subr.bf16.mxu0 %v4531_v10  ;;  %3388 = vmatprep.subr.bf16.mxu1 %v4533_v11  ;;  %v4339_v8 = vcombine.high %v263_v42, %v295_v44 }
 0x140   : > { %v2307_v26 = vpop.f32.mrf.mxu0  ;;  %4562 = vmatmul.mubr.msk.bf16.vlgmr.msra.gmra.mxu0 %vm2105_vm0, %v5384_v59  ;;  %v2348_v32 = vpop.f32.mrf.mxu1  ;;  %4563 = vmatmul.mubr.msk.bf16.vlgmr.msra.gmra.mxu1 %vm2105_vm0, %v5384_v59 }
 0x141   : > { %v2308_v31 = vadd.f32 %v2307_v26, %v540_v18  ;;  %3348 = vmatpush1.bf16.msra.mxu0 %v4530_v19  ;;  %v2349_v34 = vadd.f32 %v2348_v32, %v548_v20  ;;  %3389 = vmatpush1.bf16.msra.mxu1 %v4532_v21  ;;  %v4338_v20 = vcombine.low %v263_v42, %v295_v44 }
 0x142   : > { %v2309_v35 = vpop.f32.mrf.mxu0  ;;  %3349 = vmatprep.subr.bf16.mxu0 %v4467_v22  ;;  %v2350_v39 = vpop.f32.mrf.mxu1  ;;  %3390 = vmatprep.subr.bf16.mxu1 %v4469_v23  ;;  %v4340_v23 = vcombine.low %v264_v49, %v296_v54  ;;  %v568_v32 = vrot.slane %v5522_v9, %v5483_v1 }
 0x143   : > { %v3429_v37 = vsub.f32 0.0, %v2308_v31  ;;  %v2310_v38 = vadd.f32 %v2309_v35, %v544_v52  ;;  %3371 = vmatprep.mubr.bf16.mxu0 %v4975_v0  ;;  %v3431_v46 = vsub.f32 0.0, %v2349_v34  ;;  %v2351_v47 = vadd.f32 %v2350_v39, %v552_v27  ;;  %3412 = vmatprep.mubr.bf16.mxu1 %v4975_v0 }
 0x144   : > { %v4627_v45 = vpop.eup %4626  ;;  %v2311_v48 = vpop.f32.mrf.mxu0  ;;  %v4404_v0 = vcombine.low %v5556_v28, %v5559_v29  ;;  %v556_v28 = vrot.slane %v5522_v9, %v5472_v51  ;;  %v564_v29 = vrot.slane %v5522_v9, %v5475_v55 }
 0x145   : > { %v4629_v57 = vpop.eup %4628  ;;  %v3501_v62 = vmul.f32 1.442695, %v3429_v37  ;;  %v3430_v63 = vsub.f32 0.0, %v2310_v38  ;;  %v2352_v2 = vpop.f32.mrf.mxu1  ;;  %3350 = vmatpush1.bf16.msra.mxu0 %v4466_v33  ;;  %v3505_v5 = vmul.f32 1.442695, %v3431_v46  ;;  %v3432_v6 = vsub.f32 0.0, %v2351_v47  ;;  %3391 = vmatpush1.bf16.msra.mxu1 %v4468_v36 }
 0x146   : > { %v4631_v4 = vpop.eup %4630  ;;  %v2312_v7 = vpop.f32.mrf.mxu0  ;;  %3351 = vmatprep.subr.bf16.mxu0 %v4403_v43  ;;  %3392 = vmatprep.subr.bf16.mxu1 %v4405_v41 }
 0x147   : > { %v4633_v40 = vpop.eup %4632  ;;  %v3869_v10 = vcombine.low %v4627_v45, %v4631_v4  ;;  %4642 = vpow2.f32 %v3501_v62  ;;  %v3503_v11 = vmul.f32 1.442695, %v3430_v63  ;;  %v2353_v12 = vpop.f32.mrf.mxu1  ;;  %v3507_v16 = vmul.f32 1.442695, %v3432_v6 }
 0x148   : > { %v4635_v14 = vpop.eup %4634  ;;  %v3870_v15 = vcombine.low %v4629_v57, %v4633_v40  ;;  %4644 = vpow2.f32 %v3505_v5  ;;  %v5609_v40 = vld [vmem:[%s5122_s29 + $0x10] sm:$0xff] }
 0x149   : > { %v4637_v17 = vpop.eup %4636  ;;  %v3877_v18 = vrot.slane %v3869_v10, %v5581_v58  ;;  %v3617_v19 = vadd.f32 1.0, %v4635_v14  ;;  %4646 = vpow2.f32 %v3503_v11  ;;  %3352 = vmatpush1.bf16.msra.mxu0 %v4402_v3  ;;  %3393 = vmatpush1.bf16.msra.mxu1 %v4404_v0  ;;  %v572_v14 = vrot.slane %v5609_v40, %v5427_v50 }
 0x14a   : > { %v4639_v21 = vpop.eup %4638  ;;  %v3884_v22 = vrot.slane %v3870_v15, %v5581_v58  ;;  %v3619_v52 = vadd.f32 1.0, %v4637_v17  ;;  %4648 = vpow2.f32 %v3507_v16  ;;  %3353 = vmatprep.subr.bf16.mxu0 %v4339_v8  ;;  %3394 = vmatprep.subr.bf16.mxu1 %v4341_v13  ;;  %v580_v16 = vrot.slane %v5609_v40, %v5433_v53 }
 0x14b   : > { %v4641_v24 = vpop.eup %4640  ;;  %4650 = vrcp.f32 %v3617_v19  ;;  %v3618_v25 = vadd.f32 1.0, %v4639_v21  ;;  %v576_v17 = vrot.slane %v5609_v40, %v5436_v56 }
 0x14c   : > { %v3885_v26 = vcombine.low %v3877_v18, %v3884_v22  ;;  %4652 = vrcp.f32 %v3619_v52  ;;  %v3620_v27 = vadd.f32 1.0, %v4641_v24 }
 0x14d   : > { %4654 = vrcp.f32 %v3618_v25  ;;  %3354 = vmatpush1.bf16.msra.mxu0 %v4338_v20  ;;  %3395 = vmatpush1.bf16.msra.mxu1 %v4340_v23  ;;  %v584_v20 = vrot.slane %v5609_v40, %v5441_v60 }
 0x14e   : > { %4157 = vst [vmem:[%s5593_s10] sm:$0xff] %v3885_v26  ;;  %4656 = vrcp.f32 %v3620_v27 }
 0x150   : > { %v2389_v31 = vpop.f32.mrf.mxu0  ;;  %4564 = vmatmul.mubr.msk.bf16.vlgmr.msra.gmra.mxu0 %vm2105_vm0, %v5384_v59  ;;  %v2430_v34 = vpop.f32.mrf.mxu1  ;;  %4565 = vmatmul.mubr.msk.bf16.vlgmr.msra.gmra.mxu1 %vm2105_vm0, %v5384_v59 }
 0x151   : > { %v2390_v33 = vadd.f32 %v2389_v31, %v556_v28  ;;  %v2431_v35 = vadd.f32 %v2430_v34, %v564_v29 }
 0x152   : > { %v2391_v36 = vpop.f32.mrf.mxu0  ;;  %v2432_v38 = vpop.f32.mrf.mxu1 }
 0x153   : > { %v3433_v43 = vsub.f32 0.0, %v2390_v33  ;;  %v2392_v37 = vadd.f32 %v2391_v36, %v560_v30  ;;  %v3435_v41 = vsub.f32 0.0, %v2431_v35  ;;  %v2433_v42 = vadd.f32 %v2432_v38, %v568_v32 }
 0x154   : > { %v4643_v39 = vpop.eup %4642  ;;  %v2393_v44 = vpop.f32.mrf.mxu0 }
 0x155   : > { %v4645_v45 = vpop.eup %4644  ;;  %v3621_v46 = vadd.f32 1.0, %v4643_v39  ;;  %v3434_v47 = vsub.f32 0.0, %v2392_v37  ;;  %v2434_v48 = vpop.f32.mrf.mxu1  ;;  %v3436_v54 = vsub.f32 0.0, %v2433_v42  ;;  %v3509_v63 = vmul.f32 1.442695, %v3433_v43 }
 0x156   : > { %v4647_v49 = vpop.eup %4646  ;;  %v3623_v9 = vadd.f32 1.0, %v4645_v45  ;;  %v2394_v57 = vpop.f32.mrf.mxu0  ;;  %v3513_v5 = vmul.f32 1.442695, %v3435_v41 }
 0x157   : > { %v4649_v62 = vpop.eup %4648  ;;  %4658 = vrcp.f32 %v3621_v46  ;;  %v3622_v59 = vadd.f32 1.0, %v4647_v49  ;;  %v2435_v2 = vpop.f32.mrf.mxu1  ;;  %v3511_v7 = vmul.f32 1.442695, %v3434_v47  ;;  %v3515_v8 = vmul.f32 1.442695, %v3436_v54 }
 0x158   : > { %v4651_v3 = vpop.eup %4650  ;;  %4660 = vrcp.f32 %v3623_v9  ;;  %v3624_v4 = vadd.f32 1.0, %v4649_v62 }
 0x159   : > { %v4653_v6 = vpop.eup %4652  ;;  %4662 = vrcp.f32 %v3622_v59 }
 0x15a   : > { %v4655_v0 = vpop.eup %4654  ;;  %4664 = vrcp.f32 %v3624_v4  ;;  %v596_v4 = vrot.slane %v5609_v40, %v5475_v55 }
 0x15b   : > { %v4657_v10 = vpop.eup %4656  ;;  %v3886_v11 = vcombine.low %v4651_v3, %v4655_v0  ;;  %4666 = vpow2.f32 %v3509_v63  ;;  %v588_v3 = vrot.slane %v5609_v40, %v5472_v51 }
 0x15c   : > { %v3887_v12 = vcombine.low %v4653_v6, %v4657_v10  ;;  %4668 = vpow2.f32 %v3513_v5  ;;  %v592_v5 = vrot.slane %v5609_v40, %v5478_v61 }
 0x15d   : > { %v3894_v13 = vrot.slane %v3886_v11, %v5581_v58  ;;  %4670 = vpow2.f32 %v3511_v7  ;;  %v600_v7 = vrot.slane %v5609_v40, %v5483_v1 }
 0x15e   : > { %v3901_v15 = vrot.slane %v3887_v12, %v5581_v58  ;;  %4672 = vpow2.f32 %v3515_v8 }
 0x160   : > { %v3902_v18 = vcombine.low %v3894_v13, %v3901_v15  ;;  %v2471_v19 = vpop.f32.mrf.mxu0  ;;  %v2512_v22 = vpop.f32.mrf.mxu1 }
 0x161   : > { %v2472_v21 = vadd.f32 %v2471_v19, %v572_v14  ;;  %v2513_v52 = vadd.f32 %v2512_v22, %v580_v16 }
 0x162   : > { %4158 = vst [vmem:[%s5593_s10 + $0x8] sm:$0xff] %v3902_v18  ;;  %v2473_v23 = vpop.f32.mrf.mxu0  ;;  %v2514_v26 = vpop.f32.mrf.mxu1 }
 0x163   : > { %v3437_v24 = vsub.f32 0.0, %v2472_v21  ;;  %v2474_v25 = vadd.f32 %v2473_v23, %v576_v17  ;;  %v3439_v28 = vsub.f32 0.0, %v2513_v52  ;;  %v2515_v29 = vadd.f32 %v2514_v26, %v584_v20 }
 0x164   : > { %v4659_v27 = vpop.eup %4658  ;;  %v2475_v30 = vpop.f32.mrf.mxu0 }
 0x165   : > { %v4661_v31 = vpop.eup %4660  ;;  %v3517_v32 = vmul.f32 1.442695, %v3437_v24  ;;  %v3438_v33 = vsub.f32 0.0, %v2474_v25  ;;  %v2516_v34 = vpop.f32.mrf.mxu1  ;;  %v3521_v36 = vmul.f32 1.442695, %v3439_v28  ;;  %v3440_v43 = vsub.f32 0.0, %v2515_v29 }
 0x166   : > { %v4663_v35 = vpop.eup %4662  ;;  %v2476_v37 = vpop.f32.mrf.mxu0 }
 0x167   : > { %v4665_v38 = vpop.eup %4664  ;;  %v3903_v39 = vcombine.low %v4659_v27, %v4663_v35  ;;  %4674 = vpow2.f32 %v3517_v32  ;;  %v3519_v41 = vmul.f32 1.442695, %v3438_v33  ;;  %v2517_v42 = vpop.f32.mrf.mxu1  ;;  %v3523_v46 = vmul.f32 1.442695, %v3440_v43 }
 0x168   : > { %v4667_v44 = vpop.eup %4666  ;;  %v3904_v45 = vcombine.low %v4661_v31, %v4665_v38  ;;  %4676 = vpow2.f32 %v3521_v36  ;;  %v5634_v36 = vld [vmem:[%s5122_s29 + $0x18] sm:$0xff] }
 0x169   : > { %v4669_v47 = vpop.eup %4668  ;;  %v3911_v48 = vrot.slane %v3903_v39, %v5581_v58  ;;  %v3625_v49 = vadd.f32 1.0, %v4667_v44  ;;  %4678 = vpow2.f32 %v3519_v41  ;;  %v604_v41 = vrot.slane %v5634_v36, %v5427_v50 }
 0x16a   : > { %v4671_v9 = vpop.eup %4670  ;;  %v3918_v54 = vrot.slane %v3904_v45, %v5581_v58  ;;  %v3627_v57 = vadd.f32 1.0, %v4669_v47  ;;  %4680 = vpow2.f32 %v3523_v46  ;;  %v612_v44 = vrot.slane %v5634_v36, %v5433_v53 }
 0x16b   : > { %v4673_v62 = vpop.eup %4672  ;;  %4682 = vrcp.f32 %v3625_v49  ;;  %v3626_v59 = vadd.f32 1.0, %v4671_v9  ;;  %v608_v45 = vrot.slane %v5634_v36, %v5436_v56 }
 0x16c   : > { %v3919_v63 = vcombine.low %v3911_v48, %v3918_v54  ;;  %4684 = vrcp.f32 %v3627_v57  ;;  %v3628_v2 = vadd.f32 1.0, %v4673_v62  ;;  %v616_v48 = vrot.slane %v5634_v36, %v5441_v60 }
 0x16d   : > { %4686 = vrcp.f32 %v3626_v59 }
 0x16e   : > { %4159 = vst [vmem:[%s5593_s10 + $0x10] sm:$0xff] %v3919_v63  ;;  %4688 = vrcp.f32 %v3628_v2 }
 0x170   : > { %v2553_v6 = vpop.f32.mrf.mxu0  ;;  %v2594_v8 = vpop.f32.mrf.mxu1 }
 0x171   : > { %v2554_v0 = vadd.f32 %v2553_v6, %v588_v3  ;;  %v2595_v10 = vadd.f32 %v2594_v8, %v596_v4 }
 0x172   : > { %v2555_v11 = vpop.f32.mrf.mxu0  ;;  %v2596_v14 = vpop.f32.mrf.mxu1 }
 0x173   : > { %v3441_v12 = vsub.f32 0.0, %v2554_v0  ;;  %v2556_v13 = vadd.f32 %v2555_v11, %v592_v5  ;;  %v3443_v16 = vsub.f32 0.0, %v2595_v10  ;;  %v2597_v17 = vadd.f32 %v2596_v14, %v600_v7 }
 0x174   : > { %v4675_v15 = vpop.eup %4674  ;;  %v2557_v18 = vpop.f32.mrf.mxu0 }
 0x175   : > { %v4677_v19 = vpop.eup %4676  ;;  %v3629_v20 = vadd.f32 1.0, %v4675_v15  ;;  %v3442_v21 = vsub.f32 0.0, %v2556_v13  ;;  %v2598_v22 = vpop.f32.mrf.mxu1  ;;  %v3444_v24 = vsub.f32 0.0, %v2597_v17  ;;  %v3525_v27 = vmul.f32 1.442695, %v3441_v12 }
 0x176   : > { %v4679_v52 = vpop.eup %4678  ;;  %v3631_v23 = vadd.f32 1.0, %v4677_v19  ;;  %v2558_v25 = vpop.f32.mrf.mxu0  ;;  %v3529_v31 = vmul.f32 1.442695, %v3443_v16 }
 0x177   : > { %v4681_v40 = vpop.eup %4680  ;;  %4690 = vrcp.f32 %v3629_v20  ;;  %v3630_v26 = vadd.f32 1.0, %v4679_v52  ;;  %v2599_v28 = vpop.f32.mrf.mxu1  ;;  %v3527_v33 = vmul.f32 1.442695, %v3442_v21  ;;  %v3531_v35 = vmul.f32 1.442695, %v3444_v24 }
 0x178   : > { %v4683_v29 = vpop.eup %4682  ;;  %4692 = vrcp.f32 %v3631_v23  ;;  %v3632_v30 = vadd.f32 1.0, %v4681_v40 }
 0x179   : > { %v4685_v32 = vpop.eup %4684  ;;  %4694 = vrcp.f32 %v3630_v26 }
 0x17a   : > { %v4687_v34 = vpop.eup %4686  ;;  %4696 = vrcp.f32 %v3632_v30  ;;  %v628_v30 = vrot.slane %v5634_v36, %v5475_v55 }
 0x17b   : > { %v4689_v43 = vpop.eup %4688  ;;  %v3920_v37 = vcombine.low %v4683_v29, %v4687_v34  ;;  %4698 = vpow2.f32 %v3525_v27  ;;  %v620_v29 = vrot.slane %v5634_v36, %v5472_v51 }
 0x17c   : > { %v3921_v38 = vcombine.low %v4685_v32, %v4689_v43  ;;  %4700 = vpow2.f32 %v3529_v31  ;;  %v624_v31 = vrot.slane %v5634_v36, %v5478_v61 }
 0x17d   : > { %v3928_v39 = vrot.slane %v3920_v37, %v5581_v58  ;;  %4702 = vpow2.f32 %v3527_v33  ;;  %v632_v33 = vrot.slane %v5634_v36, %v5483_v1 }
 0x17e   : > { %v3935_v42 = vrot.slane %v3921_v38, %v5581_v58  ;;  %4704 = vpow2.f32 %v3531_v35 }
 0x180   : > { %v3936_v46 = vcombine.low %v3928_v39, %v3935_v42  ;;  %v2635_v47 = vpop.f32.mrf.mxu0  ;;  %v2676_v9 = vpop.f32.mrf.mxu1 }
 0x181   : > { %v2636_v49 = vadd.f32 %v2635_v47, %v604_v41  ;;  %v2677_v54 = vadd.f32 %v2676_v9, %v612_v44 }
 0x182   : > { %4160 = vst [vmem:[%s5593_s10 + $0x18] sm:$0xff] %v3936_v46  ;;  %v2637_v57 = vpop.f32.mrf.mxu0  ;;  %v2678_v63 = vpop.f32.mrf.mxu1 }
 0x183   : > { %v3445_v62 = vsub.f32 0.0, %v2636_v49  ;;  %v2638_v59 = vadd.f32 %v2637_v57, %v608_v45  ;;  %v3447_v3 = vsub.f32 0.0, %v2677_v54  ;;  %v2679_v4 = vadd.f32 %v2678_v63, %v616_v48 }
 0x184   : > { %v4691_v2 = vpop.eup %4690  ;;  %v2639_v5 = vpop.f32.mrf.mxu0 }
 0x185   : > { %v4693_v6 = vpop.eup %4692  ;;  %v3533_v7 = vmul.f32 1.442695, %v3445_v62  ;;  %v3446_v0 = vsub.f32 0.0, %v2638_v59  ;;  %v2680_v8 = vpop.f32.mrf.mxu1  ;;  %v3537_v11 = vmul.f32 1.442695, %v3447_v3  ;;  %v3448_v12 = vsub.f32 0.0, %v2679_v4 }
 0x186   : > { %v4695_v10 = vpop.eup %4694  ;;  %v2640_v13 = vpop.f32.mrf.mxu0 }
 0x187   : > { %v4697_v14 = vpop.eup %4696  ;;  %v3937_v15 = vcombine.low %v4691_v2, %v4695_v10  ;;  %4706 = vpow2.f32 %v3533_v7  ;;  %v3535_v16 = vmul.f32 1.442695, %v3446_v0  ;;  %v2681_v17 = vpop.f32.mrf.mxu1  ;;  %v3539_v20 = vmul.f32 1.442695, %v3448_v12 }
 0x188   : > { %v4699_v18 = vpop.eup %4698  ;;  %v3938_v19 = vcombine.low %v4693_v6, %v4697_v14  ;;  %4708 = vpow2.f32 %v3537_v11  ;;  %v5659_v11 = vld [vmem:[%s5122_s29 + $0x20] sm:$0xff] }
 0x189   : > { %v4701_v21 = vpop.eup %4700  ;;  %v3945_v22 = vrot.slane %v3937_v15, %v5581_v58  ;;  %v3633_v52 = vadd.f32 1.0, %v4699_v18  ;;  %4710 = vpow2.f32 %v3535_v16  ;;  %v636_v16 = vrot.slane %v5659_v11, %v5427_v50 }
 0x18a   : > { %v4703_v23 = vpop.eup %4702  ;;  %v3952_v24 = vrot.slane %v3938_v19, %v5581_v58  ;;  %v3635_v25 = vadd.f32 1.0, %v4701_v21  ;;  %4712 = vpow2.f32 %v3539_v20  ;;  %v644_v18 = vrot.slane %v5659_v11, %v5433_v53 }
 0x18b   : > { %v4705_v40 = vpop.eup %4704  ;;  %4714 = vrcp.f32 %v3633_v52  ;;  %v3634_v26 = vadd.f32 1.0, %v4703_v23  ;;  %v640_v19 = vrot.slane %v5659_v11, %v5436_v56 }
 0x18c   : > { %v3953_v27 = vcombine.low %v3945_v22, %v3952_v24  ;;  %4716 = vrcp.f32 %v3635_v25  ;;  %v3636_v28 = vadd.f32 1.0, %v4705_v40  ;;  %v648_v22 = vrot.slane %v5659_v11, %v5441_v60 }
 0x18d   : > { %4718 = vrcp.f32 %v3634_v26 }
 0x18e   : > { %4161 = vst [vmem:[%s5593_s10 + $0x20] sm:$0xff] %v3953_v27  ;;  %4720 = vrcp.f32 %v3636_v28 }
 0x190   : > { %v2717_v32 = vpop.f32.mrf.mxu0  ;;  %v2758_v35 = vpop.f32.mrf.mxu1 }
 0x191   : > { %v2718_v34 = vadd.f32 %v2717_v32, %v620_v29  ;;  %v2759_v43 = vadd.f32 %v2758_v35, %v628_v30 }
 0x192   : > { %v2719_v37 = vpop.f32.mrf.mxu0  ;;  %v2760_v41 = vpop.f32.mrf.mxu1 }
 0x193   : > { %v3449_v38 = vsub.f32 0.0, %v2718_v34  ;;  %v2720_v39 = vadd.f32 %v2719_v37, %v624_v31  ;;  %v3451_v44 = vsub.f32 0.0, %v2759_v43  ;;  %v2761_v45 = vadd.f32 %v2760_v41, %v632_v33 }
 0x194   : > { %v4707_v42 = vpop.eup %4706  ;;  %v2721_v46 = vpop.f32.mrf.mxu0 }
 0x195   : > { %v4709_v47 = vpop.eup %4708  ;;  %v3637_v48 = vadd.f32 1.0, %v4707_v42  ;;  %v3450_v49 = vsub.f32 0.0, %v2720_v39  ;;  %v2762_v9 = vpop.f32.mrf.mxu1  ;;  %v3452_v62 = vsub.f32 0.0, %v2761_v45  ;;  %v3541_v2 = vmul.f32 1.442695, %v3449_v38 }
 0x196   : > { %v4711_v54 = vpop.eup %4710  ;;  %v3639_v57 = vadd.f32 1.0, %v4709_v47  ;;  %v2722_v59 = vpop.f32.mrf.mxu0  ;;  %v3545_v6 = vmul.f32 1.442695, %v3451_v44 }
 0x197   : > { %v4713_v36 = vpop.eup %4712  ;;  %4722 = vrcp.f32 %v3637_v48  ;;  %v3638_v63 = vadd.f32 1.0, %v4711_v54  ;;  %v2763_v3 = vpop.f32.mrf.mxu1  ;;  %v3543_v0 = vmul.f32 1.442695, %v3450_v49  ;;  %v3547_v10 = vmul.f32 1.442695, %v3452_v62 }
 0x198   : > { %v4715_v4 = vpop.eup %4714  ;;  %4724 = vrcp.f32 %v3639_v57  ;;  %v3640_v5 = vadd.f32 1.0, %v4713_v36 }
 0x199   : > { %v4717_v7 = vpop.eup %4716  ;;  %4726 = vrcp.f32 %v3638_v63 }
 0x19a   : > { %v4719_v8 = vpop.eup %4718  ;;  %4728 = vrcp.f32 %v3640_v5  ;;  %v660_v5 = vrot.slane %v5659_v11, %v5475_v55 }
 0x19b   : > { %v4721_v12 = vpop.eup %4720  ;;  %v3954_v13 = vcombine.low %v4715_v4, %v4719_v8  ;;  %4730 = vpow2.f32 %v3541_v2  ;;  %v652_v4 = vrot.slane %v5659_v11, %v5472_v51 }
 0x19c   : > { %v3955_v14 = vcombine.low %v4717_v7, %v4721_v12  ;;  %4732 = vpow2.f32 %v3545_v6  ;;  %v656_v6 = vrot.slane %v5659_v11, %v5478_v61 }
 0x19d   : > { %v3962_v15 = vrot.slane %v3954_v13, %v5581_v58  ;;  %4734 = vpow2.f32 %v3543_v0  ;;  %v664_v0 = vrot.slane %v5659_v11, %v5483_v1 }
 0x19e   : > { %v3969_v17 = vrot.slane %v3955_v14, %v5581_v58  ;;  %4736 = vpow2.f32 %v3547_v10 }
 0x1a0   : > { %v3970_v20 = vcombine.low %v3962_v15, %v3969_v17  ;;  %v2799_v21 = vpop.f32.mrf.mxu0  ;;  %v2840_v23 = vpop.f32.mrf.mxu1 }
 0x1a1   : > { %v2800_v52 = vadd.f32 %v2799_v21, %v636_v16  ;;  %v2841_v24 = vadd.f32 %v2840_v23, %v644_v18 }
 0x1a2   : > { %4162 = vst [vmem:[%s5593_s10 + $0x28] sm:$0xff] %v3970_v20  ;;  %v2801_v25 = vpop.f32.mrf.mxu0  ;;  %v2842_v27 = vpop.f32.mrf.mxu1 }
 0x1a3   : > { %v3453_v40 = vsub.f32 0.0, %v2800_v52  ;;  %v2802_v26 = vadd.f32 %v2801_v25, %v640_v19  ;;  %v3455_v29 = vsub.f32 0.0, %v2841_v24  ;;  %v2843_v30 = vadd.f32 %v2842_v27, %v648_v22 }
 0x1a4   : > { %v4723_v28 = vpop.eup %4722  ;;  %v2803_v31 = vpop.f32.mrf.mxu0 }
 0x1a5   : > { %v4725_v32 = vpop.eup %4724  ;;  %v3549_v33 = vmul.f32 1.442695, %v3453_v40  ;;  %v3454_v34 = vsub.f32 0.0, %v2802_v26  ;;  %v2844_v35 = vpop.f32.mrf.mxu1  ;;  %v3553_v37 = vmul.f32 1.442695, %v3455_v29  ;;  %v3456_v38 = vsub.f32 0.0, %v2843_v30 }
 0x1a6   : > { %v4727_v43 = vpop.eup %4726  ;;  %v2804_v39 = vpop.f32.mrf.mxu0 }
 0x1a7   : > { %v4729_v41 = vpop.eup %4728  ;;  %v3971_v42 = vcombine.low %v4723_v28, %v4727_v43  ;;  %4738 = vpow2.f32 %v3549_v33  ;;  %v3551_v44 = vmul.f32 1.442695, %v3454_v34  ;;  %v2845_v45 = vpop.f32.mrf.mxu1  ;;  %v3555_v48 = vmul.f32 1.442695, %v3456_v38 }
 0x1a8   : > { %v4731_v46 = vpop.eup %4730  ;;  %v3972_v47 = vcombine.low %v4725_v32, %v4729_v41  ;;  %4740 = vpow2.f32 %v3553_v37  ;;  %v5684_v37 = vld [vmem:[%s5122_s29 + $0x28] sm:$0xff] }
 0x1a9   : > { %v4733_v49 = vpop.eup %4732  ;;  %v3979_v9 = vrot.slane %v3971_v42, %v5581_v58  ;;  %v3641_v54 = vadd.f32 1.0, %v4731_v46  ;;  %4742 = vpow2.f32 %v3551_v44  ;;  %v668_v44 = vrot.slane %v5684_v37, %v5427_v50 }
 0x1aa   : > { %v4735_v57 = vpop.eup %4734  ;;  %v3986_v62 = vrot.slane %v3972_v47, %v5581_v58  ;;  %v3643_v59 = vadd.f32 1.0, %v4733_v49  ;;  %4744 = vpow2.f32 %v3555_v48  ;;  %v676_v46 = vrot.slane %v5684_v37, %v5433_v53 }
 0x1ab   : > { %v4737_v36 = vpop.eup %4736  ;;  %4746 = vrcp.f32 %v3641_v54  ;;  %v3642_v63 = vadd.f32 1.0, %v4735_v57  ;;  %v672_v47 = vrot.slane %v5684_v37, %v5436_v56 }
 0x1ac   : > { %v3987_v2 = vcombine.low %v3979_v9, %v3986_v62  ;;  %4748 = vrcp.f32 %v3643_v59  ;;  %v3644_v3 = vadd.f32 1.0, %v4737_v36  ;;  %v680_v9 = vrot.slane %v5684_v37, %v5441_v60 }
 0x1ad   : > { %4750 = vrcp.f32 %v3642_v63 }
 0x1ae   : > { %4163 = vst [vmem:[%s5593_s10 + $0x30] sm:$0xff] %v3987_v2  ;;  %4752 = vrcp.f32 %v3644_v3 }
 0x1b0   : > { %v2881_v7 = vpop.f32.mrf.mxu0  ;;  %v2922_v10 = vpop.f32.mrf.mxu1 }
 0x1b1   : > { %v2882_v8 = vadd.f32 %v2881_v7, %v652_v4  ;;  %v2923_v12 = vadd.f32 %v2922_v10, %v660_v5 }
 0x1b2   : > { %v2883_v13 = vpop.f32.mrf.mxu0  ;;  %v2924_v16 = vpop.f32.mrf.mxu1 }
 0x1b3   : > { %v3457_v14 = vsub.f32 0.0, %v2882_v8  ;;  %v2884_v15 = vadd.f32 %v2883_v13, %v656_v6  ;;  %v3459_v18 = vsub.f32 0.0, %v2923_v12  ;;  %v2925_v19 = vadd.f32 %v2924_v16, %v664_v0 }
 0x1b4   : > { %v4739_v17 = vpop.eup %4738  ;;  %v2885_v20 = vpop.f32.mrf.mxu0 }
 0x1b5   : > { %v4741_v21 = vpop.eup %4740  ;;  %v3645_v22 = vadd.f32 1.0, %v4739_v17  ;;  %v3458_v52 = vsub.f32 0.0, %v2884_v15  ;;  %v2926_v23 = vpop.f32.mrf.mxu1  ;;  %v3460_v40 = vsub.f32 0.0, %v2925_v19  ;;  %v3557_v28 = vmul.f32 1.442695, %v3457_v14 }
 0x1b6   : > { %v4743_v24 = vpop.eup %4742  ;;  %v3647_v25 = vadd.f32 1.0, %v4741_v21  ;;  %v2886_v26 = vpop.f32.mrf.mxu0  ;;  %v3561_v32 = vmul.f32 1.442695, %v3459_v18 }
 0x1b7   : > { %v4745_v11 = vpop.eup %4744  ;;  %4754 = vrcp.f32 %v3645_v22  ;;  %v3646_v27 = vadd.f32 1.0, %v4743_v24  ;;  %v2927_v29 = vpop.f32.mrf.mxu1  ;;  %v3559_v34 = vmul.f32 1.442695, %v3458_v52  ;;  %v3563_v43 = vmul.f32 1.442695, %v3460_v40 }
 0x1b8   : > { %v4747_v30 = vpop.eup %4746  ;;  %4756 = vrcp.f32 %v3647_v25  ;;  %v3648_v31 = vadd.f32 1.0, %v4745_v11 }
 0x1b9   : > { %v4749_v33 = vpop.eup %4748  ;;  %4758 = vrcp.f32 %v3646_v27 }
 0x1ba   : > { %v4751_v35 = vpop.eup %4750  ;;  %4760 = vrcp.f32 %v3648_v31  ;;  %v692_v31 = vrot.slane %v5684_v37, %v5475_v55 }
 0x1bb   : > { %v4753_v38 = vpop.eup %4752  ;;  %v3988_v39 = vcombine.low %v4747_v30, %v4751_v35  ;;  %4762 = vpow2.f32 %v3557_v28  ;;  %v684_v30 = vrot.slane %v5684_v37, %v5472_v51 }
 0x1bc   : > { %v3989_v41 = vcombine.low %v4749_v33, %v4753_v38  ;;  %4764 = vpow2.f32 %v3561_v32  ;;  %v688_v32 = vrot.slane %v5684_v37, %v5478_v61 }
 0x1bd   : > { %v3996_v42 = vrot.slane %v3988_v39, %v5581_v58  ;;  %4766 = vpow2.f32 %v3559_v34  ;;  %v696_v34 = vrot.slane %v5684_v37, %v5483_v1 }
 0x1be   : > { %v4003_v45 = vrot.slane %v3989_v41, %v5581_v58  ;;  %4768 = vpow2.f32 %v3563_v43 }
 0x1c0   : > { %v4004_v48 = vcombine.low %v3996_v42, %v4003_v45  ;;  %v2963_v49 = vpop.f32.mrf.mxu0  ;;  %v3004_v57 = vpop.f32.mrf.mxu1 }
 0x1c1   : > { %v2964_v54 = vadd.f32 %v2963_v49, %v668_v44  ;;  %v3005_v62 = vadd.f32 %v3004_v57, %v676_v46 }
 0x1c2   : > { %4164 = vst [vmem:[%s5593_s10 + $0x38] sm:$0xff] %v4004_v48  ;;  %v2965_v59 = vpop.f32.mrf.mxu0  ;;  %v3006_v2 = vpop.f32.mrf.mxu1 }
 0x1c3   : > { %v3461_v36 = vsub.f32 0.0, %v2964_v54  ;;  %v2966_v63 = vadd.f32 %v2965_v59, %v672_v47  ;;  %v3463_v4 = vsub.f32 0.0, %v3005_v62  ;;  %v3007_v5 = vadd.f32 %v3006_v2, %v680_v9 }
 0x1c4   : > { %v4755_v3 = vpop.eup %4754  ;;  %v2967_v6 = vpop.f32.mrf.mxu0 }
 0x1c5   : > { %v4757_v7 = vpop.eup %4756  ;;  %v3565_v0 = vmul.f32 1.442695, %v3461_v36  ;;  %v3462_v8 = vsub.f32 0.0, %v2966_v63  ;;  %v3008_v10 = vpop.f32.mrf.mxu1  ;;  %v3569_v13 = vmul.f32 1.442695, %v3463_v4  ;;  %v3464_v14 = vsub.f32 0.0, %v3007_v5 }
 0x1c6   : > { %v4759_v12 = vpop.eup %4758  ;;  %v2968_v15 = vpop.f32.mrf.mxu0 }
 0x1c7   : > { %v4761_v16 = vpop.eup %4760  ;;  %v4005_v17 = vcombine.low %v4755_v3, %v4759_v12  ;;  %4770 = vpow2.f32 %v3565_v0  ;;  %v3567_v18 = vmul.f32 1.442695, %v3462_v8  ;;  %v3009_v19 = vpop.f32.mrf.mxu1  ;;  %v3571_v22 = vmul.f32 1.442695, %v3464_v14 }
 0x1c8   : > { %v4763_v20 = vpop.eup %4762  ;;  %v4006_v21 = vcombine.low %v4757_v7, %v4761_v16  ;;  %4772 = vpow2.f32 %v3569_v13  ;;  %v5709_v13 = vld [vmem:[%s5122_s29 + $0x30] sm:$0xff] }
 0x1c9   : > { %v4765_v52 = vpop.eup %4764  ;;  %v4013_v23 = vrot.slane %v4005_v17, %v5581_v58  ;;  %v3649_v24 = vadd.f32 1.0, %v4763_v20  ;;  %4774 = vpow2.f32 %v3567_v18  ;;  %v700_v18 = vrot.slane %v5709_v13, %v5427_v50 }
 0x1ca   : > { %v4767_v25 = vpop.eup %4766  ;;  %v4020_v40 = vrot.slane %v4006_v21, %v5581_v58  ;;  %v3651_v26 = vadd.f32 1.0, %v4765_v52  ;;  %4776 = vpow2.f32 %v3571_v22  ;;  %v708_v20 = vrot.slane %v5709_v13, %v5433_v53 }
 0x1cb   : > { %v4769_v11 = vpop.eup %4768  ;;  %4778 = vrcp.f32 %v3649_v24  ;;  %v3650_v27 = vadd.f32 1.0, %v4767_v25  ;;  %v704_v21 = vrot.slane %v5709_v13, %v5436_v56 }
 0x1cc   : > { %v4021_v28 = vcombine.low %v4013_v23, %v4020_v40  ;;  %4780 = vrcp.f32 %v3651_v26  ;;  %v3652_v29 = vadd.f32 1.0, %v4769_v11  ;;  %v712_v23 = vrot.slane %v5709_v13, %v5441_v60 }
 0x1cd   : > { %4782 = vrcp.f32 %v3650_v27 }
 0x1ce   : > { %4165 = vst [vmem:[%s5593_s10 + $0x40] sm:$0xff] %v4021_v28  ;;  %4784 = vrcp.f32 %v3652_v29 }
 0x1d0   : > { %v3045_v33 = vpop.f32.mrf.mxu0  ;;  %v3086_v43 = vpop.f32.mrf.mxu1 }
 0x1d1   : > { %v3046_v35 = vadd.f32 %v3045_v33, %v684_v30  ;;  %v3087_v38 = vadd.f32 %v3086_v43, %v692_v31 }
 0x1d2   : > { %v3047_v39 = vpop.f32.mrf.mxu0  ;;  %v3088_v44 = vpop.f32.mrf.mxu1 }
 0x1d3   : > { %v3465_v41 = vsub.f32 0.0, %v3046_v35  ;;  %v3048_v42 = vadd.f32 %v3047_v39, %v688_v32  ;;  %v3467_v46 = vsub.f32 0.0, %v3087_v38  ;;  %v3089_v47 = vadd.f32 %v3088_v44, %v696_v34 }
 0x1d4   : > { %v4771_v45 = vpop.eup %4770  ;;  %v3049_v48 = vpop.f32.mrf.mxu0 }
 0x1d5   : > { %v4773_v49 = vpop.eup %4772  ;;  %v3653_v9 = vadd.f32 1.0, %v4771_v45  ;;  %v3466_v54 = vsub.f32 0.0, %v3048_v42  ;;  %v3090_v57 = vpop.f32.mrf.mxu1  ;;  %v3468_v36 = vsub.f32 0.0, %v3089_v47  ;;  %v3573_v3 = vmul.f32 1.442695, %v3465_v41 }
 0x1d6   : > { %v4775_v62 = vpop.eup %4774  ;;  %v3655_v59 = vadd.f32 1.0, %v4773_v49  ;;  %v3050_v63 = vpop.f32.mrf.mxu0  ;;  %v3577_v7 = vmul.f32 1.442695, %v3467_v46 }
 0x1d7   : > { %v4777_v37 = vpop.eup %4776  ;;  %4786 = vrcp.f32 %v3653_v9  ;;  %v3654_v2 = vadd.f32 1.0, %v4775_v62  ;;  %v3091_v4 = vpop.f32.mrf.mxu1  ;;  %v3575_v8 = vmul.f32 1.442695, %v3466_v54  ;;  %v3579_v12 = vmul.f32 1.442695, %v3468_v36 }
 0x1d8   : > { %v4779_v5 = vpop.eup %4778  ;;  %4788 = vrcp.f32 %v3655_v59  ;;  %v3656_v6 = vadd.f32 1.0, %v4777_v37 }
 0x1d9   : > { %v4781_v0 = vpop.eup %4780  ;;  %4790 = vrcp.f32 %v3654_v2 }
 0x1da   : > { %v4783_v10 = vpop.eup %4782  ;;  %4792 = vrcp.f32 %v3656_v6  ;;  %v724_v6 = vrot.slane %v5709_v13, %v5475_v55 }
 0x1db   : > { %v4785_v14 = vpop.eup %4784  ;;  %v4022_v15 = vcombine.low %v4779_v5, %v4783_v10  ;;  %4794 = vpow2.f32 %v3573_v3  ;;  %v716_v5 = vrot.slane %v5709_v13, %v5472_v51 }
 0x1dc   : > { %v4023_v16 = vcombine.low %v4781_v0, %v4785_v14  ;;  %4796 = vpow2.f32 %v3577_v7  ;;  %v720_v7 = vrot.slane %v5709_v13, %v5478_v61 }
 0x1dd   : > { %v4030_v17 = vrot.slane %v4022_v15, %v5581_v58  ;;  %4798 = vpow2.f32 %v3575_v8  ;;  %v728_v8 = vrot.slane %v5709_v13, %v5483_v1 }
 0x1de   : > { %v4037_v19 = vrot.slane %v4023_v16, %v5581_v58  ;;  %4800 = vpow2.f32 %v3579_v12 }
 0x1e0   : > { %v4038_v22 = vcombine.low %v4030_v17, %v4037_v19  ;;  %v3127_v52 = vpop.f32.mrf.mxu0  ;;  %v3168_v25 = vpop.f32.mrf.mxu1 }
 0x1e1   : > { %v3128_v24 = vadd.f32 %v3127_v52, %v700_v18  ;;  %v3169_v40 = vadd.f32 %v3168_v25, %v708_v20 }
 0x1e2   : > { %4166 = vst [vmem:[%s5593_s10 + $0x48] sm:$0xff] %v4038_v22  ;;  %v3129_v26 = vpop.f32.mrf.mxu0  ;;  %v3170_v28 = vpop.f32.mrf.mxu1 }
 0x1e3   : > { %v3469_v11 = vsub.f32 0.0, %v3128_v24  ;;  %v3130_v27 = vadd.f32 %v3129_v26, %v704_v21  ;;  %v3471_v30 = vsub.f32 0.0, %v3169_v40  ;;  %v3171_v31 = vadd.f32 %v3170_v28, %v712_v23 }
 0x1e4   : > { %v4787_v29 = vpop.eup %4786  ;;  %v3131_v32 = vpop.f32.mrf.mxu0 }
 0x1e5   : > { %v4789_v33 = vpop.eup %4788  ;;  %v3581_v34 = vmul.f32 1.442695, %v3469_v11  ;;  %v3470_v35 = vsub.f32 0.0, %v3130_v27  ;;  %v3172_v43 = vpop.f32.mrf.mxu1  ;;  %v3585_v39 = vmul.f32 1.442695, %v3471_v30  ;;  %v3472_v41 = vsub.f32 0.0, %v3171_v31 }
 0x1e6   : > { %v4791_v38 = vpop.eup %4790  ;;  %v3132_v42 = vpop.f32.mrf.mxu0 }
 0x1e7   : > { %v4793_v44 = vpop.eup %4792  ;;  %v4039_v45 = vcombine.low %v4787_v29, %v4791_v38  ;;  %4802 = vpow2.f32 %v3581_v34  ;;  %v3583_v46 = vmul.f32 1.442695, %v3470_v35  ;;  %v3173_v47 = vpop.f32.mrf.mxu1  ;;  %v3587_v9 = vmul.f32 1.442695, %v3472_v41 }
 0x1e8   : > { %v4795_v48 = vpop.eup %4794  ;;  %v4040_v49 = vcombine.low %v4789_v33, %v4793_v44  ;;  %4804 = vpow2.f32 %v3585_v39  ;;  %v5734_v39 = vld [vmem:[%s5122_s29 + $0x38] sm:$0xff] }
 0x1e9   : > { %v4797_v54 = vpop.eup %4796  ;;  %v4047_v57 = vrot.slane %v4039_v45, %v5581_v58  ;;  %v3657_v62 = vadd.f32 1.0, %v4795_v48  ;;  %4806 = vpow2.f32 %v3583_v46  ;;  %v732_v46 = vrot.slane %v5734_v39, %v5427_v50 }
 0x1ea   : > { %v4799_v59 = vpop.eup %4798  ;;  %v4054_v36 = vrot.slane %v4040_v49, %v5581_v58  ;;  %v3659_v63 = vadd.f32 1.0, %v4797_v54  ;;  %4808 = vpow2.f32 %v3587_v9  ;;  %v740_v48 = vrot.slane %v5734_v39, %v5433_v53 }
 0x1eb   : > { %v4801_v37 = vpop.eup %4800  ;;  %4810 = vrcp.f32 %v3657_v62  ;;  %v3658_v2 = vadd.f32 1.0, %v4799_v59  ;;  %v736_v49 = vrot.slane %v5734_v39, %v5436_v56 }
 0x1ec   : > { %v4055_v3 = vcombine.low %v4047_v57, %v4054_v36  ;;  %4812 = vrcp.f32 %v3659_v63  ;;  %v3660_v4 = vadd.f32 1.0, %v4801_v37  ;;  %v744_v57 = vrot.slane %v5734_v39, %v5441_v60 }
 0x1ed   : > { %4814 = vrcp.f32 %v3658_v2 }
 0x1ee   : > { %4167 = vst [vmem:[%s5593_s10 + $0x50] sm:$0xff] %v4055_v3  ;;  %4816 = vrcp.f32 %v3660_v4 }
 0x1f0   : > { %v3209_v0 = vpop.f32.mrf.mxu0  ;;  %v3250_v12 = vpop.f32.mrf.mxu1 }
 0x1f1   : > { %v3210_v10 = vadd.f32 %v3209_v0, %v716_v5  ;;  %v3251_v14 = vadd.f32 %v3250_v12, %v724_v6 }
 0x1f2   : > { %v3211_v15 = vpop.f32.mrf.mxu0  ;;  %v3252_v18 = vpop.f32.mrf.mxu1 }
 0x1f3   : > { %v3473_v16 = vsub.f32 0.0, %v3210_v10  ;;  %v3212_v17 = vadd.f32 %v3211_v15, %v720_v7  ;;  %v3475_v20 = vsub.f32 0.0, %v3251_v14  ;;  %v3253_v21 = vadd.f32 %v3252_v18, %v728_v8 }
 0x1f4   : > { %v4803_v19 = vpop.eup %4802  ;;  %v3213_v22 = vpop.f32.mrf.mxu0 }
 0x1f5   : > { %v4805_v52 = vpop.eup %4804  ;;  %v3661_v23 = vadd.f32 1.0, %v4803_v19  ;;  %v3474_v24 = vsub.f32 0.0, %v3212_v17  ;;  %v3254_v25 = vpop.f32.mrf.mxu1  ;;  %v3476_v11 = vsub.f32 0.0, %v3253_v21  ;;  %v3589_v29 = vmul.f32 1.442695, %v3473_v16 }
 0x1f6   : > { %v4807_v40 = vpop.eup %4806  ;;  %v3663_v26 = vadd.f32 1.0, %v4805_v52  ;;  %v3214_v27 = vpop.f32.mrf.mxu0  ;;  %v3593_v33 = vmul.f32 1.442695, %v3475_v20 }
 0x1f7   : > { %v4809_v13 = vpop.eup %4808  ;;  %4818 = vrcp.f32 %v3661_v23  ;;  %v3662_v28 = vadd.f32 1.0, %v4807_v40  ;;  %v3255_v30 = vpop.f32.mrf.mxu1  ;;  %v3591_v35 = vmul.f32 1.442695, %v3474_v24  ;;  %v3595_v38 = vmul.f32 1.442695, %v3476_v11 }
 0x1f8   : > { %v4811_v31 = vpop.eup %4810  ;;  %4820 = vrcp.f32 %v3663_v26  ;;  %v3664_v32 = vadd.f32 1.0, %v4809_v13  ;;  %v748_v13 = vrot.slane %v5734_v39, %v5472_v51 }
 0x1f9   : > { %v4813_v34 = vpop.eup %4812  ;;  %4822 = vrcp.f32 %v3662_v28  ;;  %v756_v28 = vrot.slane %v5734_v39, %v5475_v55 }
 0x1fa   : > { %v4815_v43 = vpop.eup %4814  ;;  %4824 = vrcp.f32 %v3664_v32 }
 0x1fb   : > { %v4817_v41 = vpop.eup %4816  ;;  %v4056_v42 = vcombine.low %v4811_v31, %v4815_v43  ;;  %4826 = vpow2.f32 %v3589_v29  ;;  %v752_v29 = vrot.slane %v5734_v39, %v5478_v61  ;;  %v760_v31 = vrot.slane %v5734_v39, %v5483_v1 }
 0x1fc   : > { %v4057_v44 = vcombine.low %v4813_v34, %v4817_v41  ;;  %4828 = vpow2.f32 %v3593_v33 }
 0x1fd   : > { %v4064_v45 = vrot.slane %v4056_v42, %v5581_v58  ;;  %4830 = vpow2.f32 %v3591_v35 }
 0x1fe   : > { %v4071_v47 = vrot.slane %v4057_v44, %v5581_v58  ;;  %4832 = vpow2.f32 %v3595_v38 }
 0x200   : > { %v4072_v9 = vcombine.low %v4064_v45, %v4071_v47  ;;  %v3291_v54 = vpop.f32.mrf.mxu0  ;;  %v3332_v59 = vpop.f32.mrf.mxu1 }
 0x201   : > { %v3292_v62 = vadd.f32 %v3291_v54, %v732_v46  ;;  %v3333_v36 = vadd.f32 %v3332_v59, %v740_v48 }
 0x202   : > { %4168 = vst [vmem:[%s5593_s10 + $0x58] sm:$0xff] %v4072_v9  ;;  %v3293_v63 = vpop.f32.mrf.mxu0  ;;  %v3334_v2 = vpop.f32.mrf.mxu1 }
 0x203   : > { %v3477_v50 = vsub.f32 0.0, %v3292_v62  ;;  %v3294_v37 = vadd.f32 %v3293_v63, %v736_v49  ;;  %v3479_v4 = vsub.f32 0.0, %v3333_v36  ;;  %v3335_v5 = vadd.f32 %v3334_v2, %v744_v57 }
 0x204   : > { %v4819_v3 = vpop.eup %4818  ;;  %v3295_v53 = vpop.f32.mrf.mxu0 }
 0x205   : > { %v4821_v6 = vpop.eup %4820  ;;  %v3597_v7 = vmul.f32 1.442695, %v3477_v50  ;;  %v3478_v56 = vsub.f32 0.0, %v3294_v37  ;;  %v3336_v0 = vpop.f32.mrf.mxu1  ;;  %v3601_v10 = vmul.f32 1.442695, %v3479_v4  ;;  %v3480_v12 = vsub.f32 0.0, %v3335_v5 }
 0x206   : > { %v4823_v8 = vpop.eup %4822  ;;  %v3296_v60 = vpop.f32.mrf.mxu0 }
 0x207   : > { %v4825_v14 = vpop.eup %4824  ;;  %v4073_v15 = vcombine.low %v4819_v3, %v4823_v8  ;;  %4834 = vpow2.f32 %v3597_v7  ;;  %v3599_v16 = vmul.f32 1.442695, %v3478_v56  ;;  %v3337_v17 = vpop.f32.mrf.mxu1  ;;  %v3603_v20 = vmul.f32 1.442695, %v3480_v12 }
 0x208   : > { %v4827_v18 = vpop.eup %4826  ;;  %v4074_v19 = vcombine.low %v4821_v6, %v4825_v14  ;;  %4836 = vpow2.f32 %v3601_v10 }
 0x209   : > { %v4829_v21 = vpop.eup %4828  ;;  %v4081_v22 = vrot.slane %v4073_v15, %v5581_v58  ;;  %v3665_v52 = vadd.f32 1.0, %v4827_v18  ;;  %4838 = vpow2.f32 %v3599_v16 }
 0x20a   : > { %v4831_v23 = vpop.eup %4830  ;;  %v4088_v24 = vrot.slane %v4074_v19, %v5581_v58  ;;  %v3667_v25 = vadd.f32 1.0, %v4829_v21  ;;  %4840 = vpow2.f32 %v3603_v20 }
 0x20b   : > { %v4833_v40 = vpop.eup %4832  ;;  %4842 = vrcp.f32 %v3665_v52  ;;  %v3666_v26 = vadd.f32 1.0, %v4831_v23 }
 0x20c   : > { %v4089_v11 = vcombine.low %v4081_v22, %v4088_v24  ;;  %4844 = vrcp.f32 %v3667_v25  ;;  %v3668_v27 = vadd.f32 1.0, %v4833_v40 }
 0x20d   : > { %4846 = vrcp.f32 %v3666_v26 }
 0x20e   : > { %4169 = vst [vmem:[%s5593_s10 + $0x60] sm:$0xff] %v4089_v11  ;;  %4848 = vrcp.f32 %v3668_v27 }
 0x210   : > { %v3373_v30 = vpop.f32.mrf.mxu0  ;;  %v3414_v33 = vpop.f32.mrf.mxu1 }
 0x211   : > { %v3374_v32 = vadd.f32 %v3373_v30, %v748_v13  ;;  %v3415_v34 = vadd.f32 %v3414_v33, %v756_v28 }
 0x212   : > { %v3375_v35 = vpop.f32.mrf.mxu0  ;;  %v3416_v41 = vpop.f32.mrf.mxu1 }
 0x213   : > { %v3481_v43 = vsub.f32 0.0, %v3374_v32  ;;  %v3376_v38 = vadd.f32 %v3375_v35, %v752_v29  ;;  %v3483_v42 = vsub.f32 0.0, %v3415_v34  ;;  %v3417_v44 = vadd.f32 %v3416_v41, %v760_v31 }
 0x214   : > { %v4835_v51 = vpop.eup %4834  ;;  %v3377_v45 = vpop.f32.mrf.mxu0 }
 0x215   : > { %v4837_v46 = vpop.eup %4836  ;;  %v3669_v55 = vadd.f32 1.0, %v4835_v51  ;;  %v3482_v47 = vsub.f32 0.0, %v3376_v38  ;;  %v3418_v48 = vpop.f32.mrf.mxu1  ;;  %v3484_v9 = vsub.f32 0.0, %v3417_v44  ;;  %v3605_v57 = vmul.f32 1.442695, %v3481_v43 }
 0x216   : > { %v4839_v61 = vpop.eup %4838  ;;  %v3671_v49 = vadd.f32 1.0, %v4837_v46  ;;  %v3378_v54 = vpop.f32.mrf.mxu0  ;;  %v3609_v63 = vmul.f32 1.442695, %v3483_v42 }
 0x217   : > { %v4841_v1 = vpop.eup %4840  ;;  %4850 = vrcp.f32 %v3669_v55  ;;  %v3670_v39 = vadd.f32 1.0, %v4839_v61  ;;  %v3419_v62 = vpop.f32.mrf.mxu1  ;;  %v3607_v37 = vmul.f32 1.442695, %v3482_v47  ;;  %v3611_v3 = vmul.f32 1.442695, %v3484_v9 }
 0x218   : > { %v4843_v59 = vpop.eup %4842  ;;  %4852 = vrcp.f32 %v3671_v49  ;;  %v3672_v36 = vadd.f32 1.0, %v4841_v1 }
 0x219   : > { %v4845_v50 = vpop.eup %4844  ;;  %4854 = vrcp.f32 %v3670_v39 }
 0x21a   : > { %v4847_v2 = vpop.eup %4846  ;;  %4856 = vrcp.f32 %v3672_v36 }
 0x21b   : > { %v4849_v4 = vpop.eup %4848  ;;  %v4090_v5 = vcombine.low %v4843_v59, %v4847_v2  ;;  %4858 = vpow2.f32 %v3605_v57 }
 0x21c   : > { %v4091_v53 = vcombine.low %v4845_v50, %v4849_v4  ;;  %4860 = vpow2.f32 %v3609_v63 }
 0x21d   : > { %v4098_v6 = vrot.slane %v4090_v5, %v5581_v58  ;;  %4862 = vpow2.f32 %v3607_v37 }
 0x21e   : > { %v4105_v7 = vrot.slane %v4091_v53, %v5581_v58  ;;  %4864 = vpow2.f32 %v3611_v3 }
 0x220   : > { %v4106_v56 = vcombine.low %v4098_v6, %v4105_v7 }
 0x222   : > { %4170 = vst [vmem:[%s5593_s10 + $0x68] sm:$0xff] %v4106_v56 }
 0x224   : > { %v4851_v0 = vpop.eup %4850 }
 0x225   : > { %v4853_v8 = vpop.eup %4852 }
 0x226   : > { %v4855_v10 = vpop.eup %4854 }
 0x227   : > { %v4857_v12 = vpop.eup %4856  ;;  %v4107_v60 = vcombine.low %v4851_v0, %v4855_v10 }
 0x228   : > { %v4859_v14 = vpop.eup %4858  ;;  %v4108_v15 = vcombine.low %v4853_v8, %v4857_v12 }
 0x229   : > { %v4861_v16 = vpop.eup %4860  ;;  %v4115_v17 = vrot.slane %v4107_v60, %v5581_v58  ;;  %v3673_v18 = vadd.f32 1.0, %v4859_v14 }
 0x22a   : > { %v4863_v19 = vpop.eup %4862  ;;  %v4122_v20 = vrot.slane %v4108_v15, %v5581_v58  ;;  %v3675_v21 = vadd.f32 1.0, %v4861_v16 }
 0x22b   : > { %v4865_v22 = vpop.eup %4864  ;;  %4866 = vrcp.f32 %v3673_v18  ;;  %v3674_v52 = vadd.f32 1.0, %v4863_v19 }
 0x22c   : > { %v4123_v23 = vcombine.low %v4115_v17, %v4122_v20  ;;  %4868 = vrcp.f32 %v3675_v21  ;;  %v3676_v24 = vadd.f32 1.0, %v4865_v22 }
 0x22d   : > { %4870 = vrcp.f32 %v3674_v52 }
 0x22e   : > { %4171 = vst [vmem:[%s5593_s10 + $0x70] sm:$0xff] %v4123_v23  ;;  %4872 = vrcp.f32 %v3676_v24 }
 0x238   : > { %v4867_v25 = vpop.eup %4866 }
 0x239   : > { %v4869_v40 = vpop.eup %4868 }
 0x23a   : > { %v4871_v26 = vpop.eup %4870 }
 0x23b   : > { %v4873_v11 = vpop.eup %4872  ;;  %v4124_v27 = vcombine.low %v4867_v25, %v4871_v26 }
 0x23c   : > { %v4125_v13 = vcombine.low %v4869_v40, %v4873_v11 }
 0x23d   : > { %v4132_v28 = vrot.slane %v4124_v27, %v5581_v58 }
 0x23e   : > { %v4139_v29 = vrot.slane %v4125_v13, %v5581_v58 }
 0x240   : > { %v4140_v30 = vcombine.low %v4132_v28, %v4139_v29 }
 0x242   : > { %4172 = vst [vmem:[%s5593_s10 + $0x78] sm:$0xff] %v4140_v30 }
 0x243 PF: > { %p16_p8 = scmp.ge.s32.totalorder %s5017_s17, 40   ;;  %s5791_s12 = smov %s4961_s13 }
 0x244   : > { %s5792_s13 = smov %s4965_s14  ;;  %s5793_s14 = smov %s5027_s20 }
 0x245   : > { %s5794_s15 = smov %s5017_s17  ;;  %18 = sbr.rel (!%p16_p8) target bundleno = 5 (0x5), region = 85 }
 0x24a   :  { %4195 = vsyncpa [#allocation3], 1 }
 0x24b   :  { %4197 = vsyncpa [#allocation3 + $0x1], 1 }
 0x24c   :  { %4198 = vsyncpa [#allocation5], 1 }
 0x24d   :  { %4200 = vsyncpa [#allocation5 + $0x1], 1 }

</bundles_post_ra>
